<compile_context>
chip_gen: v6e
topology: v6e:2x2x1
jax: 0.10.0
libtpu: 0.0.40
codegen_flags: <defaults>
</compile_context>

<pallas_src>
import functools

import jax
import jax.numpy as jnp
import numpy as np
from jax.experimental import pallas as pl
from jax.experimental.pallas import tpu as pltpu

LANE = 128


def _round_up(x, m):
    return (x + m - 1) // m * m


# --------------------------------------------------------------------------- #
# Conv kernel: o[oc, m] = relu( sum_k w[oc, k] * p[k, m] )          (bias is a
# folded "ones" row in p / column in w).  Output lane dim = patch axis M.
# --------------------------------------------------------------------------- #
def _convT_kernel(w_ref, p_ref, o_ref):
    y = jnp.dot(w_ref[...], p_ref[...], preferred_element_type=jnp.float32)
    o_ref[...] = jnp.maximum(y, 0.0).astype(o_ref.dtype)


def _im2col_T(x_cnhw, k, s, k_pad, m_pad):
    """x: (C, N, H, W) bf16 -> patches^T (k_pad, m_pad) bf16.
    K order = (c, kh, kw) (matches torch w.reshape(OC, IC*KH*KW));
    M order = (n, oh, ow).  Row index C*k*k is an all-ones row (folded bias)."""
    C, N, H, W = x_cnhw.shape
    OH = (H - k) // s + 1
    OW = (W - k) // s + 1
    cols = [x_cnhw[:, :, kh:kh + s * OH:s, kw:kw + s * OW:s]
            for kh in range(k) for kw in range(k)]           # each (C, N, OH, OW)
    p = jnp.stack(cols, axis=1)                              # (C, k*k, N, OH, OW)
    p = p.reshape(C * k * k, N * OH * OW)
    p = jnp.pad(p, ((0, 1), (0, 0)), constant_values=1.0)    # ones row -> bias
    p = jnp.pad(p, ((0, k_pad - C * k * k - 1),
                    (0, m_pad - N * OH * OW)))
    return p


def conv2d_relu_T(x_cnhw, w_pad, stride, ksz, max_tile_m=2048):
    """x_cnhw: (C, N, H, W) bf16; w_pad: (OC, Kp) bf16 (bias folded at col C*k*k).
    Returns (OC, N, OH, OW) bf16."""
    C, N, H, W = x_cnhw.shape
    OC, Kp = w_pad.shape
    OH = (H - ksz) // stride + 1
    OW = (W - ksz) // stride + 1
    M = N * OH * OW
    if M > max_tile_m:
        tile_m = max_tile_m
        Mp = _round_up(M, tile_m)
    else:
        tile_m = _round_up(M, LANE)
        Mp = tile_m
    patches = _im2col_T(x_cnhw, ksz, stride, Kp, Mp)

    y = pl.pallas_call(
        _convT_kernel,
        out_shape=jax.ShapeDtypeStruct((OC, Mp), jnp.bfloat16),
        grid_spec=pltpu.PrefetchScalarGridSpec(
            num_scalar_prefetch=0,
            grid=(Mp // tile_m,),
            in_specs=[
                pl.BlockSpec((OC, Kp), lambda i: (0, 0)),       # weights (whole)
                pl.BlockSpec((Kp, tile_m), lambda i: (0, i)),   # patch tile
            ],
            out_specs=pl.BlockSpec((OC, tile_m), lambda i: (0, i)),
        ),
        compiler_params=pltpu.CompilerParams(
            dimension_semantics=("parallel",)),
    )(w_pad, patches)
    return y[:, :M].reshape(OC, N, OH, OW)


# --------------------------------------------------------------------------- #
# Fused fc1 (+relu) + fc2 kernel.  Grid over fc1's K with an f32 accumulator;
# fc1 bias is a folded ones-column in x / row in w1.  fc2 runs on the final
# step; its N=15 output is padded to a full 128-lane width.
# --------------------------------------------------------------------------- #
def _fc_fused_kernel(x_ref, w1_ref, w2_ref, b2_ref, o_ref, acc_ref):
    k = pl.program_id(0)

    @pl.when(k == 0)
    def _():
        acc_ref[...] = jnp.zeros_like(acc_ref)

    acc_ref[...] += jnp.dot(x_ref[...], w1_ref[...],
                            preferred_element_type=jnp.float32)

    @pl.when(k == pl.num_programs(0) - 1)
    def _():
        h = jnp.maximum(acc_ref[...], 0.0)                     # bias already in acc
        q = jnp.dot(h.astype(w2_ref.dtype), w2_ref[...],
                    preferred_element_type=jnp.float32)
        o_ref[...] = q + b2_ref[...]


def fc_fused(x_pad, w1_pad, w2_pad, b2_row, tile_k):
    Mp, Kp = x_pad.shape           # batch padded to 16, K padded (ones col at Kf)
    _, H = w1_pad.shape            # hidden = 256
    _, Np = w2_pad.shape           # action dim padded to 128
    assert Kp % tile_k == 0

    cost = pl.CostEstimate(
        flops=2 * Mp * Kp * H + 2 * Mp * H * Np,
        transcendentals=0,
        bytes_accessed=(x_pad.size * 2 + w1_pad.size * 2 + w2_pad.size * 2
                        + Np * 4 + Mp * Np * 4),
    )
    return pl.pallas_call(
        _fc_fused_kernel,
        out_shape=jax.ShapeDtypeStruct((Mp, Np), jnp.float32),
        grid_spec=pltpu.PrefetchScalarGridSpec(
            num_scalar_prefetch=0,
            grid=(Kp // tile_k,),
            in_specs=[
                pl.BlockSpec((Mp, tile_k), lambda k: (0, k)),   # x K-tile
                pl.BlockSpec((tile_k, H), lambda k: (k, 0)),    # fc1 W K-tile
                pl.BlockSpec((H, Np), lambda k: (0, 0)),        # fc2 W (whole)
                pl.BlockSpec((1, Np), lambda k: (0, 0)),        # fc2 bias
            ],
            out_specs=pl.BlockSpec((Mp, Np), lambda k: (0, 0)),
            scratch_shapes=[pltpu.VMEM((Mp, H), jnp.float32)],
        ),
        compiler_params=pltpu.CompilerParams(
            dimension_semantics=("arbitrary",)),
        cost_estimate=cost,
    )(x_pad, w1_pad, w2_pad, b2_row)


# --------------------------------------------------------------------------- #
# Host-side one-time parameter preparation (padding + bias folding + bf16).
# --------------------------------------------------------------------------- #
def prepare_params(params, tile_k_fc=3584):
    p = {}

    def _prep_conv(w, b):
        OC, IC, K, _ = w.shape
        k = IC * K * K
        kp = _round_up(k + 1, LANE)
        we = jnp.concatenate([w.reshape(OC, k), b.reshape(OC, 1)], axis=1)
        return jnp.pad(we, ((0, 0), (0, kp - k - 1))).astype(jnp.bfloat16)

    p["conv1_w"] = _prep_conv(params["conv1_w"], params["conv1_b"])
    p["conv2_w"] = _prep_conv(params["conv2_w"], params["conv2_b"])

    fw1 = params["fc1_w"]                           # (in, hidden) = (7056, 256)
    Kf, Hf = fw1.shape
    Kfp = _round_up(Kf + 1, tile_k_fc)              # 7056+1 -> 7168 (no 8192 blowup)
    fw1e = jnp.concatenate([fw1, params["fc1_b"].reshape(1, Hf)], axis=0)
    p["fc1_w"] = jnp.pad(fw1e, ((0, Kfp - Kf - 1), (0, 0))).astype(jnp.bfloat16)

    fw2 = params["fc2_w"]                           # (hidden, actions)
    _, A = fw2.shape
    Ap = _round_up(A, LANE)
    p["fc2_w"] = jnp.pad(fw2, ((0, 0), (0, Ap - A))).astype(jnp.bfloat16)
    p["fc2_b"] = jnp.pad(params["fc2_b"], (0, Ap - A)).reshape(1, Ap).astype(jnp.float32)
    return p


def dqn_forward(x_nchw, prep, *, action_dim, kernel_size=5, stride=2):
    # Run the conv stack in (C, N, H, W) layout so Pallas conv outputs are
    # lane-dense and no NCHW transposes are needed between layers; bf16 end to
    # end (f32 accumulation inside the kernels).
    x = jnp.transpose(x_nchw.astype(jnp.bfloat16), (1, 0, 2, 3))     # (C,N,H,W)
    y1 = conv2d_relu_T(x, prep["conv1_w"], stride, kernel_size)       # (8,N,45,45) bf16
    y2 = conv2d_relu_T(y1, prep["conv2_w"], stride, kernel_size)      # (16,N,21,21) bf16

    OC2, N, OH2, OW2 = y2.shape
    # torch x.view(N, -1) flattens channel-major: feature index = c*H*W + h*W + w
    feats = jnp.transpose(y2, (1, 0, 2, 3)).reshape(N, OC2 * OH2 * OW2)

    Mp = _round_up(N, 16)                      # 16 rows: full bf16 vreg packing
    Kfp = prep["fc1_w"].shape[0]
    Kf = feats.shape[1]
    ones_col = jnp.ones((N, 1), feats.dtype)   # folded fc1 bias
    xf = jnp.concatenate([feats, ones_col], axis=1)
    xf = jnp.pad(xf, ((0, Mp - N), (0, Kfp - Kf - 1)))

    tile_k = Kfp // 2                          # 2 K-steps: pipelined on v5e,
    q = fc_fused(xf, prep["fc1_w"], prep["fc2_w"], prep["fc2_b"], tile_k=tile_k)
    return q[:N, :action_dim]


def dqn_forward_ref(x, params):
    """Pure-JAX f32 reference (XLA convs) for a sanity check."""
    dn1 = jax.lax.conv_dimension_numbers(
        x.shape, params["conv1_w"].shape, ("NCHW", "OIHW", "NCHW"))
    y = jax.lax.conv_general_dilated(
        x, params["conv1_w"], (2, 2), "VALID", dimension_numbers=dn1)
    y = jax.nn.relu(y + params["conv1_b"][None, :, None, None])
    dn2 = jax.lax.conv_dimension_numbers(
        y.shape, params["conv2_w"].shape, ("NCHW", "OIHW", "NCHW"))
    y = jax.lax.conv_general_dilated(
        y, params["conv2_w"], (2, 2), "VALID", dimension_numbers=dn2)
    y = jax.nn.relu(y + params["conv2_b"][None, :, None, None])
    y = y.reshape(y.shape[0], -1)
    y = jax.nn.relu(y @ params["fc1_w"] + params["fc1_b"])
    return y @ params["fc2_w"] + params["fc2_b"]


if __name__ == "__main__":
    action_dim, in_channels, ksz, stride = 15, 4, 5, 2
    key = jax.random.PRNGKey(0)
    ks = jax.random.split(key, 9)
    # Deterministic synthetic parameters (PyTorch shapes; fc weights stored (in, out)).
    params = {
        "conv1_w": jax.random.normal(ks[0], (8, in_channels, ksz, ksz), jnp.float32) * 0.05,
        "conv1_b": jax.random.normal(ks[1], (8,), jnp.float32) * 0.05,
        "conv2_w": jax.random.normal(ks[2], (16, 8, ksz, ksz), jnp.float32) * 0.05,
        "conv2_b": jax.random.normal(ks[3], (16,), jnp.float32) * 0.05,
        "fc1_w": jax.random.normal(ks[4], (16 * 21 * 21, 256), jnp.float32) * 0.02,
        "fc1_b": jax.random.normal(ks[5], (256,), jnp.float32) * 0.02,
        "fc2_w": jax.random.normal(ks[6], (256, action_dim), jnp.float32) * 0.05,
        "fc2_b": jax.random.normal(ks[7], (action_dim,), jnp.float32) * 0.05,
    }
    # Spatial 94 is what the module implies: conv1 -> 45x45, conv2 -> 21x21 = fc1's 16*21*21.
    x = jax.random.uniform(ks[8], (2, in_channels, 94, 94), jnp.float32)

    prep = prepare_params(params)
    fwd = jax.jit(functools.partial(dqn_forward, action_dim=action_dim,
                                    kernel_size=ksz, stride=stride))
    q = jax.block_until_ready(fwd(x, prep))
    q_ref = jax.block_until_ready(dqn_forward_ref(x, params))
    assert q.shape == (2, action_dim)
    np.testing.assert_allclose(np.asarray(q), np.asarray(q_ref), rtol=2e-2, atol=2e-2)
    print("KERNEL_OK")
</pallas_src>

<mosaic_0001>
module attributes {stable_mosaic.version = 11 : i64} {
  func.func @_convT_kernel(%arg0: i32, %arg1: memref<8x128xbf16, #tpu.memory_space<vmem>>, %arg2: memref<128x2048xbf16, #tpu.memory_space<vmem>>, %arg3: memref<8x2048xbf16, #tpu.memory_space<vmem>>) attributes {dimension_semantics = [#tpu.dimension_semantics<parallel>], iteration_bounds = array<i64: 2>, scalar_prefetch = 0 : i64, scratch_operands = 0 : i64, tpu.core_type = #tpu.core_type<tc>, window_params = [{pipeline_mode = #tpu.pipeline_mode<synchronous>, transform_indices = @transform_0, window_bounds = array<i64: 8, 128>}, {transform_indices = @transform_1, window_bounds = array<i64: 128, 2048>}, {transform_indices = @transform_2, window_bounds = array<i64: 8, 2048>}]} {
    %c0 = arith.constant 0 : index
    %c0_0 = arith.constant 0 : index
    %0 = vector.load %arg1[%c0, %c0_0] : memref<8x128xbf16, #tpu.memory_space<vmem>>, vector<8x128xbf16>
    %c0_1 = arith.constant 0 : index
    %c0_2 = arith.constant 0 : index
    %1 = vector.load %arg2[%c0_1, %c0_2] : memref<128x2048xbf16, #tpu.memory_space<vmem>>, vector<128x2048xbf16>
    %cst = arith.constant dense<0.000000e+00> : vector<8x2048xf32>
    %2 = tpu.matmul %0, %1, %cst {dimension_numbers = #tpu.dot_dimension_numbers<[1], [0], [0], [1], [0, 0, 1, 1], [], []>} : vector<8x128xbf16>, vector<128x2048xbf16>, vector<8x2048xf32> -> vector<8x2048xf32>
    %cst_3 = arith.constant 0.000000e+00 : f32
    %3 = vector.broadcast %cst_3 : f32 to vector<8x2048xf32>
    %4 = arith.maximumf %2, %3 : vector<8x2048xf32>
    %5 = arith.truncf %4 : vector<8x2048xf32> to vector<8x2048xbf16>
    %c0_4 = arith.constant 0 : index
    %c0_5 = arith.constant 0 : index
    %6 = vector.load %arg3[%c0_4, %c0_5] : memref<8x2048xbf16, #tpu.memory_space<vmem>>, vector<8x2048xbf16>
    tpu.vector_store %arg3[%c0_4, %c0_5], %5 {strides = array<i32>} : memref<8x2048xbf16, #tpu.memory_space<vmem>>, vector<8x2048xbf16>,
    return
  }
  func.func @transform_0(%arg0: i32) -> (i32, i32) {
    %c0_i32 = arith.constant 0 : i32
    %c0_i32_0 = arith.constant 0 : i32
    %c0_i32_1 = arith.constant 0 : i32
    return %c0_i32, %c0_i32_0 : i32, i32
  }
  func.func @transform_1(%arg0: i32) -> (i32, i32) {
    %c0_i32 = arith.constant 0 : i32
    %c0_i32_0 = arith.constant 0 : i32
    return %c0_i32, %arg0 : i32, i32
  }
  func.func @transform_2(%arg0: i32) -> (i32, i32) {
    %c0_i32 = arith.constant 0 : i32
    %c0_i32_0 = arith.constant 0 : i32
    return %c0_i32, %arg0 : i32, i32
  }
}

module attributes {stable_mosaic.version = 11 : i64} {
  func.func @_convT_kernel(%arg0: i32, %arg1: memref<16x256xbf16, #tpu.memory_space<vmem>>, %arg2: memref<256x896xbf16, #tpu.memory_space<vmem>>, %arg3: memref<16x896xbf16, #tpu.memory_space<vmem>>) attributes {dimension_semantics = [#tpu.dimension_semantics<parallel>], iteration_bounds = array<i64: 1>, scalar_prefetch = 0 : i64, scratch_operands = 0 : i64, tpu.core_type = #tpu.core_type<tc>, window_params = [{pipeline_mode = #tpu.pipeline_mode<synchronous>, transform_indices = @transform_0, window_bounds = array<i64: 16, 256>}, {transform_indices = @transform_1, window_bounds = array<i64: 256, 896>}, {transform_indices = @transform_2, window_bounds = array<i64: 16, 896>}]} {
    %c0 = arith.constant 0 : index
    %c0_0 = arith.constant 0 : index
    %0 = vector.load %arg1[%c0, %c0_0] : memref<16x256xbf16, #tpu.memory_space<vmem>>, vector<16x256xbf16>
    %c0_1 = arith.constant 0 : index
    %c0_2 = arith.constant 0 : index
    %1 = vector.load %arg2[%c0_1, %c0_2] : memref<256x896xbf16, #tpu.memory_space<vmem>>, vector<256x896xbf16>
    %cst = arith.constant dense<0.000000e+00> : vector<16x896xf32>
    %2 = tpu.matmul %0, %1, %cst {dimension_numbers = #tpu.dot_dimension_numbers<[1], [0], [0], [1], [0, 0, 1, 1], [], []>} : vector<16x256xbf16>, vector<256x896xbf16>, vector<16x896xf32> -> vector<16x896xf32>
    %cst_3 = arith.constant 0.000000e+00 : f32
    %3 = vector.broadcast %cst_3 : f32 to vector<16x896xf32>
    %4 = arith.maximumf %2, %3 : vector<16x896xf32>
    %5 = arith.truncf %4 : vector<16x896xf32> to vector<16x896xbf16>
    %c0_4 = arith.constant 0 : index
    %c0_5 = arith.constant 0 : index
    %6 = vector.load %arg3[%c0_4, %c0_5] : memref<16x896xbf16, #tpu.memory_space<vmem>>, vector<16x896xbf16>
    tpu.vector_store %arg3[%c0_4, %c0_5], %5 {strides = array<i32>} : memref<16x896xbf16, #tpu.memory_space<vmem>>, vector<16x896xbf16>,
    return
  }
  func.func @transform_0(%arg0: i32) -> (i32, i32) {
    %c0_i32 = arith.constant 0 : i32
    %c0_i32_0 = arith.constant 0 : i32
    %c0_i32_1 = arith.constant 0 : i32
    return %c0_i32, %c0_i32_0 : i32, i32
  }
  func.func @transform_1(%arg0: i32) -> (i32, i32) {
    %c0_i32 = arith.constant 0 : i32
    %c0_i32_0 = arith.constant 0 : i32
    return %c0_i32, %arg0 : i32, i32
  }
  func.func @transform_2(%arg0: i32) -> (i32, i32) {
    %c0_i32 = arith.constant 0 : i32
    %c0_i32_0 = arith.constant 0 : i32
    return %c0_i32, %arg0 : i32, i32
  }
}

module attributes {stable_mosaic.version = 11 : i64} {
  func.func @_fc_fused_kernel(%arg0: i32, %arg1: memref<16x3584xbf16, #tpu.memory_space<vmem>>, %arg2: memref<3584x256xbf16, #tpu.memory_space<vmem>>, %arg3: memref<256x128xbf16, #tpu.memory_space<vmem>>, %arg4: memref<1x128xf32, #tpu.memory_space<vmem>>, %arg5: memref<16x128xf32, #tpu.memory_space<vmem>>, %arg6: memref<16x256xf32, #tpu.memory_space<vmem>>) attributes {dimension_semantics = [#tpu.dimension_semantics<arbitrary>], iteration_bounds = array<i64: 2>, scalar_prefetch = 0 : i64, scratch_operands = 1 : i64, tpu.core_type = #tpu.core_type<tc>, window_params = [{transform_indices = @transform_0, window_bounds = array<i64: 16, 3584>}, {transform_indices = @transform_1, window_bounds = array<i64: 3584, 256>}, {pipeline_mode = #tpu.pipeline_mode<synchronous>, transform_indices = @transform_2, window_bounds = array<i64: 256, 128>}, {pipeline_mode = #tpu.pipeline_mode<synchronous>, transform_indices = @transform_3, window_bounds = array<i64: 1, 128>}, {pipeline_mode = #tpu.pipeline_mode<synchronous>, transform_indices = @transform_4, window_bounds = array<i64: 16, 128>}]} {
    %c0_i32 = arith.constant 0 : i32
    %0 = arith.cmpi eq, %arg0, %c0_i32 : i32
    %1 = arith.extui %0 : i1 to i32
    %c0_i32_0 = arith.constant 0 : i32
    %2 = arith.cmpi ne, %1, %c0_i32_0 : i32
    scf.if %2 {
      %cst_9 = arith.constant 0.000000e+00 : f32
      %12 = vector.broadcast %cst_9 : f32 to vector<16x256xf32>
      %c0_10 = arith.constant 0 : index
      %c0_11 = arith.constant 0 : index
      %13 = vector.load %arg6[%c0_10, %c0_11] : memref<16x256xf32, #tpu.memory_space<vmem>>, vector<16x256xf32>
      tpu.vector_store %arg6[%c0_10, %c0_11], %12 {strides = array<i32>} : memref<16x256xf32, #tpu.memory_space<vmem>>, vector<16x256xf32>,
    } else {
    }
    %c0 = arith.constant 0 : index
    %c0_1 = arith.constant 0 : index
    %3 = vector.load %arg6[%c0, %c0_1] : memref<16x256xf32, #tpu.memory_space<vmem>>, vector<16x256xf32>
    %c0_2 = arith.constant 0 : index
    %c0_3 = arith.constant 0 : index
    %4 = vector.load %arg1[%c0_2, %c0_3] : memref<16x3584xbf16, #tpu.memory_space<vmem>>, vector<16x3584xbf16>
    %c0_4 = arith.constant 0 : index
    %c0_5 = arith.constant 0 : index
    %5 = vector.load %arg2[%c0_4, %c0_5] : memref<3584x256xbf16, #tpu.memory_space<vmem>>, vector<3584x256xbf16>
    %cst = arith.constant dense<0.000000e+00> : vector<16x256xf32>
    %6 = tpu.matmul %4, %5, %cst {dimension_numbers = #tpu.dot_dimension_numbers<[1], [0], [0], [1], [0, 0, 1, 1], [], []>} : vector<16x3584xbf16>, vector<3584x256xbf16>, vector<16x256xf32> -> vector<16x256xf32>
    %7 = arith.addf %3, %6 : vector<16x256xf32>
    %c0_6 = arith.constant 0 : index
    %c0_7 = arith.constant 0 : index
    %8 = vector.load %arg6[%c0_6, %c0_7] : memref<16x256xf32, #tpu.memory_space<vmem>>, vector<16x256xf32>
    tpu.vector_store %arg6[%c0_6, %c0_7], %7 {strides = array<i32>} : memref<16x256xf32, #tpu.memory_space<vmem>>, vector<16x256xf32>,
    %c1_i32 = arith.constant 1 : i32
    %9 = arith.cmpi eq, %arg0, %c1_i32 : i32
    %10 = arith.extui %9 : i1 to i32
    %c0_i32_8 = arith.constant 0 : i32
    %11 = arith.cmpi ne, %10, %c0_i32_8 : i32
    scf.if %11 {
      %c0_9 = arith.constant 0 : index
      %c0_10 = arith.constant 0 : index
      %12 = vector.load %arg6[%c0_9, %c0_10] : memref<16x256xf32, #tpu.memory_space<vmem>>, vector<16x256xf32>
      %cst_11 = arith.constant 0.000000e+00 : f32
      %13 = vector.broadcast %cst_11 : f32 to vector<16x256xf32>
      %14 = arith.maximumf %12, %13 : vector<16x256xf32>
      %15 = arith.truncf %14 : vector<16x256xf32> to vector<16x256xbf16>
      %c0_12 = arith.constant 0 : index
      %c0_13 = arith.constant 0 : index
      %16 = vector.load %arg3[%c0_12, %c0_13] : memref<256x128xbf16, #tpu.memory_space<vmem>>, vector<256x128xbf16>
      %cst_14 = arith.constant dense<0.000000e+00> : vector<16x128xf32>
      %17 = tpu.matmul %15, %16, %cst_14 {dimension_numbers = #tpu.dot_dimension_numbers<[1], [0], [0], [1], [0, 0, 1, 1], [], []>} : vector<16x256xbf16>, vector<256x128xbf16>, vector<16x128xf32> -> vector<16x128xf32>
      %c0_15 = arith.constant 0 : index
      %c0_16 = arith.constant 0 : index
      %18 = vector.load %arg4[%c0_15, %c0_16] : memref<1x128xf32, #tpu.memory_space<vmem>>, vector<1x128xf32>
      %19 = vector.broadcast %18 : vector<1x128xf32> to vector<16x128xf32>
      %20 = arith.addf %17, %19 : vector<16x128xf32>
      %c0_17 = arith.constant 0 : index
      %c0_18 = arith.constant 0 : index
      %21 = vector.load %arg5[%c0_17, %c0_18] : memref<16x128xf32, #tpu.memory_space<vmem>>, vector<16x128xf32>
      tpu.vector_store %arg5[%c0_17, %c0_18], %20 {strides = array<i32>} : memref<16x128xf32, #tpu.memory_space<vmem>>, vector<16x128xf32>,
    } else {
    }
    return
  }
  func.func @transform_0(%arg0: i32) -> (i32, i32) {
    %c0_i32 = arith.constant 0 : i32
    %c0_i32_0 = arith.constant 0 : i32
    return %c0_i32, %arg0 : i32, i32
  }
  func.func @transform_1(%arg0: i32) -> (i32, i32) {
    %c0_i32 = arith.constant 0 : i32
    %c0_i32_0 = arith.constant 0 : i32
    return %arg0, %c0_i32 : i32, i32
  }
  func.func @transform_2(%arg0: i32) -> (i32, i32) {
    %c0_i32 = arith.constant 0 : i32
    %c0_i32_0 = arith.constant 0 : i32
    %c0_i32_1 = arith.constant 0 : i32
    return %c0_i32, %c0_i32_0 : i32, i32
  }
  func.func @transform_3(%arg0: i32) -> (i32, i32) {
    %c0_i32 = arith.constant 0 : i32
    %c0_i32_0 = arith.constant 0 : i32
    %c0_i32_1 = arith.constant 0 : i32
    return %c0_i32, %c0_i32_0 : i32, i32
  }
  func.func @transform_4(%arg0: i32) -> (i32, i32) {
    %c0_i32 = arith.constant 0 : i32
    %c0_i32_0 = arith.constant 0 : i32
    %c0_i32_1 = arith.constant 0 : i32
    return %c0_i32, %c0_i32_0 : i32, i32
  }
}

</mosaic_0001>

<bundles_post_ra>
// kernel: dqn_forward.3
= control target key start
LH: loop header
LB: loop body
LE: loop exit
PB: predicated region body
PF: predicated region fallthrough
CT: control target
= control target key end

     0   :  { %s1891_s9 = smov 0   ;;  %s1893_s10 = smov 0   ;;  %s2364_s0 = inlined_call_operand.vmem [shape: bf16[8,128], index: 0, kind: input, shape index: {}]   ;;  %s2365_s1 = inlined_call_operand.vmem [shape: bf16[128,4096], index: 1, kind: input, shape index: {}]   ;;  %s2366_s2 = inlined_call_operand.vmem [shape: bf16[8,4096], index: 2, kind: output, shape index: {}]  }
   0x1   :  { %s1895_s11 = smov 0  }
   0x2 LB: > { %s1668_s12 = sadd.s32 4294967295, %s1873_s11   ;;  %s1908_s13 = sadd.s32 1, %s1873_s11   ;;  %s1873_s11 = sphi %s1895_s11, %s2369_s11   ;;  %s1869_s10 = sphi %s1893_s10, %s2368_s10   ;;  %s1865_s9 = sphi %s1891_s9, %s2367_s9  }
   0x3   : > { %s37_s14 = ssub.s32 %s1873_s11, %s1908_s13  ;;  %s40_s15 = sadd.s32 1, %s1869_s10 }
   0x4   : > { %p38_p0 = scmp.eq.s32.totalorder %s37_s14, 0  ;;  %p47_p1 = scmp.ne.s32.totalorder %s1869_s10, %s1865_s9 }
   0x5   : > { %p48_p2 = scmp.eq.s32.totalorder %s1873_s11, 0  ;;  %p1671_p4 = scmp.ge.s32.totalorder %s1873_s11, 2 }
   0x6   : > { %s1917_s16 = scalar_select %p38_p0, %s1869_s10, %s40_s15  }
   0x7   : > { %p49_p3 = por %p48_p2, %p47_p1  ;;  %102 = sbr.rel (%p1671_p4) target bundleno = 80 (0x50), region = 20 }
   0xc   : > { %105 = sbr.rel (!%p49_p3) target bundleno = 80 (0x50), region = 24  ;;  %s107_s17 = sand.u32 (%p49_p3), 1, %s1869_s10  }
   0xd   : > { %s1817_s18 = sshll.u32 (%p49_p3), %s1873_s11, 6  ;;  %s1672_s19 = sshll.u32 (%p49_p3), %s107_s17, 10 }
   0xe   : > { %s1925_s22 = scalar_lea.vmem (%p49_p3), %s2365_s1, %s1817_s18  ;;  %s1930_s23 = scalar_lea.vmem (%p49_p3), [#allocation2], %s1672_s19 }
   0xf   : > { %v125_v0 = vld [vmem:[%s1925_s22] sm:$0xff] (%p49_p3)  ;;  %v127_v1 = vld [vmem:[%s1925_s22 + $0x8] sm:$0xff] (%p49_p3)  ;;  %v129_v2 = vld [vmem:[%s1925_s22 + $0x10] sm:$0xff] (%p49_p3) }
  0x10   : > { %126 = vst [vmem:[%s1930_s23] sm:$0xff] (%p49_p3), %v125_v0  ;;  %128 = vst [vmem:[%s1930_s23 + $0x8] sm:$0xff] (%p49_p3), %v127_v1  ;;  %v131_v3 = vld [vmem:[%s1925_s22 + $0x18] sm:$0xff] (%p49_p3)  ;;  %v133_v4 = vld [vmem:[%s1925_s22 + $0x20] sm:$0xff] (%p49_p3) }
  0x11   : > { %130 = vst [vmem:[%s1930_s23 + $0x10] sm:$0xff] %v129_v2  ;;  %v135_v5 = vld [vmem:[%s1925_s22 + $0x28] sm:$0xff]  ;;  %132 = vst [vmem:[%s1930_s23 + $0x18] sm:$0xff] %v131_v3  ;;  %v137_v6 = vld [vmem:[%s1925_s22 + $0x30] sm:$0xff] }
  0x12   : > { %134 = vst [vmem:[%s1930_s23 + $0x20] sm:$0xff] %v133_v4  ;;  %136 = vst [vmem:[%s1930_s23 + $0x28] sm:$0xff] %v135_v5  ;;  %v139_v7 = vld [vmem:[%s1925_s22 + $0x38] sm:$0xff]  ;;  %v141_v8 = vld [vmem:[%s1925_s22 + $0x80] sm:$0xff] }
  0x13   : > { %138 = vst [vmem:[%s1930_s23 + $0x30] sm:$0xff] %v137_v6  ;;  %140 = vst [vmem:[%s1930_s23 + $0x38] sm:$0xff] %v139_v7  ;;  %v143_v9 = vld [vmem:[%s1925_s22 + $0x88] sm:$0xff]  ;;  %v145_v10 = vld [vmem:[%s1925_s22 + $0x90] sm:$0xff] }
  0x14   : > { %142 = vst [vmem:[%s1930_s23 + $0x40] sm:$0xff] %v141_v8  ;;  %v147_v11 = vld [vmem:[%s1925_s22 + $0x98] sm:$0xff]  ;;  %144 = vst [vmem:[%s1930_s23 + $0x48] sm:$0xff] %v143_v9  ;;  %v149_v12 = vld [vmem:[%s1925_s22 + $0xa0] sm:$0xff] }
  0x15   : > { %146 = vst [vmem:[%s1930_s23 + $0x50] sm:$0xff] %v145_v10  ;;  %148 = vst [vmem:[%s1930_s23 + $0x58] sm:$0xff] %v147_v11  ;;  %v151_v13 = vld [vmem:[%s1925_s22 + $0xa8] sm:$0xff]  ;;  %v153_v14 = vld [vmem:[%s1925_s22 + $0xb0] sm:$0xff] }
  0x16   : > { %150 = vst [vmem:[%s1930_s23 + $0x60] sm:$0xff] %v149_v12  ;;  %152 = vst [vmem:[%s1930_s23 + $0x68] sm:$0xff] %v151_v13  ;;  %v155_v15 = vld [vmem:[%s1925_s22 + $0xb8] sm:$0xff]  ;;  %v157_v16 = vld [vmem:[%s1925_s22 + $0x100] sm:$0xff] }
  0x17   : > { %154 = vst [vmem:[%s1930_s23 + $0x70] sm:$0xff] %v153_v14  ;;  %v159_v17 = vld [vmem:[%s1925_s22 + $0x108] sm:$0xff]  ;;  %156 = vst [vmem:[%s1930_s23 + $0x78] sm:$0xff] %v155_v15  ;;  %v161_v18 = vld [vmem:[%s1925_s22 + $0x110] sm:$0xff] }
  0x18   : > { %158 = vst [vmem:[%s1930_s23 + $0x80] sm:$0xff] %v157_v16  ;;  %160 = vst [vmem:[%s1930_s23 + $0x88] sm:$0xff] %v159_v17  ;;  %v163_v19 = vld [vmem:[%s1925_s22 + $0x118] sm:$0xff]  ;;  %v165_v20 = vld [vmem:[%s1925_s22 + $0x120] sm:$0xff] }
  0x19   : > { %162 = vst [vmem:[%s1930_s23 + $0x90] sm:$0xff] %v161_v18  ;;  %164 = vst [vmem:[%s1930_s23 + $0x98] sm:$0xff] %v163_v19  ;;  %v167_v21 = vld [vmem:[%s1925_s22 + $0x128] sm:$0xff]  ;;  %v169_v22 = vld [vmem:[%s1925_s22 + $0x130] sm:$0xff] }
  0x1a   : > { %166 = vst [vmem:[%s1930_s23 + $0xa0] sm:$0xff] %v165_v20  ;;  %v171_v23 = vld [vmem:[%s1925_s22 + $0x138] sm:$0xff]  ;;  %168 = vst [vmem:[%s1930_s23 + $0xa8] sm:$0xff] %v167_v21  ;;  %v173_v24 = vld [vmem:[%s1925_s22 + $0x180] sm:$0xff] }
  0x1b   : > { %170 = vst [vmem:[%s1930_s23 + $0xb0] sm:$0xff] %v169_v22  ;;  %172 = vst [vmem:[%s1930_s23 + $0xb8] sm:$0xff] %v171_v23  ;;  %v175_v25 = vld [vmem:[%s1925_s22 + $0x188] sm:$0xff]  ;;  %v177_v26 = vld [vmem:[%s1925_s22 + $0x190] sm:$0xff] }
  0x1c   : > { %174 = vst [vmem:[%s1930_s23 + $0xc0] sm:$0xff] %v173_v24  ;;  %176 = vst [vmem:[%s1930_s23 + $0xc8] sm:$0xff] %v175_v25  ;;  %v179_v27 = vld [vmem:[%s1925_s22 + $0x198] sm:$0xff]  ;;  %v181_v28 = vld [vmem:[%s1925_s22 + $0x1a0] sm:$0xff] }
  0x1d   : > { %178 = vst [vmem:[%s1930_s23 + $0xd0] sm:$0xff] %v177_v26  ;;  %v183_v29 = vld [vmem:[%s1925_s22 + $0x1a8] sm:$0xff]  ;;  %180 = vst [vmem:[%s1930_s23 + $0xd8] sm:$0xff] %v179_v27  ;;  %v185_v30 = vld [vmem:[%s1925_s22 + $0x1b0] sm:$0xff] }
  0x1e   : > { %182 = vst [vmem:[%s1930_s23 + $0xe0] sm:$0xff] %v181_v28  ;;  %184 = vst [vmem:[%s1930_s23 + $0xe8] sm:$0xff] %v183_v29  ;;  %v187_v31 = vld [vmem:[%s1925_s22 + $0x1b8] sm:$0xff]  ;;  %v189_v32 = vld [vmem:[%s1925_s22 + $0x200] sm:$0xff] }
  0x1f   : > { %186 = vst [vmem:[%s1930_s23 + $0xf0] sm:$0xff] %v185_v30  ;;  %188 = vst [vmem:[%s1930_s23 + $0xf8] sm:$0xff] %v187_v31  ;;  %v191_v33 = vld [vmem:[%s1925_s22 + $0x208] sm:$0xff]  ;;  %v193_v34 = vld [vmem:[%s1925_s22 + $0x210] sm:$0xff] }
  0x20   : > { %190 = vst [vmem:[%s1930_s23 + $0x100] sm:$0xff] %v189_v32  ;;  %v195_v35 = vld [vmem:[%s1925_s22 + $0x218] sm:$0xff]  ;;  %192 = vst [vmem:[%s1930_s23 + $0x108] sm:$0xff] %v191_v33  ;;  %v197_v36 = vld [vmem:[%s1925_s22 + $0x220] sm:$0xff] }
  0x21   : > { %194 = vst [vmem:[%s1930_s23 + $0x110] sm:$0xff] %v193_v34  ;;  %196 = vst [vmem:[%s1930_s23 + $0x118] sm:$0xff] %v195_v35  ;;  %v199_v37 = vld [vmem:[%s1925_s22 + $0x228] sm:$0xff]  ;;  %v201_v38 = vld [vmem:[%s1925_s22 + $0x230] sm:$0xff] }
  0x22   : > { %198 = vst [vmem:[%s1930_s23 + $0x120] sm:$0xff] %v197_v36  ;;  %200 = vst [vmem:[%s1930_s23 + $0x128] sm:$0xff] %v199_v37  ;;  %v203_v39 = vld [vmem:[%s1925_s22 + $0x238] sm:$0xff]  ;;  %v205_v40 = vld [vmem:[%s1925_s22 + $0x280] sm:$0xff] }
  0x23   : > { %202 = vst [vmem:[%s1930_s23 + $0x130] sm:$0xff] %v201_v38  ;;  %v207_v41 = vld [vmem:[%s1925_s22 + $0x288] sm:$0xff]  ;;  %204 = vst [vmem:[%s1930_s23 + $0x138] sm:$0xff] %v203_v39  ;;  %v209_v42 = vld [vmem:[%s1925_s22 + $0x290] sm:$0xff] }
  0x24   : > { %206 = vst [vmem:[%s1930_s23 + $0x140] sm:$0xff] %v205_v40  ;;  %208 = vst [vmem:[%s1930_s23 + $0x148] sm:$0xff] %v207_v41  ;;  %v211_v43 = vld [vmem:[%s1925_s22 + $0x298] sm:$0xff]  ;;  %v213_v44 = vld [vmem:[%s1925_s22 + $0x2a0] sm:$0xff] }
  0x25   : > { %210 = vst [vmem:[%s1930_s23 + $0x150] sm:$0xff] %v209_v42  ;;  %212 = vst [vmem:[%s1930_s23 + $0x158] sm:$0xff] %v211_v43  ;;  %v215_v45 = vld [vmem:[%s1925_s22 + $0x2a8] sm:$0xff]  ;;  %v217_v46 = vld [vmem:[%s1925_s22 + $0x2b0] sm:$0xff] }
  0x26   : > { %214 = vst [vmem:[%s1930_s23 + $0x160] sm:$0xff] %v213_v44  ;;  %v219_v47 = vld [vmem:[%s1925_s22 + $0x2b8] sm:$0xff]  ;;  %216 = vst [vmem:[%s1930_s23 + $0x168] sm:$0xff] %v215_v45  ;;  %v221_v48 = vld [vmem:[%s1925_s22 + $0x300] sm:$0xff] }
  0x27   : > { %218 = vst [vmem:[%s1930_s23 + $0x170] sm:$0xff] %v217_v46  ;;  %220 = vst [vmem:[%s1930_s23 + $0x178] sm:$0xff] %v219_v47  ;;  %v223_v49 = vld [vmem:[%s1925_s22 + $0x308] sm:$0xff]  ;;  %v225_v50 = vld [vmem:[%s1925_s22 + $0x310] sm:$0xff] }
  0x28   : > { %222 = vst [vmem:[%s1930_s23 + $0x180] sm:$0xff] %v221_v48  ;;  %224 = vst [vmem:[%s1930_s23 + $0x188] sm:$0xff] %v223_v49  ;;  %v227_v51 = vld [vmem:[%s1925_s22 + $0x318] sm:$0xff]  ;;  %v229_v52 = vld [vmem:[%s1925_s22 + $0x320] sm:$0xff] }
  0x29   : > { %226 = vst [vmem:[%s1930_s23 + $0x190] sm:$0xff] %v225_v50  ;;  %v231_v53 = vld [vmem:[%s1925_s22 + $0x328] sm:$0xff]  ;;  %228 = vst [vmem:[%s1930_s23 + $0x198] sm:$0xff] %v227_v51  ;;  %v233_v54 = vld [vmem:[%s1925_s22 + $0x330] sm:$0xff] }
  0x2a   : > { %230 = vst [vmem:[%s1930_s23 + $0x1a0] sm:$0xff] %v229_v52  ;;  %232 = vst [vmem:[%s1930_s23 + $0x1a8] sm:$0xff] %v231_v53  ;;  %v235_v55 = vld [vmem:[%s1925_s22 + $0x338] sm:$0xff]  ;;  %v237_v56 = vld [vmem:[%s1925_s22 + $0x380] sm:$0xff] }
  0x2b   : > { %234 = vst [vmem:[%s1930_s23 + $0x1b0] sm:$0xff] %v233_v54  ;;  %236 = vst [vmem:[%s1930_s23 + $0x1b8] sm:$0xff] %v235_v55  ;;  %v239_v57 = vld [vmem:[%s1925_s22 + $0x388] sm:$0xff]  ;;  %v241_v58 = vld [vmem:[%s1925_s22 + $0x390] sm:$0xff] }
  0x2c   : > { %238 = vst [vmem:[%s1930_s23 + $0x1c0] sm:$0xff] %v237_v56  ;;  %v243_v59 = vld [vmem:[%s1925_s22 + $0x398] sm:$0xff]  ;;  %240 = vst [vmem:[%s1930_s23 + $0x1c8] sm:$0xff] %v239_v57  ;;  %v245_v60 = vld [vmem:[%s1925_s22 + $0x3a0] sm:$0xff] }
  0x2d   : > { %242 = vst [vmem:[%s1930_s23 + $0x1d0] sm:$0xff] %v241_v58  ;;  %244 = vst [vmem:[%s1930_s23 + $0x1d8] sm:$0xff] %v243_v59  ;;  %v247_v61 = vld [vmem:[%s1925_s22 + $0x3a8] sm:$0xff]  ;;  %v249_v62 = vld [vmem:[%s1925_s22 + $0x3b0] sm:$0xff] }
  0x2e   : > { %246 = vst [vmem:[%s1930_s23 + $0x1e0] sm:$0xff] %v245_v60  ;;  %248 = vst [vmem:[%s1930_s23 + $0x1e8] sm:$0xff] %v247_v61  ;;  %v251_v63 = vld [vmem:[%s1925_s22 + $0x3b8] sm:$0xff]  ;;  %v253_v0 = vld [vmem:[%s1925_s22 + $0x400] sm:$0xff] }
  0x2f   : > { %250 = vst [vmem:[%s1930_s23 + $0x1f0] sm:$0xff] %v249_v62  ;;  %v255_v1 = vld [vmem:[%s1925_s22 + $0x408] sm:$0xff]  ;;  %252 = vst [vmem:[%s1930_s23 + $0x1f8] sm:$0xff] %v251_v63  ;;  %v257_v2 = vld [vmem:[%s1925_s22 + $0x410] sm:$0xff] }
  0x30   : > { %254 = vst [vmem:[%s1930_s23 + $0x200] sm:$0xff] %v253_v0  ;;  %256 = vst [vmem:[%s1930_s23 + $0x208] sm:$0xff] %v255_v1  ;;  %v259_v3 = vld [vmem:[%s1925_s22 + $0x418] sm:$0xff]  ;;  %v261_v4 = vld [vmem:[%s1925_s22 + $0x420] sm:$0xff] }
  0x31   : > { %258 = vst [vmem:[%s1930_s23 + $0x210] sm:$0xff] %v257_v2  ;;  %260 = vst [vmem:[%s1930_s23 + $0x218] sm:$0xff] %v259_v3  ;;  %v263_v5 = vld [vmem:[%s1925_s22 + $0x428] sm:$0xff]  ;;  %v265_v6 = vld [vmem:[%s1925_s22 + $0x430] sm:$0xff] }
  0x32   : > { %262 = vst [vmem:[%s1930_s23 + $0x220] sm:$0xff] %v261_v4  ;;  %v267_v7 = vld [vmem:[%s1925_s22 + $0x438] sm:$0xff]  ;;  %264 = vst [vmem:[%s1930_s23 + $0x228] sm:$0xff] %v263_v5  ;;  %v269_v8 = vld [vmem:[%s1925_s22 + $0x480] sm:$0xff] }
  0x33   : > { %266 = vst [vmem:[%s1930_s23 + $0x230] sm:$0xff] %v265_v6  ;;  %268 = vst [vmem:[%s1930_s23 + $0x238] sm:$0xff] %v267_v7  ;;  %v271_v9 = vld [vmem:[%s1925_s22 + $0x488] sm:$0xff]  ;;  %v273_v10 = vld [vmem:[%s1925_s22 + $0x490] sm:$0xff] }
  0x34   : > { %270 = vst [vmem:[%s1930_s23 + $0x240] sm:$0xff] %v269_v8  ;;  %272 = vst [vmem:[%s1930_s23 + $0x248] sm:$0xff] %v271_v9  ;;  %v275_v11 = vld [vmem:[%s1925_s22 + $0x498] sm:$0xff]  ;;  %v277_v12 = vld [vmem:[%s1925_s22 + $0x4a0] sm:$0xff] }
  0x35   : > { %274 = vst [vmem:[%s1930_s23 + $0x250] sm:$0xff] %v273_v10  ;;  %v279_v13 = vld [vmem:[%s1925_s22 + $0x4a8] sm:$0xff]  ;;  %276 = vst [vmem:[%s1930_s23 + $0x258] sm:$0xff] %v275_v11  ;;  %v281_v14 = vld [vmem:[%s1925_s22 + $0x4b0] sm:$0xff] }
  0x36   : > { %278 = vst [vmem:[%s1930_s23 + $0x260] sm:$0xff] %v277_v12  ;;  %280 = vst [vmem:[%s1930_s23 + $0x268] sm:$0xff] %v279_v13  ;;  %v283_v15 = vld [vmem:[%s1925_s22 + $0x4b8] sm:$0xff]  ;;  %v285_v16 = vld [vmem:[%s1925_s22 + $0x500] sm:$0xff] }
  0x37   : > { %282 = vst [vmem:[%s1930_s23 + $0x270] sm:$0xff] %v281_v14  ;;  %284 = vst [vmem:[%s1930_s23 + $0x278] sm:$0xff] %v283_v15  ;;  %v287_v17 = vld [vmem:[%s1925_s22 + $0x508] sm:$0xff]  ;;  %v289_v18 = vld [vmem:[%s1925_s22 + $0x510] sm:$0xff] }
  0x38   : > { %286 = vst [vmem:[%s1930_s23 + $0x280] sm:$0xff] %v285_v16  ;;  %v291_v19 = vld [vmem:[%s1925_s22 + $0x518] sm:$0xff]  ;;  %288 = vst [vmem:[%s1930_s23 + $0x288] sm:$0xff] %v287_v17  ;;  %v293_v20 = vld [vmem:[%s1925_s22 + $0x520] sm:$0xff] }
  0x39   : > { %290 = vst [vmem:[%s1930_s23 + $0x290] sm:$0xff] %v289_v18  ;;  %292 = vst [vmem:[%s1930_s23 + $0x298] sm:$0xff] %v291_v19  ;;  %v295_v21 = vld [vmem:[%s1925_s22 + $0x528] sm:$0xff]  ;;  %v297_v22 = vld [vmem:[%s1925_s22 + $0x530] sm:$0xff] }
  0x3a   : > { %294 = vst [vmem:[%s1930_s23 + $0x2a0] sm:$0xff] %v293_v20  ;;  %296 = vst [vmem:[%s1930_s23 + $0x2a8] sm:$0xff] %v295_v21  ;;  %v299_v23 = vld [vmem:[%s1925_s22 + $0x538] sm:$0xff]  ;;  %v301_v24 = vld [vmem:[%s1925_s22 + $0x580] sm:$0xff] }
  0x3b   : > { %298 = vst [vmem:[%s1930_s23 + $0x2b0] sm:$0xff] %v297_v22  ;;  %v303_v25 = vld [vmem:[%s1925_s22 + $0x588] sm:$0xff]  ;;  %300 = vst [vmem:[%s1930_s23 + $0x2b8] sm:$0xff] %v299_v23  ;;  %v305_v26 = vld [vmem:[%s1925_s22 + $0x590] sm:$0xff] }
  0x3c   : > { %302 = vst [vmem:[%s1930_s23 + $0x2c0] sm:$0xff] %v301_v24  ;;  %304 = vst [vmem:[%s1930_s23 + $0x2c8] sm:$0xff] %v303_v25  ;;  %v307_v27 = vld [vmem:[%s1925_s22 + $0x598] sm:$0xff]  ;;  %v309_v28 = vld [vmem:[%s1925_s22 + $0x5a0] sm:$0xff] }
  0x3d   : > { %306 = vst [vmem:[%s1930_s23 + $0x2d0] sm:$0xff] %v305_v26  ;;  %308 = vst [vmem:[%s1930_s23 + $0x2d8] sm:$0xff] %v307_v27  ;;  %v311_v29 = vld [vmem:[%s1925_s22 + $0x5a8] sm:$0xff]  ;;  %v313_v30 = vld [vmem:[%s1925_s22 + $0x5b0] sm:$0xff] }
  0x3e   : > { %310 = vst [vmem:[%s1930_s23 + $0x2e0] sm:$0xff] %v309_v28  ;;  %v315_v31 = vld [vmem:[%s1925_s22 + $0x5b8] sm:$0xff]  ;;  %312 = vst [vmem:[%s1930_s23 + $0x2e8] sm:$0xff] %v311_v29  ;;  %v317_v32 = vld [vmem:[%s1925_s22 + $0x600] sm:$0xff] }
  0x3f   : > { %314 = vst [vmem:[%s1930_s23 + $0x2f0] sm:$0xff] %v313_v30  ;;  %316 = vst [vmem:[%s1930_s23 + $0x2f8] sm:$0xff] %v315_v31  ;;  %v319_v33 = vld [vmem:[%s1925_s22 + $0x608] sm:$0xff]  ;;  %v321_v34 = vld [vmem:[%s1925_s22 + $0x610] sm:$0xff] }
  0x40   : > { %318 = vst [vmem:[%s1930_s23 + $0x300] sm:$0xff] %v317_v32  ;;  %320 = vst [vmem:[%s1930_s23 + $0x308] sm:$0xff] %v319_v33  ;;  %v323_v35 = vld [vmem:[%s1925_s22 + $0x618] sm:$0xff]  ;;  %v325_v36 = vld [vmem:[%s1925_s22 + $0x620] sm:$0xff] }
  0x41   : > { %322 = vst [vmem:[%s1930_s23 + $0x310] sm:$0xff] %v321_v34  ;;  %v327_v37 = vld [vmem:[%s1925_s22 + $0x628] sm:$0xff]  ;;  %324 = vst [vmem:[%s1930_s23 + $0x318] sm:$0xff] %v323_v35  ;;  %v329_v38 = vld [vmem:[%s1925_s22 + $0x630] sm:$0xff] }
  0x42   : > { %326 = vst [vmem:[%s1930_s23 + $0x320] sm:$0xff] %v325_v36  ;;  %328 = vst [vmem:[%s1930_s23 + $0x328] sm:$0xff] %v327_v37  ;;  %v331_v39 = vld [vmem:[%s1925_s22 + $0x638] sm:$0xff]  ;;  %v333_v40 = vld [vmem:[%s1925_s22 + $0x680] sm:$0xff] }
  0x43   : > { %330 = vst [vmem:[%s1930_s23 + $0x330] sm:$0xff] %v329_v38  ;;  %332 = vst [vmem:[%s1930_s23 + $0x338] sm:$0xff] %v331_v39  ;;  %v335_v41 = vld [vmem:[%s1925_s22 + $0x688] sm:$0xff]  ;;  %v337_v42 = vld [vmem:[%s1925_s22 + $0x690] sm:$0xff] }
  0x44   : > { %334 = vst [vmem:[%s1930_s23 + $0x340] sm:$0xff] %v333_v40  ;;  %v339_v43 = vld [vmem:[%s1925_s22 + $0x698] sm:$0xff]  ;;  %336 = vst [vmem:[%s1930_s23 + $0x348] sm:$0xff] %v335_v41  ;;  %v341_v44 = vld [vmem:[%s1925_s22 + $0x6a0] sm:$0xff] }
  0x45   : > { %338 = vst [vmem:[%s1930_s23 + $0x350] sm:$0xff] %v337_v42  ;;  %340 = vst [vmem:[%s1930_s23 + $0x358] sm:$0xff] %v339_v43  ;;  %v343_v45 = vld [vmem:[%s1925_s22 + $0x6a8] sm:$0xff]  ;;  %v345_v46 = vld [vmem:[%s1925_s22 + $0x6b0] sm:$0xff] }
  0x46   : > { %342 = vst [vmem:[%s1930_s23 + $0x360] sm:$0xff] %v341_v44  ;;  %344 = vst [vmem:[%s1930_s23 + $0x368] sm:$0xff] %v343_v45  ;;  %v347_v47 = vld [vmem:[%s1925_s22 + $0x6b8] sm:$0xff]  ;;  %v349_v48 = vld [vmem:[%s1925_s22 + $0x700] sm:$0xff] }
  0x47   : > { %346 = vst [vmem:[%s1930_s23 + $0x370] sm:$0xff] %v345_v46  ;;  %v351_v49 = vld [vmem:[%s1925_s22 + $0x708] sm:$0xff]  ;;  %348 = vst [vmem:[%s1930_s23 + $0x378] sm:$0xff] %v347_v47  ;;  %v353_v50 = vld [vmem:[%s1925_s22 + $0x710] sm:$0xff] }
  0x48   : > { %350 = vst [vmem:[%s1930_s23 + $0x380] sm:$0xff] %v349_v48  ;;  %352 = vst [vmem:[%s1930_s23 + $0x388] sm:$0xff] %v351_v49  ;;  %v355_v51 = vld [vmem:[%s1925_s22 + $0x718] sm:$0xff]  ;;  %v357_v52 = vld [vmem:[%s1925_s22 + $0x720] sm:$0xff] }
  0x49   : > { %354 = vst [vmem:[%s1930_s23 + $0x390] sm:$0xff] %v353_v50  ;;  %356 = vst [vmem:[%s1930_s23 + $0x398] sm:$0xff] %v355_v51  ;;  %v359_v53 = vld [vmem:[%s1925_s22 + $0x728] sm:$0xff]  ;;  %v361_v54 = vld [vmem:[%s1925_s22 + $0x730] sm:$0xff] }
  0x4a   : > { %358 = vst [vmem:[%s1930_s23 + $0x3a0] sm:$0xff] %v357_v52  ;;  %v363_v55 = vld [vmem:[%s1925_s22 + $0x738] sm:$0xff]  ;;  %360 = vst [vmem:[%s1930_s23 + $0x3a8] sm:$0xff] %v359_v53  ;;  %v365_v56 = vld [vmem:[%s1925_s22 + $0x780] sm:$0xff] }
  0x4b   : > { %362 = vst [vmem:[%s1930_s23 + $0x3b0] sm:$0xff] %v361_v54  ;;  %364 = vst [vmem:[%s1930_s23 + $0x3b8] sm:$0xff] %v363_v55  ;;  %v367_v57 = vld [vmem:[%s1925_s22 + $0x788] sm:$0xff]  ;;  %v369_v58 = vld [vmem:[%s1925_s22 + $0x790] sm:$0xff] }
  0x4c   : > { %366 = vst [vmem:[%s1930_s23 + $0x3c0] sm:$0xff] %v365_v56  ;;  %368 = vst [vmem:[%s1930_s23 + $0x3c8] sm:$0xff] %v367_v57  ;;  %v371_v59 = vld [vmem:[%s1925_s22 + $0x798] sm:$0xff]  ;;  %v373_v60 = vld [vmem:[%s1925_s22 + $0x7a0] sm:$0xff] }
  0x4d   : > { %370 = vst [vmem:[%s1930_s23 + $0x3d0] sm:$0xff] %v369_v58  ;;  %v375_v61 = vld [vmem:[%s1925_s22 + $0x7a8] sm:$0xff]  ;;  %372 = vst [vmem:[%s1930_s23 + $0x3d8] sm:$0xff] %v371_v59  ;;  %v377_v62 = vld [vmem:[%s1925_s22 + $0x7b0] sm:$0xff] }
  0x4e   : > { %374 = vst [vmem:[%s1930_s23 + $0x3e0] sm:$0xff] %v373_v60  ;;  %376 = vst [vmem:[%s1930_s23 + $0x3e8] sm:$0xff] %v375_v61  ;;  %v379_v63 = vld [vmem:[%s1925_s22 + $0x7b8] sm:$0xff] }
  0x4f   : > { %378 = vst [vmem:[%s1930_s23 + $0x3f0] sm:$0xff] %v377_v62  ;;  %380 = vst [vmem:[%s1930_s23 + $0x3f8] sm:$0xff] %v379_v63 }
  0x50 PF: > { %p1675_p5 = scmp.ge.s32.totalorder %s1873_s11, 1  ;;  %p385_p6 = scmp.lt.s32.totalorder %s1873_s11, 3 }
  0x52   : > { %p386_p7 = pnand %p1675_p5, %p385_p6 }
  0x53   : > { %s392_s24 = sand.u32 (!%p386_p7), 1, %s1865_s9   ;;  %s1677_s29 = sshll.u32 (!%p386_p7), %s1668_s12, 4 }
  0x54   : > { %389 = sbr.rel (%p386_p7) target bundleno = 421 (0x1a5), region = 47  ;;  %s1676_s25 = sshll.u32 (!%p386_p7), %s392_s24, 10 }
  0x55   : > { %s2190_s26 = scalar_lea.vmem (!%p386_p7), [#allocation2], %s1676_s25  ;;  %p415_p8 = scmp.lt.s32.totalorder (!%p386_p7), %s1677_s29, 31 }
  0x59   : > { %v1875_v0 = vmov 0   ;;  %v534_v1 = vld [vmem:[%s2190_s26 + $0x380] sm:$0xff]  ;;  %v535_v3 = vld [vmem:[%s2190_s26 + $0x388] sm:$0xff]  ;;  %v536_v63 = vld [vmem:[%s2190_s26 + $0x390] sm:$0xff]  ;;  %s2371_s29 = smov (!%p415_p8, %s1677_s29), 31 }
  0x5a   : > { %1222 = vmatprep.mubr.bf16.mxu0 %v1875_v0  ;;  %1263 = vmatprep.mubr.bf16.mxu1 %v1875_v0  ;;  %v542_v2 = vld [vmem:[%s2190_s26 + $0x3c0] sm:$0xff]  ;;  %v543_v5 = vld [vmem:[%s2190_s26 + $0x3c8] sm:$0xff]  ;;  %s1678_s30 = sshll.u32 %s2371_s29, 2 }
  0x5b   : > { %v1792_v4 = vcombine.high %v534_v1, %v542_v2  ;;  %v1791_v6 = vcombine.low %v534_v1, %v542_v2  ;;  %v518_v7 = vld [vmem:[%s2190_s26 + $0x300] sm:$0xff]  ;;  %v1794_v9 = vcombine.high %v535_v3, %v543_v5  ;;  %v1793_v10 = vcombine.low %v535_v3, %v543_v5  ;;  %v519_v12 = vld [vmem:[%s2190_s26 + $0x308] sm:$0xff]  ;;  %v544_v1 = vld [vmem:[%s2190_s26 + $0x3d0] sm:$0xff]  ;;  %s2344_s5 = scalar_lea.vmem %s2366_s2, %s1678_s30 }
  0x5c   : > { %v526_v8 = vld [vmem:[%s2190_s26 + $0x340] sm:$0xff]  ;;  %v527_v13 = vld [vmem:[%s2190_s26 + $0x348] sm:$0xff]  ;;  %v537_v2 = vld [vmem:[%s2190_s26 + $0x398] sm:$0xff] }
  0x5d   : > { %v1776_v11 = vcombine.high %v518_v7, %v526_v8  ;;  %v502_v14 = vld [vmem:[%s2190_s26 + $0x280] sm:$0xff]  ;;  %1190 = vmatprep.subr.bf16.mxu0 %v1792_v4  ;;  %v1778_v15 = vcombine.high %v519_v12, %v527_v13  ;;  %v503_v17 = vld [vmem:[%s2190_s26 + $0x288] sm:$0xff]  ;;  %1231 = vmatprep.subr.bf16.mxu1 %v1794_v9  ;;  %v1775_v19 = vcombine.low %v518_v7, %v526_v8  ;;  %v545_v3 = vld [vmem:[%s2190_s26 + $0x3d8] sm:$0xff] }
  0x5e   : > { %v510_v16 = vld [vmem:[%s2190_s26 + $0x2c0] sm:$0xff]  ;;  %v511_v18 = vld [vmem:[%s2190_s26 + $0x2c8] sm:$0xff]  ;;  %1191 = vmatpush1.bf16.msra.mxu0 %v1791_v6  ;;  %1232 = vmatpush1.bf16.msra.mxu1 %v1793_v10  ;;  %v1777_v20 = vcombine.low %v519_v12, %v527_v13  ;;  %v1796_v6 = vcombine.high %v536_v63, %v544_v1  ;;  %v1798_v7 = vcombine.high %v537_v2, %v545_v3  ;;  %v520_v8 = vld [vmem:[%s2190_s26 + $0x310] sm:$0xff] }
  0x5f   : > { %1192 = vmatprep.subr.bf16.mxu0 %v1776_v11  ;;  %v1760_v21 = vcombine.high %v502_v14, %v510_v16  ;;  %1233 = vmatprep.subr.bf16.mxu1 %v1778_v15  ;;  %v1762_v22 = vcombine.high %v503_v17, %v511_v18  ;;  %v486_v23 = vld [vmem:[%s2190_s26 + $0x200] sm:$0xff]  ;;  %v487_v25 = vld [vmem:[%s2190_s26 + $0x208] sm:$0xff]  ;;  %v1759_v27 = vcombine.low %v502_v14, %v510_v16  ;;  %v528_v9 = vld [vmem:[%s2190_s26 + $0x350] sm:$0xff] }
  0x60   : > { %v494_v24 = vld [vmem:[%s2190_s26 + $0x240] sm:$0xff]  ;;  %v495_v26 = vld [vmem:[%s2190_s26 + $0x248] sm:$0xff]  ;;  %v1761_v28 = vcombine.low %v503_v17, %v511_v18  ;;  %v521_v10 = vld [vmem:[%s2190_s26 + $0x318] sm:$0xff]  ;;  %v1795_v13 = vcombine.low %v536_v63, %v544_v1  ;;  %v1797_v14 = vcombine.low %v537_v2, %v545_v3  ;;  %v1780_v15 = vcombine.high %v520_v8, %v528_v9 }
  0x61   : > { %v1744_v29 = vcombine.high %v486_v23, %v494_v24  ;;  %v1746_v30 = vcombine.high %v487_v25, %v495_v26  ;;  %v470_v31 = vld [vmem:[%s2190_s26 + $0x180] sm:$0xff]  ;;  %v471_v33 = vld [vmem:[%s2190_s26 + $0x188] sm:$0xff]  ;;  %v1743_v35 = vcombine.low %v486_v23, %v494_v24  ;;  %v1745_v36 = vcombine.low %v487_v25, %v495_v26  ;;  %v529_v11 = vld [vmem:[%s2190_s26 + $0x358] sm:$0xff] }
  0x62   : > { %1193 = vmatpush1.bf16.msra.mxu0 %v1775_v19  ;;  %1234 = vmatpush1.bf16.msra.mxu1 %v1777_v20  ;;  %v478_v32 = vld [vmem:[%s2190_s26 + $0x1c0] sm:$0xff]  ;;  %v479_v34 = vld [vmem:[%s2190_s26 + $0x1c8] sm:$0xff]  ;;  %v1782_v16 = vcombine.high %v521_v10, %v529_v11  ;;  %v504_v17 = vld [vmem:[%s2190_s26 + $0x290] sm:$0xff] }
  0x63   : > { %1194 = vmatprep.subr.bf16.mxu0 %v1760_v21  ;;  %1235 = vmatprep.subr.bf16.mxu1 %v1762_v22  ;;  %v1728_v37 = vcombine.high %v470_v31, %v478_v32  ;;  %v1730_v38 = vcombine.high %v471_v33, %v479_v34  ;;  %v454_v39 = vld [vmem:[%s2190_s26 + $0x100] sm:$0xff]  ;;  %v455_v41 = vld [vmem:[%s2190_s26 + $0x108] sm:$0xff]  ;;  %v1727_v43 = vcombine.low %v470_v31, %v478_v32  ;;  %v512_v18 = vld [vmem:[%s2190_s26 + $0x2d0] sm:$0xff] }
  0x64   : > { %v462_v40 = vld [vmem:[%s2190_s26 + $0x140] sm:$0xff]  ;;  %v463_v42 = vld [vmem:[%s2190_s26 + $0x148] sm:$0xff]  ;;  %v1729_v44 = vcombine.low %v471_v33, %v479_v34  ;;  %v505_v19 = vld [vmem:[%s2190_s26 + $0x298] sm:$0xff]  ;;  %v1779_v21 = vcombine.low %v520_v8, %v528_v9  ;;  %v1781_v22 = vcombine.low %v521_v10, %v529_v11  ;;  %v1764_v23 = vcombine.high %v504_v17, %v512_v18 }
  0x65   : > { %v1712_v45 = vcombine.high %v454_v39, %v462_v40  ;;  %v1714_v46 = vcombine.high %v455_v41, %v463_v42  ;;  %v438_v47 = vld [vmem:[%s2190_s26 + $0x80] sm:$0xff]  ;;  %v439_v49 = vld [vmem:[%s2190_s26 + $0x88] sm:$0xff]  ;;  %v1711_v51 = vcombine.low %v454_v39, %v462_v40  ;;  %v1713_v52 = vcombine.low %v455_v41, %v463_v42  ;;  %v513_v20 = vld [vmem:[%s2190_s26 + $0x2d8] sm:$0xff] }
  0x66   : > { %1195 = vmatpush1.bf16.msra.mxu0 %v1759_v27  ;;  %1236 = vmatpush1.bf16.msra.mxu1 %v1761_v28  ;;  %v446_v48 = vld [vmem:[%s2190_s26 + $0xc0] sm:$0xff]  ;;  %v447_v50 = vld [vmem:[%s2190_s26 + $0xc8] sm:$0xff]  ;;  %v1766_v24 = vcombine.high %v505_v19, %v513_v20  ;;  %v488_v25 = vld [vmem:[%s2190_s26 + $0x210] sm:$0xff] }
  0x67   : > { %1196 = vmatprep.subr.bf16.mxu0 %v1744_v29  ;;  %1237 = vmatprep.subr.bf16.mxu1 %v1746_v30  ;;  %v1696_v53 = vcombine.high %v438_v47, %v446_v48  ;;  %v1698_v54 = vcombine.high %v439_v49, %v447_v50  ;;  %v422_v55 = vld [vmem:[%s2190_s26] sm:$0xff]  ;;  %v423_v57 = vld [vmem:[%s2190_s26 + $0x8] sm:$0xff]  ;;  %v1695_v59 = vcombine.low %v438_v47, %v446_v48  ;;  %v496_v26 = vld [vmem:[%s2190_s26 + $0x250] sm:$0xff] }
  0x68   : > { %v430_v56 = vld [vmem:[%s2190_s26 + $0x40] sm:$0xff]  ;;  %v431_v58 = vld [vmem:[%s2190_s26 + $0x48] sm:$0xff]  ;;  %v1697_v60 = vcombine.low %v439_v49, %v447_v50  ;;  %v489_v27 = vld [vmem:[%s2190_s26 + $0x218] sm:$0xff]  ;;  %v1763_v29 = vcombine.low %v504_v17, %v512_v18  ;;  %v1765_v30 = vcombine.low %v505_v19, %v513_v20  ;;  %v1748_v31 = vcombine.high %v488_v25, %v496_v26 }
  0x69   : > { %v1680_v61 = vcombine.high %v422_v55, %v430_v56  ;;  %v1682_v62 = vcombine.high %v423_v57, %v431_v58  ;;  %v1679_v4 = vcombine.low %v422_v55, %v430_v56  ;;  %v1681_v5 = vcombine.low %v423_v57, %v431_v58  ;;  %v2235_v12 = vld [vmem:[%s2364_s0] sm:$0xf]  ;;  %v497_v28 = vld [vmem:[%s2190_s26 + $0x258] sm:$0xff]  ;;  %v472_v33 = vld [vmem:[%s2190_s26 + $0x190] sm:$0xff] }
  0x6a   : > { %1197 = vmatpush1.bf16.msra.mxu0 %v1743_v35  ;;  %1238 = vmatpush1.bf16.msra.mxu1 %v1745_v36  ;;  %v1750_v32 = vcombine.high %v489_v27, %v497_v28  ;;  %v480_v34 = vld [vmem:[%s2190_s26 + $0x1d0] sm:$0xff]  ;;  %v473_v35 = vld [vmem:[%s2190_s26 + $0x198] sm:$0xff]  ;;  %v538_v2 = vld [vmem:[%s2190_s26 + $0x3a0] sm:$0xff] }
  0x6b   : > { %1198 = vmatprep.subr.bf16.mxu0 %v1728_v37  ;;  %1239 = vmatprep.subr.bf16.mxu1 %v1730_v38  ;;  %v481_v36 = vld [vmem:[%s2190_s26 + $0x1d8] sm:$0xff]  ;;  %v1747_v37 = vcombine.low %v488_v25, %v496_v26  ;;  %v1749_v38 = vcombine.low %v489_v27, %v497_v28  ;;  %v1732_v39 = vcombine.high %v472_v33, %v480_v34  ;;  %v456_v41 = vld [vmem:[%s2190_s26 + $0x110] sm:$0xff]  ;;  %v546_v3 = vld [vmem:[%s2190_s26 + $0x3e0] sm:$0xff] }
  0x6c   : > { %v1734_v40 = vcombine.high %v473_v35, %v481_v36  ;;  %v464_v42 = vld [vmem:[%s2190_s26 + $0x150] sm:$0xff]  ;;  %v1800_v8 = vcombine.high %v538_v2, %v546_v3  ;;  %v522_v10 = vld [vmem:[%s2190_s26 + $0x320] sm:$0xff] }
  0x6d   : > { %v1716_v47 = vcombine.high %v456_v41, %v464_v42  ;;  %v440_v49 = vld [vmem:[%s2190_s26 + $0x90] sm:$0xff]  ;;  %v530_v11 = vld [vmem:[%s2190_s26 + $0x360] sm:$0xff] }
  0x6e   : > { %1199 = vmatpush1.bf16.msra.mxu0 %v1727_v43  ;;  %1240 = vmatpush1.bf16.msra.mxu1 %v1729_v44  ;;  %v457_v43 = vld [vmem:[%s2190_s26 + $0x118] sm:$0xff]  ;;  %v448_v50 = vld [vmem:[%s2190_s26 + $0xd0] sm:$0xff]  ;;  %v1784_v17 = vcombine.high %v522_v10, %v530_v11  ;;  %v506_v19 = vld [vmem:[%s2190_s26 + $0x2a0] sm:$0xff] }
  0x6f   : > { %1200 = vmatprep.subr.bf16.mxu0 %v1712_v45  ;;  %1241 = vmatprep.subr.bf16.mxu1 %v1714_v46  ;;  %v465_v44 = vld [vmem:[%s2190_s26 + $0x158] sm:$0xff]  ;;  %v1731_v45 = vcombine.low %v472_v33, %v480_v34  ;;  %v1733_v46 = vcombine.low %v473_v35, %v481_v36  ;;  %v1700_v55 = vcombine.high %v440_v49, %v448_v50  ;;  %v424_v57 = vld [vmem:[%s2190_s26 + $0x10] sm:$0xff]  ;;  %v514_v20 = vld [vmem:[%s2190_s26 + $0x2e0] sm:$0xff] }
  0x70   : > { %v1718_v48 = vcombine.high %v457_v43, %v465_v44  ;;  %v432_v58 = vld [vmem:[%s2190_s26 + $0x50] sm:$0xff]  ;;  %v1768_v25 = vcombine.high %v506_v19, %v514_v20  ;;  %v490_v27 = vld [vmem:[%s2190_s26 + $0x220] sm:$0xff] }
  0x71   : > { %v1684_v63 = vcombine.high %v424_v57, %v432_v58  ;;  %v498_v28 = vld [vmem:[%s2190_s26 + $0x260] sm:$0xff] }
  0x72   : > { %1201 = vmatpush1.bf16.msra.mxu0 %v1711_v51  ;;  %1242 = vmatpush1.bf16.msra.mxu1 %v1713_v52  ;;  %v441_v51 = vld [vmem:[%s2190_s26 + $0x98] sm:$0xff]  ;;  %v1752_v33 = vcombine.high %v490_v27, %v498_v28  ;;  %v474_v35 = vld [vmem:[%s2190_s26 + $0x1a0] sm:$0xff] }
  0x73   : > { %1202 = vmatprep.subr.bf16.mxu0 %v1696_v53  ;;  %1243 = vmatprep.subr.bf16.mxu1 %v1698_v54  ;;  %v449_v52 = vld [vmem:[%s2190_s26 + $0xd8] sm:$0xff]  ;;  %v1715_v53 = vcombine.low %v456_v41, %v464_v42  ;;  %v1717_v54 = vcombine.low %v457_v43, %v465_v44  ;;  %v482_v36 = vld [vmem:[%s2190_s26 + $0x1e0] sm:$0xff] }
  0x74   : > { %v1702_v56 = vcombine.high %v441_v51, %v449_v52  ;;  %v1736_v41 = vcombine.high %v474_v35, %v482_v36  ;;  %v458_v43 = vld [vmem:[%s2190_s26 + $0x120] sm:$0xff] }
  0x75   : > { %v466_v44 = vld [vmem:[%s2190_s26 + $0x160] sm:$0xff] }
  0x76   : > { %1203 = vmatpush1.bf16.msra.mxu0 %v1695_v59  ;;  %1244 = vmatpush1.bf16.msra.mxu1 %v1697_v60  ;;  %v425_v59 = vld [vmem:[%s2190_s26 + $0x18] sm:$0xff] }
  0x77   : > { %1204 = vmatprep.subr.bf16.mxu0 %v1680_v61  ;;  %1245 = vmatprep.subr.bf16.mxu1 %v1682_v62  ;;  %v433_v60 = vld [vmem:[%s2190_s26 + $0x58] sm:$0xff]  ;;  %v1699_v61 = vcombine.low %v440_v49, %v448_v50  ;;  %v1701_v62 = vcombine.low %v441_v51, %v449_v52  ;;  %v1720_v49 = vcombine.high %v458_v43, %v466_v44  ;;  %v442_v51 = vld [vmem:[%s2190_s26 + $0xa0] sm:$0xff] }
  0x78   : > { %v1686_v1 = vcombine.high %v425_v59, %v433_v60  ;;  %v450_v52 = vld [vmem:[%s2190_s26 + $0xe0] sm:$0xff] }
  0x7a   : > { %1205 = vmatpush1.bf16.msra.mxu0 %v1679_v4  ;;  %1246 = vmatpush1.bf16.msra.mxu1 %v1681_v5  ;;  %v539_v4 = vld [vmem:[%s2190_s26 + $0x3a8] sm:$0xff] }
  0x7b   : > { %1272 = vmatprep.subr.bf16.mxu0 %v1796_v6  ;;  %1313 = vmatprep.subr.bf16.mxu1 %v1798_v7  ;;  %v547_v5 = vld [vmem:[%s2190_s26 + $0x3e8] sm:$0xff]  ;;  %v1683_v6 = vcombine.low %v424_v57, %v432_v58  ;;  %v1685_v7 = vcombine.low %v425_v59, %v433_v60  ;;  %v1704_v57 = vcombine.high %v442_v51, %v450_v52  ;;  %v426_v59 = vld [vmem:[%s2190_s26 + $0x20] sm:$0xff] }
  0x7c   : > { %v1802_v9 = vcombine.high %v539_v4, %v547_v5  ;;  %v434_v60 = vld [vmem:[%s2190_s26 + $0x60] sm:$0xff] }
  0x7d   : > { %1223 = vmatmul.mubr.bf16.vlgmr.msra.gmra.mxu0 %v2235_v12  ;;  %1264 = vmatmul.mubr.bf16.vlgmr.msra.gmra.mxu1 %v2235_v12 }
  0x7e   : > { %1273 = vmatpush1.bf16.msra.mxu0 %v1795_v13  ;;  %1314 = vmatpush1.bf16.msra.mxu1 %v1797_v14  ;;  %v523_v13 = vld [vmem:[%s2190_s26 + $0x328] sm:$0xff] }
  0x7f   : > { %1274 = vmatprep.subr.bf16.mxu0 %v1780_v15  ;;  %1315 = vmatprep.subr.bf16.mxu1 %v1782_v16  ;;  %v531_v14 = vld [vmem:[%s2190_s26 + $0x368] sm:$0xff]  ;;  %v1799_v15 = vcombine.low %v538_v2, %v546_v3  ;;  %v1801_v16 = vcombine.low %v539_v4, %v547_v5  ;;  %v1688_v2 = vcombine.high %v426_v59, %v434_v60  ;;  %v540_v4 = vld [vmem:[%s2190_s26 + $0x3b0] sm:$0xff] }
  0x80   : > { %1304 = vmatprep.mubr.bf16.mxu0 %v1875_v0  ;;  %1345 = vmatprep.mubr.bf16.mxu1 %v1875_v0  ;;  %v1786_v18 = vcombine.high %v523_v13, %v531_v14  ;;  %v548_v5 = vld [vmem:[%s2190_s26 + $0x3f0] sm:$0xff] }
  0x82   : > { %1275 = vmatpush1.bf16.msra.mxu0 %v1779_v21  ;;  %1316 = vmatpush1.bf16.msra.mxu1 %v1781_v22  ;;  %v507_v21 = vld [vmem:[%s2190_s26 + $0x2a8] sm:$0xff] }
  0x83   : > { %1276 = vmatprep.subr.bf16.mxu0 %v1764_v23  ;;  %1317 = vmatprep.subr.bf16.mxu1 %v1766_v24  ;;  %v515_v22 = vld [vmem:[%s2190_s26 + $0x2e8] sm:$0xff]  ;;  %v1783_v23 = vcombine.low %v522_v10, %v530_v11  ;;  %v1785_v24 = vcombine.low %v523_v13, %v531_v14  ;;  %v1804_v10 = vcombine.high %v540_v4, %v548_v5  ;;  %v524_v13 = vld [vmem:[%s2190_s26 + $0x330] sm:$0xff] }
  0x84   : > { %v1770_v26 = vcombine.high %v507_v21, %v515_v22  ;;  %v532_v14 = vld [vmem:[%s2190_s26 + $0x370] sm:$0xff] }
  0x86   : > { %1277 = vmatpush1.bf16.msra.mxu0 %v1763_v29  ;;  %1318 = vmatpush1.bf16.msra.mxu1 %v1765_v30  ;;  %v491_v29 = vld [vmem:[%s2190_s26 + $0x228] sm:$0xff] }
  0x87   : > { %1278 = vmatprep.subr.bf16.mxu0 %v1748_v31  ;;  %1319 = vmatprep.subr.bf16.mxu1 %v1750_v32  ;;  %v499_v30 = vld [vmem:[%s2190_s26 + $0x268] sm:$0xff]  ;;  %v1767_v31 = vcombine.low %v506_v19, %v514_v20  ;;  %v1769_v32 = vcombine.low %v507_v21, %v515_v22  ;;  %v1788_v19 = vcombine.high %v524_v13, %v532_v14  ;;  %v508_v21 = vld [vmem:[%s2190_s26 + $0x2b0] sm:$0xff] }
  0x88   : > { %v1754_v34 = vcombine.high %v491_v29, %v499_v30  ;;  %v516_v22 = vld [vmem:[%s2190_s26 + $0x2f0] sm:$0xff] }
  0x8a   : > { %1279 = vmatpush1.bf16.msra.mxu0 %v1747_v37  ;;  %1320 = vmatpush1.bf16.msra.mxu1 %v1749_v38  ;;  %v475_v37 = vld [vmem:[%s2190_s26 + $0x1a8] sm:$0xff] }
  0x8b   : > { %1280 = vmatprep.subr.bf16.mxu0 %v1732_v39  ;;  %1321 = vmatprep.subr.bf16.mxu1 %v1734_v40  ;;  %v483_v38 = vld [vmem:[%s2190_s26 + $0x1e8] sm:$0xff]  ;;  %v1751_v39 = vcombine.low %v490_v27, %v498_v28  ;;  %v1753_v40 = vcombine.low %v491_v29, %v499_v30  ;;  %v1772_v27 = vcombine.high %v508_v21, %v516_v22  ;;  %v492_v29 = vld [vmem:[%s2190_s26 + $0x230] sm:$0xff] }
  0x8c   : > { %v1738_v42 = vcombine.high %v475_v37, %v483_v38  ;;  %v500_v30 = vld [vmem:[%s2190_s26 + $0x270] sm:$0xff] }
  0x8e   : > { %1281 = vmatpush1.bf16.msra.mxu0 %v1731_v45  ;;  %1322 = vmatpush1.bf16.msra.mxu1 %v1733_v46  ;;  %v459_v45 = vld [vmem:[%s2190_s26 + $0x128] sm:$0xff] }
  0x8f   : > { %1282 = vmatprep.subr.bf16.mxu0 %v1716_v47  ;;  %1323 = vmatprep.subr.bf16.mxu1 %v1718_v48  ;;  %v467_v46 = vld [vmem:[%s2190_s26 + $0x168] sm:$0xff]  ;;  %v1735_v47 = vcombine.low %v474_v35, %v482_v36  ;;  %v1737_v48 = vcombine.low %v475_v37, %v483_v38  ;;  %v1756_v35 = vcombine.high %v492_v29, %v500_v30  ;;  %v476_v37 = vld [vmem:[%s2190_s26 + $0x1b0] sm:$0xff] }
  0x90   : > { %v1722_v50 = vcombine.high %v459_v45, %v467_v46  ;;  %v484_v38 = vld [vmem:[%s2190_s26 + $0x1f0] sm:$0xff] }
  0x92   : > { %1283 = vmatpush1.bf16.msra.mxu0 %v1715_v53  ;;  %1324 = vmatpush1.bf16.msra.mxu1 %v1717_v54  ;;  %v443_v53 = vld [vmem:[%s2190_s26 + $0xa8] sm:$0xff] }
  0x93   : > { %1284 = vmatprep.subr.bf16.mxu0 %v1700_v55  ;;  %1325 = vmatprep.subr.bf16.mxu1 %v1702_v56  ;;  %v451_v54 = vld [vmem:[%s2190_s26 + $0xe8] sm:$0xff]  ;;  %v1719_v55 = vcombine.low %v458_v43, %v466_v44  ;;  %v1721_v56 = vcombine.low %v459_v45, %v467_v46  ;;  %v460_v44 = vld [vmem:[%s2190_s26 + $0x130] sm:$0xff]  ;;  %v461_v46 = vld [vmem:[%s2190_s26 + $0x138] sm:$0xff] }
  0x94   : > { %v1706_v58 = vcombine.high %v443_v53, %v451_v54  ;;  %v468_v45 = vld [vmem:[%s2190_s26 + $0x170] sm:$0xff] }
  0x96   : > { %1285 = vmatpush1.bf16.msra.mxu0 %v1699_v61  ;;  %1326 = vmatpush1.bf16.msra.mxu1 %v1701_v62  ;;  %v427_v61 = vld [vmem:[%s2190_s26 + $0x28] sm:$0xff] }
  0x97   : > { %1286 = vmatprep.subr.bf16.mxu0 %v1684_v63  ;;  %1327 = vmatprep.subr.bf16.mxu1 %v1686_v1  ;;  %v435_v62 = vld [vmem:[%s2190_s26 + $0x68] sm:$0xff]  ;;  %v1703_v63 = vcombine.low %v442_v51, %v450_v52  ;;  %v1705_v1 = vcombine.low %v443_v53, %v451_v54  ;;  %v444_v52 = vld [vmem:[%s2190_s26 + $0xb0] sm:$0xff]  ;;  %v445_v54 = vld [vmem:[%s2190_s26 + $0xb8] sm:$0xff] }
  0x98   : > { %v1690_v3 = vcombine.high %v427_v61, %v435_v62  ;;  %v452_v53 = vld [vmem:[%s2190_s26 + $0xf0] sm:$0xff] }
  0x9a   : > { %1287 = vmatpush1.bf16.msra.mxu0 %v1683_v6  ;;  %1328 = vmatpush1.bf16.msra.mxu1 %v1685_v7  ;;  %v541_v6 = vld [vmem:[%s2190_s26 + $0x3b8] sm:$0xff] }
  0x9b   : > { %1354 = vmatprep.subr.bf16.mxu0 %v1800_v8  ;;  %1395 = vmatprep.subr.bf16.mxu1 %v1802_v9  ;;  %v549_v7 = vld [vmem:[%s2190_s26 + $0x3f8] sm:$0xff]  ;;  %v1687_v8 = vcombine.low %v426_v59, %v434_v60  ;;  %v1689_v9 = vcombine.low %v427_v61, %v435_v62  ;;  %v428_v60 = vld [vmem:[%s2190_s26 + $0x30] sm:$0xff] }
  0x9c   : > { %v1806_v11 = vcombine.high %v541_v6, %v549_v7  ;;  %v436_v61 = vld [vmem:[%s2190_s26 + $0x70] sm:$0xff]  ;;  %v429_v62 = vld [vmem:[%s2190_s26 + $0x38] sm:$0xff] }
  0x9d   : > { %1305 = vmatmul.mubr.bf16.vlgmr.msra.gmra.mxu0 %v2235_v12  ;;  %1346 = vmatmul.mubr.bf16.vlgmr.msra.gmra.mxu1 %v2235_v12 }
  0x9e   : > { %1355 = vmatpush1.bf16.msra.mxu0 %v1799_v15  ;;  %1396 = vmatpush1.bf16.msra.mxu1 %v1801_v16  ;;  %v525_v15 = vld [vmem:[%s2190_s26 + $0x338] sm:$0xff] }
  0x9f   : > { %1356 = vmatprep.subr.bf16.mxu0 %v1784_v17  ;;  %1397 = vmatprep.subr.bf16.mxu1 %v1786_v18  ;;  %v533_v16 = vld [vmem:[%s2190_s26 + $0x378] sm:$0xff]  ;;  %v1803_v17 = vcombine.low %v540_v4, %v548_v5  ;;  %v1805_v18 = vcombine.low %v541_v6, %v549_v7  ;;  %v1691_v5 = vcombine.low %v428_v60, %v436_v61 }
  0xa0   : > { %1386 = vmatprep.mubr.bf16.mxu0 %v1875_v0  ;;  %1427 = vmatprep.mubr.bf16.mxu1 %v1875_v0  ;;  %v1790_v20 = vcombine.high %v525_v15, %v533_v16 }
  0xa2   : > { %1357 = vmatpush1.bf16.msra.mxu0 %v1783_v23  ;;  %1398 = vmatpush1.bf16.msra.mxu1 %v1785_v24  ;;  %v509_v23 = vld [vmem:[%s2190_s26 + $0x2b8] sm:$0xff] }
  0xa3   : > { %1358 = vmatprep.subr.bf16.mxu0 %v1768_v25  ;;  %1399 = vmatprep.subr.bf16.mxu1 %v1770_v26  ;;  %v517_v24 = vld [vmem:[%s2190_s26 + $0x2f8] sm:$0xff]  ;;  %v1787_v25 = vcombine.low %v524_v13, %v532_v14  ;;  %v1789_v26 = vcombine.low %v525_v15, %v533_v16 }
  0xa4   : > { %v1774_v28 = vcombine.high %v509_v23, %v517_v24 }
  0xa6   : > { %1359 = vmatpush1.bf16.msra.mxu0 %v1767_v31  ;;  %1400 = vmatpush1.bf16.msra.mxu1 %v1769_v32  ;;  %v493_v31 = vld [vmem:[%s2190_s26 + $0x238] sm:$0xff] }
  0xa7   : > { %1360 = vmatprep.subr.bf16.mxu0 %v1752_v33  ;;  %1401 = vmatprep.subr.bf16.mxu1 %v1754_v34  ;;  %v501_v32 = vld [vmem:[%s2190_s26 + $0x278] sm:$0xff]  ;;  %v1771_v33 = vcombine.low %v508_v21, %v516_v22  ;;  %v1773_v34 = vcombine.low %v509_v23, %v517_v24 }
  0xa8   : > { %v1758_v36 = vcombine.high %v493_v31, %v501_v32 }
  0xaa   : > { %1361 = vmatpush1.bf16.msra.mxu0 %v1751_v39  ;;  %1402 = vmatpush1.bf16.msra.mxu1 %v1753_v40  ;;  %v477_v39 = vld [vmem:[%s2190_s26 + $0x1b8] sm:$0xff] }
  0xab   : > { %1362 = vmatprep.subr.bf16.mxu0 %v1736_v41  ;;  %1403 = vmatprep.subr.bf16.mxu1 %v1738_v42  ;;  %v485_v40 = vld [vmem:[%s2190_s26 + $0x1f8] sm:$0xff]  ;;  %v1755_v41 = vcombine.low %v492_v29, %v500_v30  ;;  %v1740_v42 = vcombine.high %v476_v37, %v484_v38 }
  0xac   : > { %v1742_v43 = vcombine.high %v477_v39, %v485_v40 }
  0xae   : > { %1363 = vmatpush1.bf16.msra.mxu0 %v1735_v47  ;;  %1404 = vmatpush1.bf16.msra.mxu1 %v1737_v48  ;;  %v469_v47 = vld [vmem:[%s2190_s26 + $0x178] sm:$0xff]  ;;  %v1739_v48 = vcombine.low %v476_v37, %v484_v38 }
  0xaf   : > { %1364 = vmatprep.subr.bf16.mxu0 %v1720_v49  ;;  %1405 = vmatprep.subr.bf16.mxu1 %v1722_v50  ;;  %v1741_v49 = vcombine.low %v477_v39, %v485_v40  ;;  %v1724_v50 = vcombine.high %v460_v44, %v468_v45  ;;  %v1726_v51 = vcombine.high %v461_v46, %v469_v47 }
  0xb2   : > { %1365 = vmatpush1.bf16.msra.mxu0 %v1719_v55  ;;  %1406 = vmatpush1.bf16.msra.mxu1 %v1721_v56  ;;  %v453_v55 = vld [vmem:[%s2190_s26 + $0xf8] sm:$0xff]  ;;  %v1723_v56 = vcombine.low %v460_v44, %v468_v45 }
  0xb3   : > { %1366 = vmatprep.subr.bf16.mxu0 %v1704_v57  ;;  %1407 = vmatprep.subr.bf16.mxu1 %v1706_v58  ;;  %v1725_v57 = vcombine.low %v461_v46, %v469_v47  ;;  %v1708_v58 = vcombine.high %v444_v52, %v452_v53  ;;  %v1710_v59 = vcombine.high %v445_v54, %v453_v55 }
  0xb6   : > { %1367 = vmatpush1.bf16.msra.mxu0 %v1703_v63  ;;  %1408 = vmatpush1.bf16.msra.mxu1 %v1705_v1  ;;  %v437_v63 = vld [vmem:[%s2190_s26 + $0x78] sm:$0xff]  ;;  %v1707_v1 = vcombine.low %v444_v52, %v452_v53 }
  0xb7   : > { %1368 = vmatprep.subr.bf16.mxu0 %v1688_v2  ;;  %1409 = vmatprep.subr.bf16.mxu1 %v1690_v3  ;;  %v1709_v2 = vcombine.low %v445_v54, %v453_v55  ;;  %v1692_v3 = vcombine.high %v428_v60, %v436_v61  ;;  %v1694_v4 = vcombine.high %v429_v62, %v437_v63 }
  0xb8   : > { %v1693_v6 = vcombine.low %v429_v62, %v437_v63 }
  0xba   : > { %1369 = vmatpush1.bf16.msra.mxu0 %v1687_v8  ;;  %1410 = vmatpush1.bf16.msra.mxu1 %v1689_v9 }
  0xbb   : > { %1436 = vmatprep.subr.bf16.mxu0 %v1804_v10  ;;  %1477 = vmatprep.subr.bf16.mxu1 %v1806_v11 }
  0xbd   : > { %1387 = vmatmul.mubr.bf16.vlgmr.msra.gmra.mxu0 %v2235_v12  ;;  %1428 = vmatmul.mubr.bf16.vlgmr.msra.gmra.mxu1 %v2235_v12 }
  0xbe   : > { %1437 = vmatpush1.bf16.msra.mxu0 %v1803_v17  ;;  %1478 = vmatpush1.bf16.msra.mxu1 %v1805_v18 }
  0xbf   : > { %1438 = vmatprep.subr.bf16.mxu0 %v1788_v19  ;;  %1479 = vmatprep.subr.bf16.mxu1 %v1790_v20 }
  0xc0   : > { %1468 = vmatprep.mubr.bf16.mxu0 %v1875_v0  ;;  %1509 = vmatprep.mubr.bf16.mxu1 %v1875_v0  ;;  %v1757_v0 = vcombine.low %v493_v31, %v501_v32 }
  0xc2   : > { %1439 = vmatpush1.bf16.msra.mxu0 %v1787_v25  ;;  %1480 = vmatpush1.bf16.msra.mxu1 %v1789_v26 }
  0xc3   : > { %1440 = vmatprep.subr.bf16.mxu0 %v1772_v27  ;;  %1481 = vmatprep.subr.bf16.mxu1 %v1774_v28 }
  0xc6   : > { %1441 = vmatpush1.bf16.msra.mxu0 %v1771_v33  ;;  %1482 = vmatpush1.bf16.msra.mxu1 %v1773_v34 }
  0xc7   : > { %1442 = vmatprep.subr.bf16.mxu0 %v1756_v35  ;;  %1483 = vmatprep.subr.bf16.mxu1 %v1758_v36 }
  0xca   : > { %1443 = vmatpush1.bf16.msra.mxu0 %v1755_v41  ;;  %1484 = vmatpush1.bf16.msra.mxu1 %v1757_v0 }
  0xcb   : > { %1444 = vmatprep.subr.bf16.mxu0 %v1740_v42  ;;  %1485 = vmatprep.subr.bf16.mxu1 %v1742_v43 }
  0xce   : > { %1445 = vmatpush1.bf16.msra.mxu0 %v1739_v48  ;;  %1486 = vmatpush1.bf16.msra.mxu1 %v1741_v49 }
  0xcf   : > { %1446 = vmatprep.subr.bf16.mxu0 %v1724_v50  ;;  %1487 = vmatprep.subr.bf16.mxu1 %v1726_v51 }
  0xd2   : > { %1447 = vmatpush1.bf16.msra.mxu0 %v1723_v56  ;;  %1488 = vmatpush1.bf16.msra.mxu1 %v1725_v57 }
  0xd3   : > { %1448 = vmatprep.subr.bf16.mxu0 %v1708_v58  ;;  %1489 = vmatprep.subr.bf16.mxu1 %v1710_v59 }
  0xd6   : > { %1449 = vmatpush1.bf16.msra.mxu0 %v1707_v1  ;;  %1490 = vmatpush1.bf16.msra.mxu1 %v1709_v2 }
  0xd7   : > { %1450 = vmatprep.subr.bf16.mxu0 %v1692_v3  ;;  %1491 = vmatprep.subr.bf16.mxu1 %v1694_v4 }
  0xda   : > { %1451 = vmatpush1.bf16.msra.mxu0 %v1691_v5  ;;  %1492 = vmatpush1.bf16.msra.mxu1 %v1693_v6 }
  0xdd   : > { %1469 = vmatmul.mubr.bf16.vlgmr.msra.gmra.mxu0 %v2235_v12  ;;  %1510 = vmatmul.mubr.bf16.vlgmr.msra.gmra.mxu1 %v2235_v12 }
 0x13d   : > { %v1224_v7 = vpop.f32.mrf.mxu0  ;;  %v1265_v9 = vpop.f32.mrf.mxu1 }
 0x13e   : > { %v1518_v8 = vmax.f32 %v1224_v7, 0.0  ;;  %v1520_v10 = vmax.f32 %v1265_v9, 0.0 }
 0x13f   : > { %v1226_v11 = vpop.f32.mrf.mxu0  ;;  %v1267_v14 = vpop.f32.mrf.mxu1 }
 0x140   : > { %v1519_v13 = vmax.f32 %v1226_v11, 0.0  ;;  %v1521_v12 = vmax.f32 %v1267_v14, 0.0 }
 0x141   : > { %v1228_v15 = vpop.f32.mrf.mxu0  ;;  %v1269_v17 = vpop.f32.mrf.mxu1 }
 0x142   : > { %v1818_v16 = vpack.c.bf16 %v1519_v13, %v1518_v8  ;;  %v1819_v18 = vpack.c.bf16 %v1521_v12, %v1520_v10 }
 0x143   : > { %v1229_v19 = vpop.f32.mrf.mxu0  ;;  %v1270_v20 = vpop.f32.mrf.mxu1 }
 0x144   : > { %1598 = vst [vmem:[%s2344_s5] sm:$0xff] %v1818_v16  ;;  %1599 = vst [vmem:[%s2344_s5 + $0x8] sm:$0xff] %v1819_v18 }
 0x15d   : > { %v1306_v21 = vpop.f32.mrf.mxu0  ;;  %v1347_v23 = vpop.f32.mrf.mxu1 }
 0x15e   : > { %v1522_v22 = vmax.f32 %v1306_v21, 0.0  ;;  %v1524_v24 = vmax.f32 %v1347_v23, 0.0 }
 0x15f   : > { %v1308_v25 = vpop.f32.mrf.mxu0  ;;  %v1349_v27 = vpop.f32.mrf.mxu1 }
 0x160   : > { %v1523_v26 = vmax.f32 %v1308_v25, 0.0  ;;  %v1525_v28 = vmax.f32 %v1349_v27, 0.0 }
 0x161   : > { %v1310_v29 = vpop.f32.mrf.mxu0  ;;  %v1351_v31 = vpop.f32.mrf.mxu1 }
 0x162   : > { %v1820_v30 = vpack.c.bf16 %v1523_v26, %v1522_v22  ;;  %v1821_v32 = vpack.c.bf16 %v1525_v28, %v1524_v24 }
 0x163   : > { %v1311_v33 = vpop.f32.mrf.mxu0  ;;  %v1352_v34 = vpop.f32.mrf.mxu1 }
 0x164   : > { %1600 = vst [vmem:[%s2344_s5 + $0x10] sm:$0xff] %v1820_v30  ;;  %1601 = vst [vmem:[%s2344_s5 + $0x18] sm:$0xff] %v1821_v32 }
 0x17d   : > { %v1388_v35 = vpop.f32.mrf.mxu0  ;;  %v1429_v37 = vpop.f32.mrf.mxu1 }
 0x17e   : > { %v1526_v36 = vmax.f32 %v1388_v35, 0.0  ;;  %v1528_v38 = vmax.f32 %v1429_v37, 0.0 }
 0x17f   : > { %v1390_v39 = vpop.f32.mrf.mxu0  ;;  %v1431_v41 = vpop.f32.mrf.mxu1 }
 0x180   : > { %v1527_v40 = vmax.f32 %v1390_v39, 0.0  ;;  %v1529_v0 = vmax.f32 %v1431_v41, 0.0 }
 0x181   : > { %v1392_v42 = vpop.f32.mrf.mxu0  ;;  %v1433_v44 = vpop.f32.mrf.mxu1 }
 0x182   : > { %v1822_v43 = vpack.c.bf16 %v1527_v40, %v1526_v36  ;;  %v1823_v45 = vpack.c.bf16 %v1529_v0, %v1528_v38 }
 0x183   : > { %v1393_v46 = vpop.f32.mrf.mxu0  ;;  %v1434_v47 = vpop.f32.mrf.mxu1 }
 0x184   : > { %1602 = vst [vmem:[%s2344_s5 + $0x20] sm:$0xff] %v1822_v43  ;;  %1603 = vst [vmem:[%s2344_s5 + $0x28] sm:$0xff] %v1823_v45 }
 0x19d   : > { %v1470_v48 = vpop.f32.mrf.mxu0  ;;  %v1511_v49 = vpop.f32.mrf.mxu1 }
 0x19e   : > { %v1530_v51 = vmax.f32 %v1470_v48, 0.0  ;;  %v1532_v54 = vmax.f32 %v1511_v49, 0.0 }
 0x19f   : > { %v1472_v50 = vpop.f32.mrf.mxu0  ;;  %v1513_v53 = vpop.f32.mrf.mxu1 }
 0x1a0   : > { %v1531_v52 = vmax.f32 %v1472_v50, 0.0  ;;  %v1533_v55 = vmax.f32 %v1513_v53, 0.0 }
 0x1a1   : > { %v1474_v56 = vpop.f32.mrf.mxu0  ;;  %v1515_v58 = vpop.f32.mrf.mxu1 }
 0x1a2   : > { %v1824_v57 = vpack.c.bf16 %v1531_v52, %v1530_v51  ;;  %v1825_v59 = vpack.c.bf16 %v1533_v55, %v1532_v54 }
 0x1a3   : > { %v1475_v60 = vpop.f32.mrf.mxu0  ;;  %v1516_v61 = vpop.f32.mrf.mxu1 }
 0x1a4   : > { %1604 = vst [vmem:[%s2344_s5 + $0x30] sm:$0xff] %v1824_v57  ;;  %1605 = vst [vmem:[%s2344_s5 + $0x38] sm:$0xff] %v1825_v59 }
 0x1a5 PF: > { %p9_p9 = scmp.ge.s32.totalorder %s1908_s13, 4   ;;  %s2367_s9 = smov %s1869_s10 }
 0x1a6   : > { %s2368_s10 = smov %s1917_s16  ;;  %s2369_s11 = smov %s1908_s13 }
 0x1a7   :  { %11 = sbr.rel (!%p9_p9) target bundleno = 2 (0x2), region = 86 }

// kernel: dqn_forward.4
= control target key start
LH: loop header
LB: loop body
LE: loop exit
PB: predicated region body
PF: predicated region fallthrough
CT: control target
= control target key end

     0   :  { %s1676_s1 = inlined_call_operand.vmem [shape: bf16[256,896], index: 1, kind: input, shape index: {}]   ;;  %s1677_s0 = inlined_call_operand.vmem [shape: bf16[16,256], index: 0, kind: input, shape index: {}]   ;;  %s1678_s2 = inlined_call_operand.vmem [shape: bf16[16,896], index: 2, kind: output, shape index: {}]  }
   0x1   :  { %v1120_v0 = vld [vmem:[%s1676_s1 + $0x18c] ss:$28 sps:$4 sm:$0xff]   ;;  %v1123_v2 = vld [vmem:[%s1676_s1 + $0x154] ss:$28 sps:$4 sm:$0xff]   ;;  %v1126_v4 = vld [vmem:[%s1676_s1 + $0x11c] ss:$28 sps:$4 sm:$0xff]  }
   0x2   :  { %v1122_v1 = vld [vmem:[%s1676_s1 + $0x188] ss:$28 sps:$4 sm:$0xff]   ;;  %728 = vmatprep.subr.bf16.mxu0 %v1120_v0  ;;  %v1125_v3 = vld [vmem:[%s1676_s1 + $0x150] ss:$28 sps:$4 sm:$0xff]   ;;  %v1128_v5 = vld [vmem:[%s1676_s1 + $0x118] ss:$28 sps:$4 sm:$0xff]  }
   0x3   :  { %729 = vmatpush1.bf16.msra.mxu0 %v1122_v1  ;;  %v1129_v6 = vld [vmem:[%s1676_s1 + $0xe4] ss:$28 sps:$4 sm:$0xff]   ;;  %v1140_v7 = vld [vmem:[%s1676_s1 + $0x194] ss:$28 sps:$4 sm:$0xff]   ;;  %v1132_v10 = vld [vmem:[%s1676_s1 + $0xac] ss:$28 sps:$4 sm:$0xff]  }
   0x4   :  { %730 = vmatprep.subr.bf16.mxu0 %v1123_v2  ;;  %v1143_v8 = vld [vmem:[%s1676_s1 + $0x190] ss:$28 sps:$4 sm:$0xff]   ;;  %v1131_v9 = vld [vmem:[%s1676_s1 + $0xe0] ss:$28 sps:$4 sm:$0xff]   ;;  %771 = vmatprep.subr.bf16.mxu1 %v1140_v7  ;;  %v1149_v12 = vld [vmem:[%s1676_s1 + $0x158] ss:$28 sps:$4 sm:$0xff]  }
   0x5   :  { %772 = vmatpush1.bf16.msra.mxu1 %v1143_v8  ;;  %v1146_v11 = vld [vmem:[%s1676_s1 + $0x15c] ss:$28 sps:$4 sm:$0xff]   ;;  %v1134_v13 = vld [vmem:[%s1676_s1 + $0xa8] ss:$28 sps:$4 sm:$0xff]   ;;  %v1135_v14 = vld [vmem:[%s1676_s1 + $0x74] ss:$28 sps:$4 sm:$0xff]  }
   0x6   :  { %773 = vmatprep.subr.bf16.mxu1 %v1146_v11  ;;  %v1152_v15 = vld [vmem:[%s1676_s1 + $0x124] ss:$28 sps:$4 sm:$0xff]   ;;  %v1158_v17 = vld [vmem:[%s1676_s1 + $0xec] ss:$28 sps:$4 sm:$0xff]   ;;  %v1138_v19 = vld [vmem:[%s1676_s1 + $0x3c] ss:$28 sps:$4 sm:$0xff]  }
   0x7   :  { %731 = vmatpush1.bf16.msra.mxu0 %v1125_v3  ;;  %v1155_v16 = vld [vmem:[%s1676_s1 + $0x120] ss:$28 sps:$4 sm:$0xff]   ;;  %v1137_v18 = vld [vmem:[%s1676_s1 + $0x70] ss:$28 sps:$4 sm:$0xff]   ;;  %v1161_v20 = vld [vmem:[%s1676_s1 + $0xe8] ss:$28 sps:$4 sm:$0xff]  }
   0x8   :  { %732 = vmatprep.subr.bf16.mxu0 %v1126_v4  ;;  %v1164_v21 = vld [vmem:[%s1676_s1 + $0xb4] ss:$28 sps:$4 sm:$0xff]   ;;  %v1144_v23 = vld [vmem:[%s1676_s1 + $0x4] ss:$28 sps:$4 sm:$0xff]   ;;  %v1170_v25 = vld [vmem:[%s1676_s1 + $0x7c] ss:$28 sps:$4 sm:$0xff]  }
   0x9   :  { %774 = vmatpush1.bf16.msra.mxu1 %v1149_v12  ;;  %v1142_v22 = vld [vmem:[%s1676_s1 + $0x38] ss:$28 sps:$4 sm:$0xff]   ;;  %v1167_v24 = vld [vmem:[%s1676_s1 + $0xb0] ss:$28 sps:$4 sm:$0xff]   ;;  %v1148_v26 = vld [vmem:[%s1676_s1] ss:$28 sps:$4 sm:$0xff]  }
   0xa   :  { %775 = vmatprep.subr.bf16.mxu1 %v1152_v15  ;;  %v1150_v27 = vld [vmem:[%s1676_s1 + $0x34c] ss:$28 sps:$4 sm:$0xff]   ;;  %v1173_v28 = vld [vmem:[%s1676_s1 + $0x78] ss:$28 sps:$4 sm:$0xff]   ;;  %v1176_v29 = vld [vmem:[%s1676_s1 + $0x44] ss:$28 sps:$4 sm:$0xff]  }
   0xb   :  { %733 = vmatpush1.bf16.msra.mxu0 %v1128_v5  ;;  %v1154_v30 = vld [vmem:[%s1676_s1 + $0x348] ss:$28 sps:$4 sm:$0xff]   ;;  %v1156_v31 = vld [vmem:[%s1676_s1 + $0x314] ss:$28 sps:$4 sm:$0xff]   ;;  %v1179_v32 = vld [vmem:[%s1676_s1 + $0x40] ss:$28 sps:$4 sm:$0xff]  }
   0xc   :  { %734 = vmatprep.subr.bf16.mxu0 %v1129_v6  ;;  %v1182_v33 = vld [vmem:[%s1676_s1 + $0xc] ss:$28 sps:$4 sm:$0xff]   ;;  %v1162_v35 = vld [vmem:[%s1676_s1 + $0x2dc] ss:$28 sps:$4 sm:$0xff]   ;;  %v1188_v38 = vld [vmem:[%s1676_s1 + $0x354] ss:$28 sps:$4 sm:$0xff]  }
   0xd   :  { %776 = vmatpush1.bf16.msra.mxu1 %v1155_v16  ;;  %v1160_v34 = vld [vmem:[%s1676_s1 + $0x310] ss:$28 sps:$4 sm:$0xff]   ;;  %v1185_v37 = vld [vmem:[%s1676_s1 + $0x8] ss:$28 sps:$4 sm:$0xff]   ;;  %v1166_v39 = vld [vmem:[%s1676_s1 + $0x2d8] ss:$28 sps:$4 sm:$0xff]  }
   0xe   :  { %777 = vmatprep.subr.bf16.mxu1 %v1158_v17  ;;  %v1409_v36 = vld [vmem:[%s1677_s0 + $0x4] ss:$8 sps:$4 sm:$0xff]   ;;  %v1194_v42 = vld [vmem:[%s1676_s1 + $0x31c] ss:$28 sps:$4 sm:$0xff]   ;;  %v1180_v48 = vld [vmem:[%s1676_s1 + $0x234] ss:$28 sps:$4 sm:$0xff]  }
   0xf   :  { %735 = vmatpush1.bf16.msra.mxu0 %v1131_v9  ;;  %760 = vmatprep.mubr.bf16.mxu0 %v1409_v36  ;;  %v1168_v40 = vld [vmem:[%s1676_s1 + $0x2a4] ss:$28 sps:$4 sm:$0xff]   ;;  %v1191_v41 = vld [vmem:[%s1676_s1 + $0x350] ss:$28 sps:$4 sm:$0xff]   ;;  %v1197_v45 = vld [vmem:[%s1676_s1 + $0x318] ss:$28 sps:$4 sm:$0xff]  }
  0x10   :  { %736 = vmatprep.subr.bf16.mxu0 %v1132_v10  ;;  %803 = vmatprep.mubr.bf16.mxu1 %v1409_v36  ;;  %v1172_v43 = vld [vmem:[%s1676_s1 + $0x2a0] ss:$28 sps:$4 sm:$0xff]   ;;  %v1174_v44 = vld [vmem:[%s1676_s1 + $0x26c] ss:$28 sps:$4 sm:$0xff]   ;;  %v1213_v54 = vld [vmem:[%s1676_s1 + $0x274] ss:$28 sps:$4 sm:$0xff]  }
  0x11   :  { %778 = vmatpush1.bf16.msra.mxu1 %v1161_v20  ;;  %v1201_v46 = vld [vmem:[%s1676_s1 + $0x2e4] ss:$28 sps:$4 sm:$0xff]   ;;  %v1207_v50 = vld [vmem:[%s1676_s1 + $0x2ac] ss:$28 sps:$4 sm:$0xff]   ;;  %v1186_v52 = vld [vmem:[%s1676_s1 + $0x1fc] ss:$28 sps:$4 sm:$0xff]  }
  0x12   :  { %779 = vmatprep.subr.bf16.mxu1 %v1164_v21  ;;  %v1178_v47 = vld [vmem:[%s1676_s1 + $0x268] ss:$28 sps:$4 sm:$0xff]   ;;  %v1206_v49 = vld [vmem:[%s1676_s1 + $0x2e0] ss:$28 sps:$4 sm:$0xff]   ;;  %v1184_v51 = vld [vmem:[%s1676_s1 + $0x230] ss:$28 sps:$4 sm:$0xff]  }
  0x13   :  { %737 = vmatpush1.bf16.msra.mxu0 %v1134_v13  ;;  %v1212_v53 = vld [vmem:[%s1676_s1 + $0x2a8] ss:$28 sps:$4 sm:$0xff]   ;;  %v1190_v55 = vld [vmem:[%s1676_s1 + $0x1f8] ss:$28 sps:$4 sm:$0xff]   ;;  %v1218_v57 = vld [vmem:[%s1676_s1 + $0x270] ss:$28 sps:$4 sm:$0xff]  }
  0x14   :  { %738 = vmatprep.subr.bf16.mxu0 %v1135_v14  ;;  %v1192_v56 = vld [vmem:[%s1676_s1 + $0x1c4] ss:$28 sps:$4 sm:$0xff]   ;;  %v1219_v58 = vld [vmem:[%s1676_s1 + $0x23c] ss:$28 sps:$4 sm:$0xff]   ;;  %v1231_v3 = vld [vmem:[%s1676_s1 + $0x1cc] ss:$28 sps:$4 sm:$0xff]  }
  0x15   :  { %780 = vmatpush1.bf16.msra.mxu1 %v1167_v24  ;;  %v1196_v59 = vld [vmem:[%s1676_s1 + $0x1c0] ss:$28 sps:$4 sm:$0xff]   ;;  %v1224_v62 = vld [vmem:[%s1676_s1 + $0x238] ss:$28 sps:$4 sm:$0xff]   ;;  %v1217_v5 = vld [vmem:[%s1676_s1 + $0x12c] ss:$28 sps:$4 sm:$0xff]  }
  0x16   :  { %781 = vmatprep.subr.bf16.mxu1 %v1170_v25  ;;  %v1205_v60 = vld [vmem:[%s1676_s1 + $0x19c] ss:$28 sps:$4 sm:$0xff]   ;;  %v1488_v61 = vld [vmem:[%s1677_s0] ss:$8 sps:$4 sm:$0xff]   ;;  %v1223_v9 = vld [vmem:[%s1676_s1 + $0xf4] ss:$28 sps:$4 sm:$0xff]  }
  0x17   :  { %739 = vmatpush1.bf16.msra.mxu0 %v1137_v18  ;;  %v1225_v63 = vld [vmem:[%s1676_s1 + $0x204] ss:$28 sps:$4 sm:$0xff]   ;;  %v1203_v0 = vld [vmem:[%s1676_s1 + $0x198] ss:$28 sps:$4 sm:$0xff]   ;;  %v1221_v12 = vld [vmem:[%s1676_s1 + $0xf0] ss:$28 sps:$4 sm:$0xff]  }
  0x18   :  { %740 = vmatprep.subr.bf16.mxu0 %v1138_v19  ;;  %v1211_v1 = vld [vmem:[%s1676_s1 + $0x164] ss:$28 sps:$4 sm:$0xff]   ;;  %v1229_v13 = vld [vmem:[%s1676_s1 + $0xbc] ss:$28 sps:$4 sm:$0xff]   ;;  %v1250_v15 = vld [vmem:[%s1676_s1 + $0x2f0] ss:$28 sps:$4 sm:$0xff]  }
  0x19   :  { %782 = vmatpush1.bf16.msra.mxu1 %v1173_v28  ;;  %v1230_v2 = vld [vmem:[%s1676_s1 + $0x200] ss:$28 sps:$4 sm:$0xff]   ;;  %v1236_v6 = vld [vmem:[%s1676_s1 + $0x1c8] ss:$28 sps:$4 sm:$0xff]   ;;  %v1227_v16 = vld [vmem:[%s1676_s1 + $0xb8] ss:$28 sps:$4 sm:$0xff]  }
  0x1a   :  { %783 = vmatprep.subr.bf16.mxu1 %v1176_v29  ;;  %v1209_v4 = vld [vmem:[%s1676_s1 + $0x160] ss:$28 sps:$4 sm:$0xff]   ;;  %v1215_v8 = vld [vmem:[%s1676_s1 + $0x128] ss:$28 sps:$4 sm:$0xff]   ;;  %v1251_v18 = vld [vmem:[%s1676_s1 + $0x130] ss:$28 sps:$4 sm:$0xff]  }
  0x1b   :  { %741 = vmatpush1.bf16.msra.mxu0 %v1142_v22  ;;  %v1240_v7 = vld [vmem:[%s1676_s1 + $0x360] ss:$28 sps:$4 sm:$0xff]   ;;  %v1245_v11 = vld [vmem:[%s1676_s1 + $0x328] ss:$28 sps:$4 sm:$0xff]   ;;  %v1255_v19 = vld [vmem:[%s1676_s1 + $0x2b8] ss:$28 sps:$4 sm:$0xff]  }
  0x1c   :  { %742 = vmatprep.subr.bf16.mxu0 %v1144_v23  ;;  %v1241_v10 = vld [vmem:[%s1676_s1 + $0x1a0] ss:$28 sps:$4 sm:$0xff]   ;;  %v1246_v14 = vld [vmem:[%s1676_s1 + $0x168] ss:$28 sps:$4 sm:$0xff]   ;;  %v1256_v22 = vld [vmem:[%s1676_s1 + $0xf8] ss:$28 sps:$4 sm:$0xff]  }
  0x1d   :  { %784 = vmatpush1.bf16.msra.mxu1 %v1179_v32  ;;  %v1235_v17 = vld [vmem:[%s1676_s1 + $0x84] ss:$28 sps:$4 sm:$0xff]   ;;  %v1239_v21 = vld [vmem:[%s1676_s1 + $0x4c] ss:$28 sps:$4 sm:$0xff]   ;;  %v1244_v25 = vld [vmem:[%s1676_s1 + $0x14] ss:$28 sps:$4 sm:$0xff]  }
  0x1e   :  { %785 = vmatprep.subr.bf16.mxu1 %v1182_v33  ;;  %v1233_v20 = vld [vmem:[%s1676_s1 + $0x80] ss:$28 sps:$4 sm:$0xff]   ;;  %v1237_v24 = vld [vmem:[%s1676_s1 + $0x48] ss:$28 sps:$4 sm:$0xff]   ;;  %v1242_v28 = vld [vmem:[%s1676_s1 + $0x10] ss:$28 sps:$4 sm:$0xff]  }
  0x1f   :  { %743 = vmatpush1.bf16.msra.mxu0 %v1148_v26  ;;  %v1260_v23 = vld [vmem:[%s1676_s1 + $0x280] ss:$28 sps:$4 sm:$0xff]   ;;  %v1247_v32 = vld [vmem:[%s1676_s1 + $0x358] ss:$28 sps:$4 sm:$0xff]  }
  0x20   :  { %744 = vmatprep.subr.bf16.mxu0 %v1150_v27  ;;  %v1261_v26 = vld [vmem:[%s1676_s1 + $0xc0] ss:$28 sps:$4 sm:$0xff]   ;;  %v1265_v27 = vld [vmem:[%s1676_s1 + $0x248] ss:$28 sps:$4 sm:$0xff]  }
  0x21   :  { %786 = vmatpush1.bf16.msra.mxu1 %v1185_v37  ;;  %v1249_v29 = vld [vmem:[%s1676_s1 + $0x35c] ss:$28 sps:$4 sm:$0xff]   ;;  %v1254_v33 = vld [vmem:[%s1676_s1 + $0x324] ss:$28 sps:$4 sm:$0xff]   ;;  %v1259_v37 = vld [vmem:[%s1676_s1 + $0x2ec] ss:$28 sps:$4 sm:$0xff]  }
  0x22   :  { %787 = vmatprep.subr.bf16.mxu1 %v1188_v38  ;;  %v1276_v38 = vld [vmem:[%s1676_s1 + $0x18] ss:$28 sps:$4 sm:$0xff]  }
  0x23   :  { %745 = vmatpush2.bf16.msra.mxu0 %v1154_v30  ;;  %v1266_v30 = vld [vmem:[%s1676_s1 + $0x88] ss:$28 sps:$4 sm:$0xff]  }
  0x24   :  { %746 = vmatprep.subr.bf16.mxu0 %v1156_v31  ;;  %v1270_v31 = vld [vmem:[%s1676_s1 + $0x210] ss:$28 sps:$4 sm:$0xff]  }
  0x25   :  { %788 = vmatpush2.bf16.msra.mxu1 %v1191_v41  ;;  %v1262_v41 = vld [vmem:[%s1676_s1 + $0x2b0] ss:$28 sps:$4 sm:$0xff]  }
  0x26   :  { %789 = vmatprep.subr.bf16.mxu1 %v1194_v42  ;;  %v1269_v42 = vld [vmem:[%s1676_s1 + $0x27c] ss:$28 sps:$4 sm:$0xff]  }
  0x27   :  { %747 = vmatpush2.bf16.msra.mxu0 %v1160_v34  ;;  %v1271_v34 = vld [vmem:[%s1676_s1 + $0x50] ss:$28 sps:$4 sm:$0xff]  }
  0x28   :  { %748 = vmatprep.subr.bf16.mxu0 %v1162_v35  ;;  %v1275_v35 = vld [vmem:[%s1676_s1 + $0x1d8] ss:$28 sps:$4 sm:$0xff]  }
  0x29   :  { %790 = vmatpush2.bf16.msra.mxu1 %v1197_v45  ;;  %v1272_v45 = vld [vmem:[%s1676_s1 + $0x240] ss:$28 sps:$4 sm:$0xff]  }
  0x2a   :  { %791 = vmatprep.subr.bf16.mxu1 %v1201_v46  ;;  %v1279_v46 = vld [vmem:[%s1676_s1 + $0x20c] ss:$28 sps:$4 sm:$0xff]  }
  0x2b   :  { %749 = vmatpush2.bf16.msra.mxu0 %v1166_v39  ;;  %v1257_v39 = vld [vmem:[%s1676_s1 + $0x2e8] ss:$28 sps:$4 sm:$0xff]  }
  0x2c   :  { %750 = vmatprep.subr.bf16.mxu0 %v1168_v40  ;;  %v1264_v40 = vld [vmem:[%s1676_s1 + $0x2b4] ss:$28 sps:$4 sm:$0xff]  }
  0x2d   :  { %792 = vmatpush2.bf16.msra.mxu1 %v1206_v49  ;;  %v1280_v49 = vld [vmem:[%s1676_s1 + $0x1d0] ss:$28 sps:$4 sm:$0xff]  }
  0x2e   :  { %793 = vmatprep.subr.bf16.mxu1 %v1207_v50 }
  0x2f   :  { %751 = vmatpush2.bf16.msra.mxu0 %v1172_v43  ;;  %v1267_v43 = vld [vmem:[%s1676_s1 + $0x278] ss:$28 sps:$4 sm:$0xff]  }
  0x30   :  { %752 = vmatprep.subr.bf16.mxu0 %v1174_v44  ;;  %v1274_v44 = vld [vmem:[%s1676_s1 + $0x244] ss:$28 sps:$4 sm:$0xff]  }
  0x31   :  { %794 = vmatpush2.bf16.msra.mxu1 %v1212_v53 }
  0x32   :  { %795 = vmatprep.subr.bf16.mxu1 %v1213_v54 }
  0x33   :  { %753 = vmatpush2.bf16.msra.mxu0 %v1178_v47  ;;  %v1277_v47 = vld [vmem:[%s1676_s1 + $0x208] ss:$28 sps:$4 sm:$0xff]  }
  0x34   :  { %754 = vmatprep.subr.bf16.mxu0 %v1180_v48  ;;  %v1282_v48 = vld [vmem:[%s1676_s1 + $0x1d4] ss:$28 sps:$4 sm:$0xff]  }
  0x35   :  { %796 = vmatpush2.bf16.msra.mxu1 %v1218_v57 }
  0x36   :  { %797 = vmatprep.subr.bf16.mxu1 %v1219_v58 }
  0x37   :  { %755 = vmatpush2.bf16.msra.mxu0 %v1184_v51 }
  0x38   :  { %756 = vmatprep.subr.bf16.mxu0 %v1186_v52 }
  0x39   :  { %798 = vmatpush2.bf16.msra.mxu1 %v1224_v62 }
  0x3a   :  { %799 = vmatprep.subr.bf16.mxu1 %v1225_v63 }
  0x3b   :  { %757 = vmatpush2.bf16.msra.mxu0 %v1190_v55 }
  0x3c   :  { %758 = vmatprep.subr.bf16.mxu0 %v1192_v56 }
  0x3d   :  { %800 = vmatpush2.bf16.msra.mxu1 %v1230_v2 }
  0x3e   :  { %801 = vmatprep.subr.bf16.mxu1 %v1231_v3 }
  0x3f   :  { %759 = vmatpush2.bf16.msra.mxu0 %v1196_v59 }
  0x40   :  { %814 = vmatprep.subr.bf16.mxu0 %v1205_v60 }
  0x41   :  { %802 = vmatpush2.bf16.msra.mxu1 %v1236_v6 }
  0x42   :  { %761 = vmatmul.mubr.bf16.vlgmr.msra.gmra.mxu0 %v1488_v61  ;;  %1098 = vmatprep.subr.bf16.mxu1 %v1240_v7 }
  0x43   :  { %815 = vmatpush1.bf16.msra.mxu0 %v1203_v0  ;;  %846 = vmatprep.mubr.bf16.mxu0 %v1409_v36 }
  0x44   :  { %816 = vmatprep.subr.bf16.mxu0 %v1211_v1  ;;  %804 = vmatmul.mubr.bf16.vlgmr.msra.gmra.mxu1 %v1488_v61 }
  0x45   :  { %1099 = vmatpush3.bf16.msra.mxu1 %v1241_v10  ;;  %889 = vmatprep.mubr.bf16.mxu1 %v1409_v36  ;;  %v1252_v36 = vld [vmem:[%s1676_s1 + $0x320] ss:$28 sps:$4 sm:$0xff]  }
  0x46   :  { %1100 = vmatprep.subr.bf16.mxu1 %v1245_v11 }
  0x47   :  { %817 = vmatpush1.bf16.msra.mxu0 %v1209_v4 }
  0x48   :  { %818 = vmatprep.subr.bf16.mxu0 %v1217_v5 }
  0x49   :  { %1101 = vmatpush3.bf16.msra.mxu1 %v1246_v14 }
  0x4a   :  { %1102 = vmatprep.subr.bf16.mxu1 %v1250_v15 }
  0x4b   :  { %819 = vmatpush1.bf16.msra.mxu0 %v1215_v8 }
  0x4c   :  { %820 = vmatprep.subr.bf16.mxu0 %v1223_v9 }
  0x4d   :  { %1103 = vmatpush3.bf16.msra.mxu1 %v1251_v18 }
  0x4e   :  { %1104 = vmatprep.subr.bf16.mxu1 %v1255_v19 }
  0x4f   :  { %821 = vmatpush1.bf16.msra.mxu0 %v1221_v12 }
  0x50   :  { %822 = vmatprep.subr.bf16.mxu0 %v1229_v13 }
  0x51   :  { %1105 = vmatpush3.bf16.msra.mxu1 %v1256_v22 }
  0x52   :  { %1106 = vmatprep.subr.bf16.mxu1 %v1260_v23 }
  0x53   :  { %823 = vmatpush1.bf16.msra.mxu0 %v1227_v16 }
  0x54   :  { %824 = vmatprep.subr.bf16.mxu0 %v1235_v17 }
  0x55   :  { %1107 = vmatpush3.bf16.msra.mxu1 %v1261_v26 }
  0x56   :  { %1108 = vmatprep.subr.bf16.mxu1 %v1265_v27 }
  0x57   :  { %825 = vmatpush1.bf16.msra.mxu0 %v1233_v20 }
  0x58   :  { %826 = vmatprep.subr.bf16.mxu0 %v1239_v21 }
  0x59   :  { %1109 = vmatpush3.bf16.msra.mxu1 %v1266_v30 }
  0x5a   :  { %1110 = vmatprep.subr.bf16.mxu1 %v1270_v31 }
  0x5b   :  { %827 = vmatpush1.bf16.msra.mxu0 %v1237_v24 }
  0x5c   :  { %828 = vmatprep.subr.bf16.mxu0 %v1244_v25 }
  0x5d   :  { %1111 = vmatpush3.bf16.msra.mxu1 %v1271_v34 }
  0x5e   :  { %1112 = vmatprep.subr.bf16.mxu1 %v1275_v35 }
  0x5f   :  { %829 = vmatpush1.bf16.msra.mxu0 %v1242_v28 }
  0x60   :  { %830 = vmatprep.subr.bf16.mxu0 %v1249_v29 }
  0x61   :  { %1113 = vmatpush3.bf16.msra.mxu1 %v1276_v38 }
  0x63   :  { %831 = vmatpush2.bf16.msra.mxu0 %v1247_v32 }
  0x64   :  { %832 = vmatprep.subr.bf16.mxu0 %v1254_v33  ;;  %890 = vmatmul.mubr.bf16.vlgmr.msra.gmra.mxu1 %v1488_v61 }
  0x67   :  { %833 = vmatpush2.bf16.msra.mxu0 %v1252_v36 }
  0x68   :  { %834 = vmatprep.subr.bf16.mxu0 %v1259_v37 }
  0x6b   :  { %835 = vmatpush2.bf16.msra.mxu0 %v1257_v39 }
  0x6c   :  { %836 = vmatprep.subr.bf16.mxu0 %v1264_v40 }
  0x6f   :  { %837 = vmatpush2.bf16.msra.mxu0 %v1262_v41 }
  0x70   :  { %838 = vmatprep.subr.bf16.mxu0 %v1269_v42 }
  0x73   :  { %839 = vmatpush2.bf16.msra.mxu0 %v1267_v43 }
  0x74   :  { %840 = vmatprep.subr.bf16.mxu0 %v1274_v44 }
  0x77   :  { %841 = vmatpush2.bf16.msra.mxu0 %v1272_v45 }
  0x78   :  { %842 = vmatprep.subr.bf16.mxu0 %v1279_v46 }
  0x7b   :  { %843 = vmatpush2.bf16.msra.mxu0 %v1277_v47 }
  0x7c   :  { %844 = vmatprep.subr.bf16.mxu0 %v1282_v48 }
  0x7f   :  { %845 = vmatpush2.bf16.msra.mxu0 %v1280_v49 }
  0x82   :  { %847 = vmatmul.mubr.bf16.vlgmr.msra.gmra.mxu0 %v1488_v61 }
 0x102   :  { %v762_v50 = vpop.f32.mrf.mxu0 }
 0x103   :  { %v898_v51 = vmax.f32 %v762_v50, 0.0 }
 0x104   :  { %v764_v52 = vpop.f32.mrf.mxu0  ;;  %v805_v60 = vpop.f32.mrf.mxu1 }
 0x105   :  { %v899_v53 = vmax.f32 %v764_v52, 0.0  ;;  %v900_v62 = vmax.f32 %v805_v60, 0.0 }
 0x106   :  { %v766_v54 = vpop.f32.mrf.mxu0  ;;  %v807_v61 = vpop.f32.mrf.mxu1 }
 0x107   :  { %v1090_v55 = vpack.c.bf16 %v899_v53, %v898_v51  ;;  %v905_v57 = vmax.f32 %v766_v54, 0.0  ;;  %v901_v63 = vmax.f32 %v807_v61, 0.0 }
 0x108   :  { %v768_v56 = vpop.f32.mrf.mxu0  ;;  %v809_v0 = vpop.f32.mrf.mxu1 }
 0x109   :  { %956 = vst [vmem:[%s1678_s2] sm:$0xff] %v1090_v55  ;;  %v906_v58 = vmax.f32 %v768_v56, 0.0  ;;  %v1091_v1 = vpack.c.bf16 %v901_v63, %v900_v62  ;;  %v907_v2 = vmax.f32 %v809_v0, 0.0 }
 0x10a   :  { %v811_v3 = vpop.f32.mrf.mxu1 }
 0x10b   :  { %v1094_v59 = vpack.c.bf16 %v906_v58, %v905_v57  ;;  %957 = vst [vmem:[%s1678_s2 + $0x8] sm:$0xff] %v1091_v1  ;;  %v908_v4 = vmax.f32 %v811_v3, 0.0 }
 0x10d   :  { %960 = vst [vmem:[%s1678_s2 + $0x1c] sm:$0xff] %v1094_v59  ;;  %v1095_v5 = vpack.c.bf16 %v908_v4, %v907_v2 }
 0x10f   :  { %961 = vst [vmem:[%s1678_s2 + $0x24] sm:$0xff] %v1095_v5 }
 0x124   :  { %v1114_v6 = vpop.f32.mrf.mxu1 }
 0x126   :  { %v1115_v7 = vpop.f32.mrf.mxu1 }
 0x127   :  { %v1116_v8 = vadd.f32 %v1115_v7, %v1114_v6 }
 0x128   :  { %v1117_v9 = vpop.f32.mrf.mxu1 }
 0x129   :  { %v904_v10 = vmax.f32 %v1116_v8, 0.0 }
 0x12a   :  { %v1118_v11 = vpop.f32.mrf.mxu1 }
 0x12b   :  { %v1093_v12 = vpack.c.bf16 %v904_v10, %v904_v10  ;;  %v1119_v13 = vadd.f32 %v1118_v11, %v1117_v9 }
 0x12d   :  { %959 = vst [vmem:[%s1678_s2 + $0x18] sm:$0xf] %v1093_v12  ;;  %v911_v14 = vmax.f32 %v1119_v13, 0.0 }
 0x12f   :  { %v1097_v15 = vpack.c.bf16 %v911_v14, %v911_v14 }
 0x131   :  { %963 = vst [vmem:[%s1678_s2 + $0x34] sm:$0xf] %v1097_v15 }
 0x142   :  { %v848_v16 = vpop.f32.mrf.mxu0 }
 0x143   :  { %v902_v18 = vmax.f32 %v848_v16, 0.0 }
 0x144   :  { %v850_v17 = vpop.f32.mrf.mxu0 }
 0x145   :  { %v903_v19 = vmax.f32 %v850_v17, 0.0 }
 0x146   :  { %v852_v20 = vpop.f32.mrf.mxu0 }
 0x147   :  { %v1092_v21 = vpack.c.bf16 %v903_v19, %v902_v18  ;;  %v909_v23 = vmax.f32 %v852_v20, 0.0 }
 0x148   :  { %v854_v22 = vpop.f32.mrf.mxu0 }
 0x149   :  { %958 = vst [vmem:[%s1678_s2 + $0x10] sm:$0xff] %v1092_v21  ;;  %v910_v24 = vmax.f32 %v854_v22, 0.0 }
 0x14b   :  { %v1096_v25 = vpack.c.bf16 %v910_v24, %v909_v23 }
 0x14d   :  { %962 = vst [vmem:[%s1678_s2 + $0x2c] sm:$0xff] %v1096_v25 }

// kernel: dqn_forward.5
= control target key start
LH: loop header
LB: loop body
LE: loop exit
PB: predicated region body
PF: predicated region fallthrough
CT: control target
= control target key end

     0   :  { %s5335_s15 = smov 0   ;;  %s5337_s16 = smov 0   ;;  %s5987_s0 = inlined_call_operand.vmem [shape: bf16[16,7168], index: 0, kind: input, shape index: {}]   ;;  %s5988_s1 = inlined_call_operand.vmem [shape: bf16[7168,256], index: 1, kind: input, shape index: {}]   ;;  %s5989_s2 = inlined_call_operand.vmem [shape: bf16[256,128], index: 2, kind: input, shape index: {}]   ;;  %s5990_s3 = inlined_call_operand.vmem [shape: f32[1,128], index: 3, kind: input, shape index: {}]   ;;  %s5991_s4 = inlined_call_operand.vmem [shape: f32[16,128], index: 4, kind: output, shape index: {}]  }
   0x1   :  { %s5339_s17 = smov 0  }
   0x2 LB: > { %s5351_s18 = sadd.s32 4294967295, %s5307_s17   ;;  %s5354_s19 = sadd.s32 1, %s5307_s17   ;;  %s5307_s17 = sphi %s5339_s17, %s5994_s17   ;;  %s5303_s16 = sphi %s5337_s16, %s5993_s16   ;;  %s5299_s15 = sphi %s5335_s15, %s5992_s15  }
   0x3   : > { %s18_s20 = ssub.s32 %s5307_s17, %s5354_s19  ;;  %s21_s21 = sadd.s32 1, %s5303_s16 }
   0x4   : > { %p19_p0 = scmp.eq.s32.totalorder %s18_s20, 0  ;;  %p28_p1 = scmp.ne.s32.totalorder %s5303_s16, %s5299_s15 }
   0x5   : > { %p29_p2 = scmp.eq.s32.totalorder %s5307_s17, 0  ;;  %p4002_p4 = scmp.ge.s32.totalorder %s5307_s17, 2 }
   0x6   : > { %s5363_s22 = scalar_select %p19_p0, %s5303_s16, %s21_s21  }
   0x7   : > { %p30_p3 = por %p29_p2, %p28_p1  ;;  %149 = sbr.rel (%p4002_p4) target bundleno = 31 (0x1f), region = 24 }
   0xc   : > { %152 = sbr.rel (!%p30_p3) target bundleno = 31 (0x1f), region = 28  ;;  %s154_s23 = sand.u32 (%p30_p3), 1, %s5303_s16  }
   0xd   : > { %s4504_s24 = smul.u32 (%p30_p3), 112, %s5307_s17 }
   0xe   : > { %s4528_s25 = smul.u32 (%p30_p3), 224, %s154_s23 }
   0xf   : > { %s5371_s28 = scalar_lea.vmem (%p30_p3), %s5987_s0, %s4504_s24 }
  0x10   : > { %v172_v0 = vld [vmem:[%s5371_s28] sm:$0xff] (%p30_p3)  ;;  %v174_v1 = vld [vmem:[%s5371_s28 + $0x8] sm:$0xff] (%p30_p3)  ;;  %v176_v2 = vld [vmem:[%s5371_s28 + $0x10] sm:$0xff] (%p30_p3)  ;;  %s5376_s29 = scalar_lea.vmem (%p30_p3), [#allocation3], %s4528_s25 }
  0x11   : > { %173 = vst [vmem:[%s5376_s29] sm:$0xff] %v172_v0  ;;  %175 = vst [vmem:[%s5376_s29 + $0x8] sm:$0xff] %v174_v1  ;;  %v178_v3 = vld [vmem:[%s5371_s28 + $0x18] sm:$0xff]  ;;  %v180_v4 = vld [vmem:[%s5371_s28 + $0x20] sm:$0xff] }
  0x12   : > { %177 = vst [vmem:[%s5376_s29 + $0x10] sm:$0xff] %v176_v2  ;;  %v182_v5 = vld [vmem:[%s5371_s28 + $0x28] sm:$0xff]  ;;  %179 = vst [vmem:[%s5376_s29 + $0x18] sm:$0xff] %v178_v3  ;;  %v184_v6 = vld [vmem:[%s5371_s28 + $0x30] sm:$0xff] }
  0x13   : > { %181 = vst [vmem:[%s5376_s29 + $0x20] sm:$0xff] %v180_v4  ;;  %183 = vst [vmem:[%s5376_s29 + $0x28] sm:$0xff] %v182_v5  ;;  %v186_v7 = vld [vmem:[%s5371_s28 + $0x38] sm:$0xff]  ;;  %v188_v8 = vld [vmem:[%s5371_s28 + $0x40] sm:$0xff] }
  0x14   : > { %185 = vst [vmem:[%s5376_s29 + $0x30] sm:$0xff] %v184_v6  ;;  %187 = vst [vmem:[%s5376_s29 + $0x38] sm:$0xff] %v186_v7  ;;  %v190_v9 = vld [vmem:[%s5371_s28 + $0x48] sm:$0xff]  ;;  %v192_v10 = vld [vmem:[%s5371_s28 + $0x50] sm:$0xff] }
  0x15   : > { %189 = vst [vmem:[%s5376_s29 + $0x40] sm:$0xff] %v188_v8  ;;  %v194_v11 = vld [vmem:[%s5371_s28 + $0x58] sm:$0xff]  ;;  %191 = vst [vmem:[%s5376_s29 + $0x48] sm:$0xff] %v190_v9  ;;  %v196_v12 = vld [vmem:[%s5371_s28 + $0x60] sm:$0xff] }
  0x16   : > { %193 = vst [vmem:[%s5376_s29 + $0x50] sm:$0xff] %v192_v10  ;;  %195 = vst [vmem:[%s5376_s29 + $0x58] sm:$0xff] %v194_v11  ;;  %v198_v13 = vld [vmem:[%s5371_s28 + $0x68] sm:$0xff]  ;;  %v200_v14 = vld [vmem:[%s5371_s28 + $0xe0] sm:$0xff] }
  0x17   : > { %197 = vst [vmem:[%s5376_s29 + $0x60] sm:$0xff] %v196_v12  ;;  %199 = vst [vmem:[%s5376_s29 + $0x68] sm:$0xff] %v198_v13  ;;  %v202_v15 = vld [vmem:[%s5371_s28 + $0xe8] sm:$0xff]  ;;  %v204_v16 = vld [vmem:[%s5371_s28 + $0xf0] sm:$0xff] }
  0x18   : > { %201 = vst [vmem:[%s5376_s29 + $0x70] sm:$0xff] %v200_v14  ;;  %v206_v17 = vld [vmem:[%s5371_s28 + $0xf8] sm:$0xff]  ;;  %203 = vst [vmem:[%s5376_s29 + $0x78] sm:$0xff] %v202_v15  ;;  %v208_v18 = vld [vmem:[%s5371_s28 + $0x100] sm:$0xff] }
  0x19   : > { %205 = vst [vmem:[%s5376_s29 + $0x80] sm:$0xff] %v204_v16  ;;  %207 = vst [vmem:[%s5376_s29 + $0x88] sm:$0xff] %v206_v17  ;;  %v210_v19 = vld [vmem:[%s5371_s28 + $0x108] sm:$0xff]  ;;  %v212_v20 = vld [vmem:[%s5371_s28 + $0x110] sm:$0xff] }
  0x1a   : > { %209 = vst [vmem:[%s5376_s29 + $0x90] sm:$0xff] %v208_v18  ;;  %211 = vst [vmem:[%s5376_s29 + $0x98] sm:$0xff] %v210_v19  ;;  %v214_v21 = vld [vmem:[%s5371_s28 + $0x118] sm:$0xff]  ;;  %v216_v22 = vld [vmem:[%s5371_s28 + $0x120] sm:$0xff] }
  0x1b   : > { %213 = vst [vmem:[%s5376_s29 + $0xa0] sm:$0xff] %v212_v20  ;;  %v218_v23 = vld [vmem:[%s5371_s28 + $0x128] sm:$0xff]  ;;  %215 = vst [vmem:[%s5376_s29 + $0xa8] sm:$0xff] %v214_v21  ;;  %v220_v24 = vld [vmem:[%s5371_s28 + $0x130] sm:$0xff] }
  0x1c   : > { %217 = vst [vmem:[%s5376_s29 + $0xb0] sm:$0xff] %v216_v22  ;;  %219 = vst [vmem:[%s5376_s29 + $0xb8] sm:$0xff] %v218_v23  ;;  %v222_v25 = vld [vmem:[%s5371_s28 + $0x138] sm:$0xff]  ;;  %v224_v26 = vld [vmem:[%s5371_s28 + $0x140] sm:$0xff] }
  0x1d   : > { %221 = vst [vmem:[%s5376_s29 + $0xc0] sm:$0xff] %v220_v24  ;;  %223 = vst [vmem:[%s5376_s29 + $0xc8] sm:$0xff] %v222_v25  ;;  %v226_v27 = vld [vmem:[%s5371_s28 + $0x148] sm:$0xff] }
  0x1e   : > { %225 = vst [vmem:[%s5376_s29 + $0xd0] sm:$0xff] %v224_v26  ;;  %227 = vst [vmem:[%s5376_s29 + $0xd8] sm:$0xff] %v226_v27 }
  0x1f PF: > { %p4004_p5 = scmp.ge.s32.totalorder %s5307_s17, 1  ;;  %p242_p6 = scmp.lt.s32.totalorder %s5307_s17, 3 }
  0x21   : > { %p243_p7 = pnand %p4004_p5, %p242_p6 }
  0x22   : > { %s249_s30 = sand.u32 (!%p243_p7), 1, %s5299_s15   ;;  %s276_s5 = smul.u32 (!%p243_p7), 448, %s5351_s18 }
  0x23   : > { %246 = sbr.rel (%p243_p7) target bundleno = 940 (0x3ac), region = 55  ;;  %p4007_p9 = scmp.ne.s32.totalorder (!%p243_p7), %s5351_s18, 0 }
  0x24   : > { %s4529_s6 = smul.u32 (!%p243_p7), 224, %s249_s30  ;;  %p277_p8 = scmp.lt.s32.totalorder (!%p243_p7), %s276_s5, 895 }
  0x26   : > { %s5440_s11 = scalar_lea.vmem (!%p243_p7), [#allocation3], %s4529_s6 }
  0x28   : > { %s5996_s5 = smov (!%p277_p8, %s276_s5), 895  ;;  %287 = sbr.rel (%p4007_p9) target bundleno = 48 (0x30), region = 63 }
  0x29   : > { %s4505_s7 = sshll.u32 %s5996_s5, 3 }
  0x2a   : > { %s5438_s10 = scalar_lea.vmem %s5988_s1, %s4505_s7 }
  0x2d   : > { %v5309_v28 = vmov 0.0  }
  0x2e   : > { %288 = vst [vmem:[#allocation2 + $0x10] sm:$0xff] %v5309_v28  ;;  %289 = vst [vmem:[#allocation2] sm:$0xff] %v5309_v28 }
  0x2f   : > { %290 = vst [vmem:[#allocation2 + $0x18] sm:$0xff] %v5309_v28  ;;  %291 = vst [vmem:[#allocation2 + $0x8] sm:$0xff] %v5309_v28 }
  0x30 PF: > { %v4555_v29 = vld [vmem:[%s5438_s10 + $0x74] ss:$8 sps:$4 sm:$0xff]   ;;  %v4559_v31 = vld [vmem:[%s5438_s10 + $0x70] ss:$8 sps:$4 sm:$0xff]   ;;  %v4561_v33 = vld [vmem:[%s5438_s10 + $0x64] ss:$8 sps:$4 sm:$0xff]  }
  0x31   : > { %v4557_v30 = vld [vmem:[%s5438_s10 + $0x174] ss:$8 sps:$4 sm:$0xff]   ;;  %3152 = vmatprep.subr.bf16.mxu0 %v4555_v29  ;;  %v4560_v32 = vld [vmem:[%s5438_s10 + $0x170] ss:$8 sps:$4 sm:$0xff]   ;;  %v4563_v34 = vld [vmem:[%s5438_s10 + $0x164] ss:$8 sps:$4 sm:$0xff]  }
  0x32   : > { %3195 = vmatprep.subr.bf16.mxu1 %v4557_v30  ;;  %3153 = vmatpush1.bf16.msra.mxu0 %v4559_v31  ;;  %v4565_v35 = vld [vmem:[%s5438_s10 + $0x60] ss:$8 sps:$4 sm:$0xff]   ;;  %v4567_v37 = vld [vmem:[%s5438_s10 + $0x54] ss:$8 sps:$4 sm:$0xff]   ;;  %v4571_v39 = vld [vmem:[%s5438_s10 + $0x50] ss:$8 sps:$4 sm:$0xff]  }
  0x33   : > { %3196 = vmatpush1.bf16.msra.mxu1 %v4560_v32  ;;  %3154 = vmatprep.subr.bf16.mxu0 %v4561_v33  ;;  %v4566_v36 = vld [vmem:[%s5438_s10 + $0x160] ss:$8 sps:$4 sm:$0xff]   ;;  %v4569_v38 = vld [vmem:[%s5438_s10 + $0x154] ss:$8 sps:$4 sm:$0xff]   ;;  %v4572_v40 = vld [vmem:[%s5438_s10 + $0x150] ss:$8 sps:$4 sm:$0xff]  }
  0x34   : > { %3197 = vmatprep.subr.bf16.mxu1 %v4563_v34  ;;  %v4573_v41 = vld [vmem:[%s5438_s10 + $0x44] ss:$8 sps:$4 sm:$0xff]   ;;  %v4577_v43 = vld [vmem:[%s5438_s10 + $0x40] ss:$8 sps:$4 sm:$0xff]   ;;  %v4579_v45 = vld [vmem:[%s5438_s10 + $0x34] ss:$8 sps:$4 sm:$0xff]  }
  0x35   : > { %v4575_v42 = vld [vmem:[%s5438_s10 + $0x144] ss:$8 sps:$4 sm:$0xff]   ;;  %v4578_v44 = vld [vmem:[%s5438_s10 + $0x140] ss:$8 sps:$4 sm:$0xff]   ;;  %v4581_v46 = vld [vmem:[%s5438_s10 + $0x134] ss:$8 sps:$4 sm:$0xff]  }
  0x36   : > { %3155 = vmatpush1.bf16.msra.mxu0 %v4565_v35  ;;  %v4583_v47 = vld [vmem:[%s5438_s10 + $0x30] ss:$8 sps:$4 sm:$0xff]   ;;  %v4585_v49 = vld [vmem:[%s5438_s10 + $0x24] ss:$8 sps:$4 sm:$0xff]   ;;  %v4589_v51 = vld [vmem:[%s5438_s10 + $0x20] ss:$8 sps:$4 sm:$0xff]  }
  0x37   : > { %3198 = vmatpush1.bf16.msra.mxu1 %v4566_v36  ;;  %3156 = vmatprep.subr.bf16.mxu0 %v4567_v37  ;;  %v4584_v48 = vld [vmem:[%s5438_s10 + $0x130] ss:$8 sps:$4 sm:$0xff]   ;;  %v4587_v50 = vld [vmem:[%s5438_s10 + $0x124] ss:$8 sps:$4 sm:$0xff]   ;;  %v4590_v52 = vld [vmem:[%s5438_s10 + $0x120] ss:$8 sps:$4 sm:$0xff]  }
  0x38   : > { %3199 = vmatprep.subr.bf16.mxu1 %v4569_v38  ;;  %v4591_v53 = vld [vmem:[%s5438_s10 + $0x14] ss:$8 sps:$4 sm:$0xff]   ;;  %v4595_v55 = vld [vmem:[%s5438_s10 + $0x10] ss:$8 sps:$4 sm:$0xff]   ;;  %v4597_v57 = vld [vmem:[%s5438_s10 + $0x4] ss:$8 sps:$4 sm:$0xff]  }
  0x39   : > { %v4593_v54 = vld [vmem:[%s5438_s10 + $0x114] ss:$8 sps:$4 sm:$0xff]   ;;  %v4596_v56 = vld [vmem:[%s5438_s10 + $0x110] ss:$8 sps:$4 sm:$0xff]   ;;  %v4599_v58 = vld [vmem:[%s5438_s10 + $0x104] ss:$8 sps:$4 sm:$0xff]  }
  0x3a   : > { %3157 = vmatpush1.bf16.msra.mxu0 %v4571_v39  ;;  %v4601_v59 = vld [vmem:[%s5438_s10] ss:$8 sps:$4 sm:$0xff]   ;;  %v4603_v61 = vld [vmem:[%s5438_s10 + $0xf4] ss:$8 sps:$4 sm:$0xff]   ;;  %v4607_v63 = vld [vmem:[%s5438_s10 + $0xf0] ss:$8 sps:$4 sm:$0xff]  }
  0x3b   : > { %3200 = vmatpush1.bf16.msra.mxu1 %v4572_v40  ;;  %3158 = vmatprep.subr.bf16.mxu0 %v4573_v41  ;;  %v4602_v60 = vld [vmem:[%s5438_s10 + $0x100] ss:$8 sps:$4 sm:$0xff]   ;;  %v4605_v62 = vld [vmem:[%s5438_s10 + $0x1f4] ss:$8 sps:$4 sm:$0xff]   ;;  %v4608_v0 = vld [vmem:[%s5438_s10 + $0x1f0] ss:$8 sps:$4 sm:$0xff]  }
  0x3c   : > { %3201 = vmatprep.subr.bf16.mxu1 %v4575_v42  ;;  %v4609_v1 = vld [vmem:[%s5438_s10 + $0xe4] ss:$8 sps:$4 sm:$0xff]   ;;  %v4613_v3 = vld [vmem:[%s5438_s10 + $0xe0] ss:$8 sps:$4 sm:$0xff]   ;;  %v4615_v5 = vld [vmem:[%s5438_s10 + $0xd4] ss:$8 sps:$4 sm:$0xff]  }
  0x3d   : > { %v4611_v2 = vld [vmem:[%s5438_s10 + $0x1e4] ss:$8 sps:$4 sm:$0xff]   ;;  %v4614_v4 = vld [vmem:[%s5438_s10 + $0x1e0] ss:$8 sps:$4 sm:$0xff]   ;;  %v4617_v6 = vld [vmem:[%s5438_s10 + $0x1d4] ss:$8 sps:$4 sm:$0xff]  }
  0x3e   : > { %3159 = vmatpush1.bf16.msra.mxu0 %v4577_v43  ;;  %v4619_v7 = vld [vmem:[%s5438_s10 + $0xd0] ss:$8 sps:$4 sm:$0xff]   ;;  %v4621_v9 = vld [vmem:[%s5438_s10 + $0xc4] ss:$8 sps:$4 sm:$0xff]   ;;  %v4625_v11 = vld [vmem:[%s5438_s10 + $0xc0] ss:$8 sps:$4 sm:$0xff]  }
  0x3f   : > { %3202 = vmatpush1.bf16.msra.mxu1 %v4578_v44  ;;  %3160 = vmatprep.subr.bf16.mxu0 %v4579_v45  ;;  %v4620_v8 = vld [vmem:[%s5438_s10 + $0x1d0] ss:$8 sps:$4 sm:$0xff]   ;;  %v4623_v10 = vld [vmem:[%s5438_s10 + $0x1c4] ss:$8 sps:$4 sm:$0xff]   ;;  %v4626_v12 = vld [vmem:[%s5438_s10 + $0x1c0] ss:$8 sps:$4 sm:$0xff]  }
  0x40   : > { %3203 = vmatprep.subr.bf16.mxu1 %v4581_v46  ;;  %v4627_v13 = vld [vmem:[%s5438_s10 + $0xb4] ss:$8 sps:$4 sm:$0xff]   ;;  %v4631_v17 = vld [vmem:[%s5438_s10 + $0xb0] ss:$8 sps:$4 sm:$0xff]   ;;  %v4633_v19 = vld [vmem:[%s5438_s10 + $0xa4] ss:$8 sps:$4 sm:$0xff]  }
  0x41   : > { %v4653_v14 = vld [vmem:[%s5440_s11 + $0x4] ss:$112 sps:$4 sm:$0xff]   ;;  %v4656_v16 = vld [vmem:[%s5440_s11 + $0xc] ss:$112 sps:$4 sm:$0xff]   ;;  %v4632_v18 = vld [vmem:[%s5438_s10 + $0x1b0] ss:$8 sps:$4 sm:$0xff]  }
  0x42   : > { %3161 = vmatpush1.bf16.msra.mxu0 %v4583_v47  ;;  %v4629_v15 = vld [vmem:[%s5438_s10 + $0x1b4] ss:$8 sps:$4 sm:$0xff]   ;;  %3184 = vmatprep.mubr.bf16.mxu0 %v4653_v14  ;;  %v4635_v20 = vld [vmem:[%s5438_s10 + $0x1a4] ss:$8 sps:$4 sm:$0xff]   ;;  %v4637_v21 = vld [vmem:[%s5438_s10 + $0xa0] ss:$8 sps:$4 sm:$0xff]  }
  0x43   : > { %3204 = vmatpush1.bf16.msra.mxu1 %v4584_v48  ;;  %3162 = vmatprep.subr.bf16.mxu0 %v4585_v49  ;;  %v4638_v22 = vld [vmem:[%s5438_s10 + $0x1a0] ss:$8 sps:$4 sm:$0xff]   ;;  %v4639_v23 = vld [vmem:[%s5438_s10 + $0x94] ss:$8 sps:$4 sm:$0xff]   ;;  %v4643_v25 = vld [vmem:[%s5438_s10 + $0x90] ss:$8 sps:$4 sm:$0xff]  }
  0x44   : > { %3205 = vmatprep.subr.bf16.mxu1 %v4587_v50  ;;  %3227 = vmatprep.mubr.bf16.mxu1 %v4656_v16  ;;  %v4641_v24 = vld [vmem:[%s5438_s10 + $0x194] ss:$8 sps:$4 sm:$0xff]   ;;  %v4644_v26 = vld [vmem:[%s5438_s10 + $0x190] ss:$8 sps:$4 sm:$0xff]   ;;  %v4645_v27 = vld [vmem:[%s5438_s10 + $0x84] ss:$8 sps:$4 sm:$0xff]  }
  0x45   : > { %v4647_v28 = vld [vmem:[%s5438_s10 + $0x184] ss:$8 sps:$4 sm:$0xff]   ;;  %v4649_v29 = vld [vmem:[%s5438_s10 + $0x80] ss:$8 sps:$4 sm:$0xff]   ;;  %v4659_v31 = vld [vmem:[%s5438_s10 + $0x274] ss:$8 sps:$4 sm:$0xff]  }
  0x46   : > { %3163 = vmatpush1.bf16.msra.mxu0 %v4589_v51  ;;  %v4650_v30 = vld [vmem:[%s5438_s10 + $0x180] ss:$8 sps:$4 sm:$0xff]   ;;  %v4662_v32 = vld [vmem:[%s5438_s10 + $0x374] ss:$8 sps:$4 sm:$0xff]   ;;  %v4657_v35 = vld [vmem:[%s5438_s10 + $0x270] ss:$8 sps:$4 sm:$0xff]  }
  0x47   : > { %3206 = vmatpush1.bf16.msra.mxu1 %v4590_v52  ;;  %3164 = vmatprep.subr.bf16.mxu0 %v4591_v53  ;;  %v4651_v33 = vld [vmem:[%s5440_s11] ss:$112 sps:$4 sm:$0xff]   ;;  %v4654_v34 = vld [vmem:[%s5440_s11 + $0x8] ss:$112 sps:$4 sm:$0xff]   ;;  %v4665_v37 = vld [vmem:[%s5438_s10 + $0x264] ss:$8 sps:$4 sm:$0xff]  }
  0x48   : > { %3207 = vmatprep.subr.bf16.mxu1 %v4593_v54  ;;  %v4660_v36 = vld [vmem:[%s5438_s10 + $0x370] ss:$8 sps:$4 sm:$0xff]   ;;  %v4668_v38 = vld [vmem:[%s5438_s10 + $0x364] ss:$8 sps:$4 sm:$0xff]   ;;  %v4663_v39 = vld [vmem:[%s5438_s10 + $0x260] ss:$8 sps:$4 sm:$0xff]  }
  0x49   : > { %v4666_v40 = vld [vmem:[%s5438_s10 + $0x360] ss:$8 sps:$4 sm:$0xff]   ;;  %v4671_v41 = vld [vmem:[%s5438_s10 + $0x254] ss:$8 sps:$4 sm:$0xff]   ;;  %v4669_v43 = vld [vmem:[%s5438_s10 + $0x250] ss:$8 sps:$4 sm:$0xff]  }
  0x4a   : > { %3165 = vmatpush1.bf16.msra.mxu0 %v4595_v55  ;;  %v4674_v42 = vld [vmem:[%s5438_s10 + $0x354] ss:$8 sps:$4 sm:$0xff]   ;;  %v4672_v44 = vld [vmem:[%s5438_s10 + $0x350] ss:$8 sps:$4 sm:$0xff]   ;;  %v4677_v45 = vld [vmem:[%s5438_s10 + $0x244] ss:$8 sps:$4 sm:$0xff]  }
  0x4b   : > { %3208 = vmatpush1.bf16.msra.mxu1 %v4596_v56  ;;  %3166 = vmatprep.subr.bf16.mxu0 %v4597_v57  ;;  %v4680_v46 = vld [vmem:[%s5438_s10 + $0x344] ss:$8 sps:$4 sm:$0xff]   ;;  %v4675_v47 = vld [vmem:[%s5438_s10 + $0x240] ss:$8 sps:$4 sm:$0xff]   ;;  %v4683_v49 = vld [vmem:[%s5438_s10 + $0x234] ss:$8 sps:$4 sm:$0xff]  }
  0x4c   : > { %3209 = vmatprep.subr.bf16.mxu1 %v4599_v58  ;;  %v4678_v48 = vld [vmem:[%s5438_s10 + $0x340] ss:$8 sps:$4 sm:$0xff]   ;;  %v4686_v50 = vld [vmem:[%s5438_s10 + $0x334] ss:$8 sps:$4 sm:$0xff]   ;;  %v4681_v51 = vld [vmem:[%s5438_s10 + $0x230] ss:$8 sps:$4 sm:$0xff]  }
  0x4d   : > { %v4684_v52 = vld [vmem:[%s5438_s10 + $0x330] ss:$8 sps:$4 sm:$0xff]   ;;  %v4689_v53 = vld [vmem:[%s5438_s10 + $0x224] ss:$8 sps:$4 sm:$0xff]   ;;  %v4687_v55 = vld [vmem:[%s5438_s10 + $0x220] ss:$8 sps:$4 sm:$0xff]  }
  0x4e   : > { %3167 = vmatpush1.bf16.msra.mxu0 %v4601_v59  ;;  %v4692_v54 = vld [vmem:[%s5438_s10 + $0x324] ss:$8 sps:$4 sm:$0xff]   ;;  %v4690_v56 = vld [vmem:[%s5438_s10 + $0x320] ss:$8 sps:$4 sm:$0xff]   ;;  %v4695_v57 = vld [vmem:[%s5438_s10 + $0x214] ss:$8 sps:$4 sm:$0xff]  }
  0x4f   : > { %3210 = vmatpush1.bf16.msra.mxu1 %v4602_v60  ;;  %3168 = vmatprep.subr.bf16.mxu0 %v4603_v61  ;;  %v4698_v58 = vld [vmem:[%s5438_s10 + $0x314] ss:$8 sps:$4 sm:$0xff]   ;;  %v4693_v59 = vld [vmem:[%s5438_s10 + $0x210] ss:$8 sps:$4 sm:$0xff]   ;;  %v4701_v61 = vld [vmem:[%s5438_s10 + $0x204] ss:$8 sps:$4 sm:$0xff]  }
  0x50   : > { %3211 = vmatprep.subr.bf16.mxu1 %v4605_v62  ;;  %v4696_v60 = vld [vmem:[%s5438_s10 + $0x310] ss:$8 sps:$4 sm:$0xff]   ;;  %v4704_v62 = vld [vmem:[%s5438_s10 + $0x304] ss:$8 sps:$4 sm:$0xff]   ;;  %p4484_p10 = scmp.ne.s32.totalorder %s5351_s18, 1 }
  0x51   : > { %v4720_v14 = vld [vmem:[%s5438_s10 + $0x3d0] ss:$8 sps:$4 sm:$0xff]   ;;  %v4728_v16 = vld [vmem:[%s5438_s10 + $0x3c4] ss:$8 sps:$4 sm:$0xff]  }
  0x52   : > { %3169 = vmatpush2.bf16.msra.mxu0 %v4607_v63  ;;  %v4755_v63 = vld [vmem:[%s5440_s11 + $0x14] ss:$112 sps:$4 sm:$0xff]  }
  0x53   : > { %3212 = vmatpush2.bf16.msra.mxu1 %v4608_v0  ;;  %3170 = vmatprep.subr.bf16.mxu0 %v4609_v1  ;;  %v4758_v0 = vld [vmem:[%s5440_s11 + $0x1c] ss:$112 sps:$4 sm:$0xff]   ;;  %v4699_v1 = vld [vmem:[%s5438_s10 + $0x200] ss:$8 sps:$4 sm:$0xff]  }
  0x54   : > { %3213 = vmatprep.subr.bf16.mxu1 %v4611_v2  ;;  %v4702_v2 = vld [vmem:[%s5438_s10 + $0x300] ss:$8 sps:$4 sm:$0xff]  }
  0x56   : > { %3171 = vmatpush2.bf16.msra.mxu0 %v4613_v3  ;;  %v4707_v3 = vld [vmem:[%s5438_s10 + $0x2f4] ss:$8 sps:$4 sm:$0xff]  }
  0x57   : > { %3214 = vmatpush2.bf16.msra.mxu1 %v4614_v4  ;;  %3172 = vmatprep.subr.bf16.mxu0 %v4615_v5  ;;  %v4710_v4 = vld [vmem:[%s5438_s10 + $0x3f4] ss:$8 sps:$4 sm:$0xff]   ;;  %v4705_v5 = vld [vmem:[%s5438_s10 + $0x2f0] ss:$8 sps:$4 sm:$0xff]  }
  0x58   : > { %3215 = vmatprep.subr.bf16.mxu1 %v4617_v6  ;;  %v4708_v6 = vld [vmem:[%s5438_s10 + $0x3f0] ss:$8 sps:$4 sm:$0xff]  }
  0x5a   : > { %3173 = vmatpush2.bf16.msra.mxu0 %v4619_v7  ;;  %v4713_v7 = vld [vmem:[%s5438_s10 + $0x2e4] ss:$8 sps:$4 sm:$0xff]  }
  0x5b   : > { %3216 = vmatpush2.bf16.msra.mxu1 %v4620_v8  ;;  %3174 = vmatprep.subr.bf16.mxu0 %v4621_v9  ;;  %v4716_v8 = vld [vmem:[%s5438_s10 + $0x3e4] ss:$8 sps:$4 sm:$0xff]   ;;  %v4711_v9 = vld [vmem:[%s5438_s10 + $0x2e0] ss:$8 sps:$4 sm:$0xff]  }
  0x5c   : > { %3217 = vmatprep.subr.bf16.mxu1 %v4623_v10  ;;  %v4714_v10 = vld [vmem:[%s5438_s10 + $0x3e0] ss:$8 sps:$4 sm:$0xff]  }
  0x5e   : > { %3175 = vmatpush2.bf16.msra.mxu0 %v4625_v11  ;;  %v4719_v11 = vld [vmem:[%s5438_s10 + $0x2d4] ss:$8 sps:$4 sm:$0xff]  }
  0x5f   : > { %3218 = vmatpush2.bf16.msra.mxu1 %v4626_v12  ;;  %3176 = vmatprep.subr.bf16.mxu0 %v4627_v13  ;;  %v4722_v12 = vld [vmem:[%s5438_s10 + $0x3d4] ss:$8 sps:$4 sm:$0xff]   ;;  %v4717_v13 = vld [vmem:[%s5438_s10 + $0x2d0] ss:$8 sps:$4 sm:$0xff]  }
  0x60   : > { %3219 = vmatprep.subr.bf16.mxu1 %v4629_v15  ;;  %v4725_v15 = vld [vmem:[%s5438_s10 + $0x2c4] ss:$8 sps:$4 sm:$0xff]  }
  0x62   : > { %3177 = vmatpush2.bf16.msra.mxu0 %v4631_v17  ;;  %v4723_v17 = vld [vmem:[%s5438_s10 + $0x2c0] ss:$8 sps:$4 sm:$0xff]  }
  0x63   : > { %3220 = vmatpush2.bf16.msra.mxu1 %v4632_v18  ;;  %3178 = vmatprep.subr.bf16.mxu0 %v4633_v19  ;;  %v4726_v18 = vld [vmem:[%s5438_s10 + $0x3c0] ss:$8 sps:$4 sm:$0xff]   ;;  %v4731_v19 = vld [vmem:[%s5438_s10 + $0x2b4] ss:$8 sps:$4 sm:$0xff]  }
  0x64   : > { %3221 = vmatprep.subr.bf16.mxu1 %v4635_v20  ;;  %v4734_v20 = vld [vmem:[%s5438_s10 + $0x3b4] ss:$8 sps:$4 sm:$0xff]  }
  0x66   : > { %3179 = vmatpush2.bf16.msra.mxu0 %v4637_v21  ;;  %v4729_v21 = vld [vmem:[%s5438_s10 + $0x2b0] ss:$8 sps:$4 sm:$0xff]  }
  0x67   : > { %3222 = vmatpush2.bf16.msra.mxu1 %v4638_v22  ;;  %3180 = vmatprep.subr.bf16.mxu0 %v4639_v23  ;;  %v4732_v22 = vld [vmem:[%s5438_s10 + $0x3b0] ss:$8 sps:$4 sm:$0xff]   ;;  %v4737_v23 = vld [vmem:[%s5438_s10 + $0x2a4] ss:$8 sps:$4 sm:$0xff]  }
  0x68   : > { %3223 = vmatprep.subr.bf16.mxu1 %v4641_v24  ;;  %v4740_v24 = vld [vmem:[%s5438_s10 + $0x3a4] ss:$8 sps:$4 sm:$0xff]  }
  0x6a   : > { %3181 = vmatpush2.bf16.msra.mxu0 %v4643_v25  ;;  %v4735_v25 = vld [vmem:[%s5438_s10 + $0x2a0] ss:$8 sps:$4 sm:$0xff]  }
  0x6b   : > { %3224 = vmatpush2.bf16.msra.mxu1 %v4644_v26  ;;  %3182 = vmatprep.subr.bf16.mxu0 %v4645_v27  ;;  %v4738_v26 = vld [vmem:[%s5438_s10 + $0x3a0] ss:$8 sps:$4 sm:$0xff]   ;;  %v4743_v27 = vld [vmem:[%s5438_s10 + $0x294] ss:$8 sps:$4 sm:$0xff]  }
  0x6c   : > { %3225 = vmatprep.subr.bf16.mxu1 %v4647_v28  ;;  %v4746_v28 = vld [vmem:[%s5438_s10 + $0x394] ss:$8 sps:$4 sm:$0xff]  }
  0x6e   : > { %3183 = vmatpush2.bf16.msra.mxu0 %v4649_v29  ;;  %v4741_v29 = vld [vmem:[%s5438_s10 + $0x290] ss:$8 sps:$4 sm:$0xff]  }
  0x6f   : > { %3226 = vmatpush2.bf16.msra.mxu1 %v4650_v30  ;;  %3238 = vmatprep.subr.bf16.mxu0 %v4659_v31  ;;  %v4744_v30 = vld [vmem:[%s5438_s10 + $0x390] ss:$8 sps:$4 sm:$0xff]   ;;  %v4749_v31 = vld [vmem:[%s5438_s10 + $0x284] ss:$8 sps:$4 sm:$0xff]  }
  0x70   : > { %3281 = vmatprep.subr.bf16.mxu1 %v4662_v32  ;;  %v4752_v32 = vld [vmem:[%s5438_s10 + $0x384] ss:$8 sps:$4 sm:$0xff]  }
  0x71   : > { %3185 = vmatmul.mubr.bf16.vlgmr.msra.gmra.mxu0 %v4651_v33  ;;  %v4747_v33 = vld [vmem:[%s5438_s10 + $0x280] ss:$8 sps:$4 sm:$0xff]  }
  0x72   : > { %3228 = vmatmul.mubr.bf16.vlgmr.msra.gmra.mxu1 %v4654_v34  ;;  %3239 = vmatpush1.bf16.msra.mxu0 %v4657_v35  ;;  %v4750_v34 = vld [vmem:[%s5438_s10 + $0x380] ss:$8 sps:$4 sm:$0xff]   ;;  %v4761_v35 = vld [vmem:[%s5438_s10 + $0x474] ss:$8 sps:$4 sm:$0xff]  }
  0x73   : > { %3282 = vmatpush1.bf16.msra.mxu1 %v4660_v36  ;;  %3240 = vmatprep.subr.bf16.mxu0 %v4665_v37  ;;  %v4764_v36 = vld [vmem:[%s5438_s10 + $0x574] ss:$8 sps:$4 sm:$0xff]   ;;  %v4753_v37 = vld [vmem:[%s5440_s11 + $0x10] ss:$112 sps:$4 sm:$0xff]  }
  0x74   : > { %3283 = vmatprep.subr.bf16.mxu1 %v4668_v38  ;;  %3270 = vmatprep.mubr.bf16.mxu0 %v4755_v63  ;;  %v4756_v38 = vld [vmem:[%s5440_s11 + $0x18] ss:$112 sps:$4 sm:$0xff]   ;;  %v4797_v63 = vld [vmem:[%s5438_s10 + $0x414] ss:$8 sps:$4 sm:$0xff]  }
  0x75   : > { %3313 = vmatprep.mubr.bf16.mxu1 %v4758_v0  ;;  %v4800_v0 = vld [vmem:[%s5438_s10 + $0x514] ss:$8 sps:$4 sm:$0xff]  }
  0x76   : > { %3241 = vmatpush1.bf16.msra.mxu0 %v4663_v39  ;;  %v4759_v39 = vld [vmem:[%s5438_s10 + $0x470] ss:$8 sps:$4 sm:$0xff]  }
  0x77   : > { %3284 = vmatpush1.bf16.msra.mxu1 %v4666_v40  ;;  %3242 = vmatprep.subr.bf16.mxu0 %v4671_v41  ;;  %v4762_v40 = vld [vmem:[%s5438_s10 + $0x570] ss:$8 sps:$4 sm:$0xff]   ;;  %v4767_v41 = vld [vmem:[%s5438_s10 + $0x464] ss:$8 sps:$4 sm:$0xff]  }
  0x78   : > { %3285 = vmatprep.subr.bf16.mxu1 %v4674_v42  ;;  %v4770_v42 = vld [vmem:[%s5438_s10 + $0x564] ss:$8 sps:$4 sm:$0xff]  }
  0x7a   : > { %3243 = vmatpush1.bf16.msra.mxu0 %v4669_v43  ;;  %v4765_v43 = vld [vmem:[%s5438_s10 + $0x460] ss:$8 sps:$4 sm:$0xff]  }
  0x7b   : > { %3286 = vmatpush1.bf16.msra.mxu1 %v4672_v44  ;;  %3244 = vmatprep.subr.bf16.mxu0 %v4677_v45  ;;  %v4768_v44 = vld [vmem:[%s5438_s10 + $0x560] ss:$8 sps:$4 sm:$0xff]   ;;  %v4773_v45 = vld [vmem:[%s5438_s10 + $0x454] ss:$8 sps:$4 sm:$0xff]  }
  0x7c   : > { %3287 = vmatprep.subr.bf16.mxu1 %v4680_v46  ;;  %v4776_v46 = vld [vmem:[%s5438_s10 + $0x554] ss:$8 sps:$4 sm:$0xff]  }
  0x7e   : > { %3245 = vmatpush1.bf16.msra.mxu0 %v4675_v47  ;;  %v4771_v47 = vld [vmem:[%s5438_s10 + $0x450] ss:$8 sps:$4 sm:$0xff]  }
  0x7f   : > { %3288 = vmatpush1.bf16.msra.mxu1 %v4678_v48  ;;  %3246 = vmatprep.subr.bf16.mxu0 %v4683_v49  ;;  %v4857_v48 = vld [vmem:[%s5440_s11 + $0x24] ss:$112 sps:$4 sm:$0xff]   ;;  %v4774_v49 = vld [vmem:[%s5438_s10 + $0x550] ss:$8 sps:$4 sm:$0xff]  }
  0x80   : > { %3289 = vmatprep.subr.bf16.mxu1 %v4686_v50  ;;  %v4860_v50 = vld [vmem:[%s5440_s11 + $0x2c] ss:$112 sps:$4 sm:$0xff]  }
  0x82   : > { %3247 = vmatpush1.bf16.msra.mxu0 %v4681_v51  ;;  %v4779_v51 = vld [vmem:[%s5438_s10 + $0x444] ss:$8 sps:$4 sm:$0xff]  }
  0x83   : > { %3290 = vmatpush1.bf16.msra.mxu1 %v4684_v52  ;;  %3248 = vmatprep.subr.bf16.mxu0 %v4689_v53  ;;  %v4782_v52 = vld [vmem:[%s5438_s10 + $0x544] ss:$8 sps:$4 sm:$0xff]   ;;  %v4777_v53 = vld [vmem:[%s5438_s10 + $0x440] ss:$8 sps:$4 sm:$0xff]  }
  0x84   : > { %3291 = vmatprep.subr.bf16.mxu1 %v4692_v54  ;;  %v4780_v54 = vld [vmem:[%s5438_s10 + $0x540] ss:$8 sps:$4 sm:$0xff]  }
  0x86   : > { %3249 = vmatpush1.bf16.msra.mxu0 %v4687_v55  ;;  %v4785_v55 = vld [vmem:[%s5438_s10 + $0x434] ss:$8 sps:$4 sm:$0xff]  }
  0x87   : > { %3292 = vmatpush1.bf16.msra.mxu1 %v4690_v56  ;;  %3250 = vmatprep.subr.bf16.mxu0 %v4695_v57  ;;  %v4788_v56 = vld [vmem:[%s5438_s10 + $0x534] ss:$8 sps:$4 sm:$0xff]   ;;  %v4783_v57 = vld [vmem:[%s5438_s10 + $0x430] ss:$8 sps:$4 sm:$0xff]  }
  0x88   : > { %3293 = vmatprep.subr.bf16.mxu1 %v4698_v58  ;;  %v4786_v58 = vld [vmem:[%s5438_s10 + $0x530] ss:$8 sps:$4 sm:$0xff]  }
  0x8a   : > { %3251 = vmatpush1.bf16.msra.mxu0 %v4693_v59  ;;  %v4791_v59 = vld [vmem:[%s5438_s10 + $0x424] ss:$8 sps:$4 sm:$0xff]  }
  0x8b   : > { %3294 = vmatpush1.bf16.msra.mxu1 %v4696_v60  ;;  %3252 = vmatprep.subr.bf16.mxu0 %v4701_v61  ;;  %v4794_v60 = vld [vmem:[%s5438_s10 + $0x524] ss:$8 sps:$4 sm:$0xff]   ;;  %v4789_v61 = vld [vmem:[%s5438_s10 + $0x420] ss:$8 sps:$4 sm:$0xff]  }
  0x8c   : > { %3295 = vmatprep.subr.bf16.mxu1 %v4704_v62  ;;  %v4792_v62 = vld [vmem:[%s5438_s10 + $0x520] ss:$8 sps:$4 sm:$0xff]  }
  0x8e   : > { %3253 = vmatpush1.bf16.msra.mxu0 %v4699_v1  ;;  %v4795_v1 = vld [vmem:[%s5438_s10 + $0x410] ss:$8 sps:$4 sm:$0xff]  }
  0x8f   : > { %3296 = vmatpush1.bf16.msra.mxu1 %v4702_v2  ;;  %3254 = vmatprep.subr.bf16.mxu0 %v4707_v3  ;;  %v4798_v2 = vld [vmem:[%s5438_s10 + $0x510] ss:$8 sps:$4 sm:$0xff]   ;;  %v4803_v3 = vld [vmem:[%s5438_s10 + $0x404] ss:$8 sps:$4 sm:$0xff]  }
  0x90   : > { %3297 = vmatprep.subr.bf16.mxu1 %v4710_v4  ;;  %v4806_v4 = vld [vmem:[%s5438_s10 + $0x504] ss:$8 sps:$4 sm:$0xff]  }
  0x92   : > { %3255 = vmatpush2.bf16.msra.mxu0 %v4705_v5  ;;  %v4801_v5 = vld [vmem:[%s5438_s10 + $0x400] ss:$8 sps:$4 sm:$0xff]  }
  0x93   : > { %3298 = vmatpush2.bf16.msra.mxu1 %v4708_v6  ;;  %3256 = vmatprep.subr.bf16.mxu0 %v4713_v7  ;;  %v4804_v6 = vld [vmem:[%s5438_s10 + $0x500] ss:$8 sps:$4 sm:$0xff]   ;;  %v4809_v7 = vld [vmem:[%s5438_s10 + $0x4f4] ss:$8 sps:$4 sm:$0xff]  }
  0x94   : > { %3299 = vmatprep.subr.bf16.mxu1 %v4716_v8  ;;  %v4812_v8 = vld [vmem:[%s5438_s10 + $0x5f4] ss:$8 sps:$4 sm:$0xff]  }
  0x96   : > { %3257 = vmatpush2.bf16.msra.mxu0 %v4711_v9  ;;  %v4807_v9 = vld [vmem:[%s5438_s10 + $0x4f0] ss:$8 sps:$4 sm:$0xff]  }
  0x97   : > { %3300 = vmatpush2.bf16.msra.mxu1 %v4714_v10  ;;  %3258 = vmatprep.subr.bf16.mxu0 %v4719_v11  ;;  %v4810_v10 = vld [vmem:[%s5438_s10 + $0x5f0] ss:$8 sps:$4 sm:$0xff]   ;;  %v4815_v11 = vld [vmem:[%s5438_s10 + $0x4e4] ss:$8 sps:$4 sm:$0xff]  }
  0x98   : > { %3301 = vmatprep.subr.bf16.mxu1 %v4722_v12  ;;  %v4818_v12 = vld [vmem:[%s5438_s10 + $0x5e4] ss:$8 sps:$4 sm:$0xff]  }
  0x9a   : > { %3259 = vmatpush2.bf16.msra.mxu0 %v4717_v13  ;;  %v4813_v13 = vld [vmem:[%s5438_s10 + $0x4e0] ss:$8 sps:$4 sm:$0xff]  }
  0x9b   : > { %3302 = vmatpush2.bf16.msra.mxu1 %v4720_v14  ;;  %3260 = vmatprep.subr.bf16.mxu0 %v4725_v15  ;;  %v4816_v14 = vld [vmem:[%s5438_s10 + $0x5e0] ss:$8 sps:$4 sm:$0xff]   ;;  %v4821_v15 = vld [vmem:[%s5438_s10 + $0x4d4] ss:$8 sps:$4 sm:$0xff]  }
  0x9c   : > { %3303 = vmatprep.subr.bf16.mxu1 %v4728_v16  ;;  %v4824_v16 = vld [vmem:[%s5438_s10 + $0x5d4] ss:$8 sps:$4 sm:$0xff]  }
  0x9e   : > { %3261 = vmatpush2.bf16.msra.mxu0 %v4723_v17  ;;  %v4819_v17 = vld [vmem:[%s5438_s10 + $0x4d0] ss:$8 sps:$4 sm:$0xff]  }
  0x9f   : > { %3304 = vmatpush2.bf16.msra.mxu1 %v4726_v18  ;;  %3262 = vmatprep.subr.bf16.mxu0 %v4731_v19  ;;  %v4822_v18 = vld [vmem:[%s5438_s10 + $0x5d0] ss:$8 sps:$4 sm:$0xff]   ;;  %v4827_v19 = vld [vmem:[%s5438_s10 + $0x4c4] ss:$8 sps:$4 sm:$0xff]  }
  0xa0   : > { %3305 = vmatprep.subr.bf16.mxu1 %v4734_v20  ;;  %v4830_v20 = vld [vmem:[%s5438_s10 + $0x5c4] ss:$8 sps:$4 sm:$0xff]  }
  0xa2   : > { %3263 = vmatpush2.bf16.msra.mxu0 %v4729_v21  ;;  %v4825_v21 = vld [vmem:[%s5438_s10 + $0x4c0] ss:$8 sps:$4 sm:$0xff]  }
  0xa3   : > { %3306 = vmatpush2.bf16.msra.mxu1 %v4732_v22  ;;  %3264 = vmatprep.subr.bf16.mxu0 %v4737_v23  ;;  %v4828_v22 = vld [vmem:[%s5438_s10 + $0x5c0] ss:$8 sps:$4 sm:$0xff]   ;;  %v4833_v23 = vld [vmem:[%s5438_s10 + $0x4b4] ss:$8 sps:$4 sm:$0xff]  }
  0xa4   : > { %3307 = vmatprep.subr.bf16.mxu1 %v4740_v24  ;;  %v4836_v24 = vld [vmem:[%s5438_s10 + $0x5b4] ss:$8 sps:$4 sm:$0xff]  }
  0xa6   : > { %3265 = vmatpush2.bf16.msra.mxu0 %v4735_v25  ;;  %v4831_v25 = vld [vmem:[%s5438_s10 + $0x4b0] ss:$8 sps:$4 sm:$0xff]  }
  0xa7   : > { %3308 = vmatpush2.bf16.msra.mxu1 %v4738_v26  ;;  %3266 = vmatprep.subr.bf16.mxu0 %v4743_v27  ;;  %v4834_v26 = vld [vmem:[%s5438_s10 + $0x5b0] ss:$8 sps:$4 sm:$0xff]   ;;  %v4839_v27 = vld [vmem:[%s5438_s10 + $0x4a4] ss:$8 sps:$4 sm:$0xff]  }
  0xa8   : > { %3309 = vmatprep.subr.bf16.mxu1 %v4746_v28  ;;  %v4842_v28 = vld [vmem:[%s5438_s10 + $0x5a4] ss:$8 sps:$4 sm:$0xff]  }
  0xaa   : > { %3267 = vmatpush2.bf16.msra.mxu0 %v4741_v29  ;;  %v4837_v29 = vld [vmem:[%s5438_s10 + $0x4a0] ss:$8 sps:$4 sm:$0xff]  }
  0xab   : > { %3310 = vmatpush2.bf16.msra.mxu1 %v4744_v30  ;;  %3268 = vmatprep.subr.bf16.mxu0 %v4749_v31  ;;  %v4840_v30 = vld [vmem:[%s5438_s10 + $0x5a0] ss:$8 sps:$4 sm:$0xff]   ;;  %v4845_v31 = vld [vmem:[%s5438_s10 + $0x494] ss:$8 sps:$4 sm:$0xff]  }
  0xac   : > { %3311 = vmatprep.subr.bf16.mxu1 %v4752_v32  ;;  %v4848_v32 = vld [vmem:[%s5438_s10 + $0x594] ss:$8 sps:$4 sm:$0xff]  }
  0xae   : > { %3269 = vmatpush2.bf16.msra.mxu0 %v4747_v33  ;;  %v4843_v33 = vld [vmem:[%s5438_s10 + $0x490] ss:$8 sps:$4 sm:$0xff]  }
  0xaf   : > { %3312 = vmatpush2.bf16.msra.mxu1 %v4750_v34  ;;  %3324 = vmatprep.subr.bf16.mxu0 %v4761_v35  ;;  %v4846_v34 = vld [vmem:[%s5438_s10 + $0x590] ss:$8 sps:$4 sm:$0xff]   ;;  %v4851_v35 = vld [vmem:[%s5438_s10 + $0x484] ss:$8 sps:$4 sm:$0xff]  }
  0xb0   : > { %3367 = vmatprep.subr.bf16.mxu1 %v4764_v36  ;;  %v4854_v36 = vld [vmem:[%s5438_s10 + $0x584] ss:$8 sps:$4 sm:$0xff]  }
  0xb1   : > { %3271 = vmatmul.mubr.bf16.vlgmr.msra.gmra.mxu0 %v4753_v37  ;;  %v4849_v37 = vld [vmem:[%s5438_s10 + $0x480] ss:$8 sps:$4 sm:$0xff]  }
  0xb2   : > { %3314 = vmatmul.mubr.bf16.vlgmr.msra.gmra.mxu1 %v4756_v38  ;;  %3325 = vmatpush1.bf16.msra.mxu0 %v4759_v39  ;;  %v4852_v38 = vld [vmem:[%s5438_s10 + $0x580] ss:$8 sps:$4 sm:$0xff]   ;;  %v4863_v39 = vld [vmem:[%s5438_s10 + $0x674] ss:$8 sps:$4 sm:$0xff]  }
  0xb3   : > { %3368 = vmatpush1.bf16.msra.mxu1 %v4762_v40  ;;  %3326 = vmatprep.subr.bf16.mxu0 %v4767_v41  ;;  %v4866_v40 = vld [vmem:[%s5438_s10 + $0x774] ss:$8 sps:$4 sm:$0xff]   ;;  %v4855_v41 = vld [vmem:[%s5440_s11 + $0x20] ss:$112 sps:$4 sm:$0xff]  }
  0xb4   : > { %3369 = vmatprep.subr.bf16.mxu1 %v4770_v42  ;;  %3356 = vmatprep.mubr.bf16.mxu0 %v4857_v48  ;;  %v4858_v42 = vld [vmem:[%s5440_s11 + $0x28] ss:$112 sps:$4 sm:$0xff]   ;;  %v4962_v48 = vld [vmem:[%s5440_s11 + $0x3c] ss:$112 sps:$4 sm:$0xff]  }
  0xb5   : > { %3399 = vmatprep.mubr.bf16.mxu1 %v4860_v50  ;;  %v4870_v50 = vld [vmem:[%s5438_s10 + $0x760] ss:$8 sps:$4 sm:$0xff]  }
  0xb6   : > { %3327 = vmatpush1.bf16.msra.mxu0 %v4765_v43  ;;  %v4861_v43 = vld [vmem:[%s5438_s10 + $0x670] ss:$8 sps:$4 sm:$0xff]  }
  0xb7   : > { %3370 = vmatpush1.bf16.msra.mxu1 %v4768_v44  ;;  %3328 = vmatprep.subr.bf16.mxu0 %v4773_v45  ;;  %v4864_v44 = vld [vmem:[%s5438_s10 + $0x770] ss:$8 sps:$4 sm:$0xff]   ;;  %v4869_v45 = vld [vmem:[%s5438_s10 + $0x664] ss:$8 sps:$4 sm:$0xff]  }
  0xb8   : > { %3371 = vmatprep.subr.bf16.mxu1 %v4776_v46  ;;  %v4872_v46 = vld [vmem:[%s5438_s10 + $0x764] ss:$8 sps:$4 sm:$0xff]  }
  0xba   : > { %3329 = vmatpush1.bf16.msra.mxu0 %v4771_v47  ;;  %v4959_v47 = vld [vmem:[%s5440_s11 + $0x34] ss:$112 sps:$4 sm:$0xff]  }
  0xbb   : > { %3372 = vmatpush1.bf16.msra.mxu1 %v4774_v49  ;;  %3330 = vmatprep.subr.bf16.mxu0 %v4779_v51  ;;  %v4867_v49 = vld [vmem:[%s5438_s10 + $0x660] ss:$8 sps:$4 sm:$0xff]   ;;  %v4875_v51 = vld [vmem:[%s5438_s10 + $0x654] ss:$8 sps:$4 sm:$0xff]  }
  0xbc   : > { %3373 = vmatprep.subr.bf16.mxu1 %v4782_v52  ;;  %v4878_v52 = vld [vmem:[%s5438_s10 + $0x754] ss:$8 sps:$4 sm:$0xff]  }
  0xbe   : > { %3331 = vmatpush1.bf16.msra.mxu0 %v4777_v53  ;;  %v4873_v53 = vld [vmem:[%s5438_s10 + $0x650] ss:$8 sps:$4 sm:$0xff]  }
  0xbf   : > { %3374 = vmatpush1.bf16.msra.mxu1 %v4780_v54  ;;  %3332 = vmatprep.subr.bf16.mxu0 %v4785_v55  ;;  %v4876_v54 = vld [vmem:[%s5438_s10 + $0x750] ss:$8 sps:$4 sm:$0xff]   ;;  %v4881_v55 = vld [vmem:[%s5438_s10 + $0x644] ss:$8 sps:$4 sm:$0xff]  }
  0xc0   : > { %3375 = vmatprep.subr.bf16.mxu1 %v4788_v56  ;;  %v4884_v56 = vld [vmem:[%s5438_s10 + $0x744] ss:$8 sps:$4 sm:$0xff]  }
  0xc2   : > { %3333 = vmatpush1.bf16.msra.mxu0 %v4783_v57  ;;  %v4879_v57 = vld [vmem:[%s5438_s10 + $0x640] ss:$8 sps:$4 sm:$0xff]  }
  0xc3   : > { %3376 = vmatpush1.bf16.msra.mxu1 %v4786_v58  ;;  %3334 = vmatprep.subr.bf16.mxu0 %v4791_v59  ;;  %v4882_v58 = vld [vmem:[%s5438_s10 + $0x740] ss:$8 sps:$4 sm:$0xff]   ;;  %v4887_v59 = vld [vmem:[%s5438_s10 + $0x634] ss:$8 sps:$4 sm:$0xff]  }
  0xc4   : > { %3377 = vmatprep.subr.bf16.mxu1 %v4794_v60  ;;  %v4890_v60 = vld [vmem:[%s5438_s10 + $0x734] ss:$8 sps:$4 sm:$0xff]  }
  0xc6   : > { %3335 = vmatpush1.bf16.msra.mxu0 %v4789_v61  ;;  %v4885_v61 = vld [vmem:[%s5438_s10 + $0x630] ss:$8 sps:$4 sm:$0xff]  }
  0xc7   : > { %3378 = vmatpush1.bf16.msra.mxu1 %v4792_v62  ;;  %3336 = vmatprep.subr.bf16.mxu0 %v4797_v63  ;;  %v4888_v62 = vld [vmem:[%s5438_s10 + $0x730] ss:$8 sps:$4 sm:$0xff]   ;;  %v4893_v63 = vld [vmem:[%s5438_s10 + $0x624] ss:$8 sps:$4 sm:$0xff]  }
  0xc8   : > { %3379 = vmatprep.subr.bf16.mxu1 %v4800_v0  ;;  %v4896_v0 = vld [vmem:[%s5438_s10 + $0x724] ss:$8 sps:$4 sm:$0xff]  }
  0xca   : > { %3337 = vmatpush1.bf16.msra.mxu0 %v4795_v1  ;;  %v4891_v1 = vld [vmem:[%s5438_s10 + $0x620] ss:$8 sps:$4 sm:$0xff]  }
  0xcb   : > { %3380 = vmatpush1.bf16.msra.mxu1 %v4798_v2  ;;  %3338 = vmatprep.subr.bf16.mxu0 %v4803_v3  ;;  %v4894_v2 = vld [vmem:[%s5438_s10 + $0x720] ss:$8 sps:$4 sm:$0xff]   ;;  %v4899_v3 = vld [vmem:[%s5438_s10 + $0x614] ss:$8 sps:$4 sm:$0xff]  }
  0xcc   : > { %3381 = vmatprep.subr.bf16.mxu1 %v4806_v4  ;;  %v4902_v4 = vld [vmem:[%s5438_s10 + $0x714] ss:$8 sps:$4 sm:$0xff]  }
  0xce   : > { %3339 = vmatpush1.bf16.msra.mxu0 %v4801_v5  ;;  %v4897_v5 = vld [vmem:[%s5438_s10 + $0x610] ss:$8 sps:$4 sm:$0xff]  }
  0xcf   : > { %3382 = vmatpush1.bf16.msra.mxu1 %v4804_v6  ;;  %3340 = vmatprep.subr.bf16.mxu0 %v4809_v7  ;;  %v4900_v6 = vld [vmem:[%s5438_s10 + $0x710] ss:$8 sps:$4 sm:$0xff]   ;;  %v4905_v7 = vld [vmem:[%s5438_s10 + $0x604] ss:$8 sps:$4 sm:$0xff]  }
  0xd0   : > { %3383 = vmatprep.subr.bf16.mxu1 %v4812_v8  ;;  %v4908_v8 = vld [vmem:[%s5438_s10 + $0x704] ss:$8 sps:$4 sm:$0xff]  }
  0xd2   : > { %3341 = vmatpush2.bf16.msra.mxu0 %v4807_v9  ;;  %v4903_v9 = vld [vmem:[%s5438_s10 + $0x600] ss:$8 sps:$4 sm:$0xff]  }
  0xd3   : > { %3384 = vmatpush2.bf16.msra.mxu1 %v4810_v10  ;;  %3342 = vmatprep.subr.bf16.mxu0 %v4815_v11  ;;  %v4906_v10 = vld [vmem:[%s5438_s10 + $0x700] ss:$8 sps:$4 sm:$0xff]   ;;  %v4911_v11 = vld [vmem:[%s5438_s10 + $0x6f4] ss:$8 sps:$4 sm:$0xff]  }
  0xd4   : > { %3385 = vmatprep.subr.bf16.mxu1 %v4818_v12  ;;  %v4914_v12 = vld [vmem:[%s5438_s10 + $0x7f4] ss:$8 sps:$4 sm:$0xff]  }
  0xd6   : > { %3343 = vmatpush2.bf16.msra.mxu0 %v4813_v13  ;;  %v4909_v13 = vld [vmem:[%s5438_s10 + $0x6f0] ss:$8 sps:$4 sm:$0xff]  }
  0xd7   : > { %3386 = vmatpush2.bf16.msra.mxu1 %v4816_v14  ;;  %3344 = vmatprep.subr.bf16.mxu0 %v4821_v15  ;;  %v4912_v14 = vld [vmem:[%s5438_s10 + $0x7f0] ss:$8 sps:$4 sm:$0xff]   ;;  %v4917_v15 = vld [vmem:[%s5438_s10 + $0x6e4] ss:$8 sps:$4 sm:$0xff]  }
  0xd8   : > { %3387 = vmatprep.subr.bf16.mxu1 %v4824_v16  ;;  %v4920_v16 = vld [vmem:[%s5438_s10 + $0x7e4] ss:$8 sps:$4 sm:$0xff]  }
  0xda   : > { %3345 = vmatpush2.bf16.msra.mxu0 %v4819_v17  ;;  %v4915_v17 = vld [vmem:[%s5438_s10 + $0x6e0] ss:$8 sps:$4 sm:$0xff]  }
  0xdb   : > { %3388 = vmatpush2.bf16.msra.mxu1 %v4822_v18  ;;  %3346 = vmatprep.subr.bf16.mxu0 %v4827_v19  ;;  %v4918_v18 = vld [vmem:[%s5438_s10 + $0x7e0] ss:$8 sps:$4 sm:$0xff]   ;;  %v4923_v19 = vld [vmem:[%s5438_s10 + $0x6d4] ss:$8 sps:$4 sm:$0xff]  }
  0xdc   : > { %3389 = vmatprep.subr.bf16.mxu1 %v4830_v20  ;;  %v4926_v20 = vld [vmem:[%s5438_s10 + $0x7d4] ss:$8 sps:$4 sm:$0xff]  }
  0xde   : > { %3347 = vmatpush2.bf16.msra.mxu0 %v4825_v21  ;;  %v4921_v21 = vld [vmem:[%s5438_s10 + $0x6d0] ss:$8 sps:$4 sm:$0xff]  }
  0xdf   : > { %3390 = vmatpush2.bf16.msra.mxu1 %v4828_v22  ;;  %3348 = vmatprep.subr.bf16.mxu0 %v4833_v23  ;;  %v4924_v22 = vld [vmem:[%s5438_s10 + $0x7d0] ss:$8 sps:$4 sm:$0xff]   ;;  %v4929_v23 = vld [vmem:[%s5438_s10 + $0x6c4] ss:$8 sps:$4 sm:$0xff]  }
  0xe0   : > { %3391 = vmatprep.subr.bf16.mxu1 %v4836_v24  ;;  %v4932_v24 = vld [vmem:[%s5438_s10 + $0x7c4] ss:$8 sps:$4 sm:$0xff]  }
  0xe2   : > { %3349 = vmatpush2.bf16.msra.mxu0 %v4831_v25  ;;  %v4927_v25 = vld [vmem:[%s5438_s10 + $0x6c0] ss:$8 sps:$4 sm:$0xff]  }
  0xe3   : > { %3392 = vmatpush2.bf16.msra.mxu1 %v4834_v26  ;;  %3350 = vmatprep.subr.bf16.mxu0 %v4839_v27  ;;  %v4930_v26 = vld [vmem:[%s5438_s10 + $0x7c0] ss:$8 sps:$4 sm:$0xff]   ;;  %v4935_v27 = vld [vmem:[%s5438_s10 + $0x6b4] ss:$8 sps:$4 sm:$0xff]  }
  0xe4   : > { %3393 = vmatprep.subr.bf16.mxu1 %v4842_v28  ;;  %v4938_v28 = vld [vmem:[%s5438_s10 + $0x7b4] ss:$8 sps:$4 sm:$0xff]  }
  0xe6   : > { %3351 = vmatpush2.bf16.msra.mxu0 %v4837_v29  ;;  %v4933_v29 = vld [vmem:[%s5438_s10 + $0x6b0] ss:$8 sps:$4 sm:$0xff]  }
  0xe7   : > { %3394 = vmatpush2.bf16.msra.mxu1 %v4840_v30  ;;  %3352 = vmatprep.subr.bf16.mxu0 %v4845_v31  ;;  %v4936_v30 = vld [vmem:[%s5438_s10 + $0x7b0] ss:$8 sps:$4 sm:$0xff]   ;;  %v4941_v31 = vld [vmem:[%s5438_s10 + $0x6a4] ss:$8 sps:$4 sm:$0xff]  }
  0xe8   : > { %3395 = vmatprep.subr.bf16.mxu1 %v4848_v32  ;;  %v4944_v32 = vld [vmem:[%s5438_s10 + $0x7a4] ss:$8 sps:$4 sm:$0xff]  }
  0xea   : > { %3353 = vmatpush2.bf16.msra.mxu0 %v4843_v33  ;;  %v4939_v33 = vld [vmem:[%s5438_s10 + $0x6a0] ss:$8 sps:$4 sm:$0xff]  }
  0xeb   : > { %3396 = vmatpush2.bf16.msra.mxu1 %v4846_v34  ;;  %3354 = vmatprep.subr.bf16.mxu0 %v4851_v35  ;;  %v4942_v34 = vld [vmem:[%s5438_s10 + $0x7a0] ss:$8 sps:$4 sm:$0xff]   ;;  %v4947_v35 = vld [vmem:[%s5438_s10 + $0x694] ss:$8 sps:$4 sm:$0xff]  }
  0xec   : > { %3397 = vmatprep.subr.bf16.mxu1 %v4854_v36  ;;  %v4950_v36 = vld [vmem:[%s5438_s10 + $0x794] ss:$8 sps:$4 sm:$0xff]  }
  0xee   : > { %3355 = vmatpush2.bf16.msra.mxu0 %v4849_v37  ;;  %v4945_v37 = vld [vmem:[%s5438_s10 + $0x690] ss:$8 sps:$4 sm:$0xff]  }
  0xef   : > { %3398 = vmatpush2.bf16.msra.mxu1 %v4852_v38  ;;  %3410 = vmatprep.subr.bf16.mxu0 %v4863_v39  ;;  %v4948_v38 = vld [vmem:[%s5438_s10 + $0x790] ss:$8 sps:$4 sm:$0xff]   ;;  %v4953_v39 = vld [vmem:[%s5438_s10 + $0x684] ss:$8 sps:$4 sm:$0xff]  }
  0xf0   : > { %3453 = vmatprep.subr.bf16.mxu1 %v4866_v40  ;;  %v4956_v40 = vld [vmem:[%s5438_s10 + $0x784] ss:$8 sps:$4 sm:$0xff]  }
  0xf1   : > { %3357 = vmatmul.mubr.bf16.vlgmr.msra.gmra.mxu0 %v4855_v41  ;;  %v4951_v41 = vld [vmem:[%s5438_s10 + $0x680] ss:$8 sps:$4 sm:$0xff]  }
  0xf2   : > { %3400 = vmatmul.mubr.bf16.vlgmr.msra.gmra.mxu1 %v4858_v42  ;;  %3411 = vmatpush1.bf16.msra.mxu0 %v4861_v43  ;;  %v4954_v42 = vld [vmem:[%s5438_s10 + $0x780] ss:$8 sps:$4 sm:$0xff]   ;;  %v4965_v43 = vld [vmem:[%s5438_s10 + $0x874] ss:$8 sps:$4 sm:$0xff]  }
  0xf3   : > { %3454 = vmatpush1.bf16.msra.mxu1 %v4864_v44  ;;  %3412 = vmatprep.subr.bf16.mxu0 %v4869_v45  ;;  %v4968_v44 = vld [vmem:[%s5438_s10 + $0x974] ss:$8 sps:$4 sm:$0xff]   ;;  %v4957_v45 = vld [vmem:[%s5440_s11 + $0x30] ss:$112 sps:$4 sm:$0xff]  }
  0xf4   : > { %3455 = vmatprep.subr.bf16.mxu1 %v4872_v46  ;;  %3442 = vmatprep.mubr.bf16.mxu0 %v4959_v47  ;;  %v4960_v46 = vld [vmem:[%s5440_s11 + $0x38] ss:$112 sps:$4 sm:$0xff]  }
  0xf5   : > { %3485 = vmatprep.mubr.bf16.mxu1 %v4962_v48  ;;  %v4963_v47 = vld [vmem:[%s5438_s10 + $0x870] ss:$8 sps:$4 sm:$0xff]  }
  0xf6   : > { %3413 = vmatpush1.bf16.msra.mxu0 %v4867_v49  ;;  %v4966_v48 = vld [vmem:[%s5438_s10 + $0x970] ss:$8 sps:$4 sm:$0xff]   ;;  %v4971_v49 = vld [vmem:[%s5438_s10 + $0x864] ss:$8 sps:$4 sm:$0xff]  }
  0xf7   : > { %3456 = vmatpush1.bf16.msra.mxu1 %v4870_v50  ;;  %3414 = vmatprep.subr.bf16.mxu0 %v4875_v51  ;;  %v4974_v50 = vld [vmem:[%s5438_s10 + $0x964] ss:$8 sps:$4 sm:$0xff]  }
  0xf8   : > { %3457 = vmatprep.subr.bf16.mxu1 %v4878_v52  ;;  %v5061_v51 = vld [vmem:[%s5440_s11 + $0x44] ss:$112 sps:$4 sm:$0xff]   ;;  %v5064_v52 = vld [vmem:[%s5440_s11 + $0x4c] ss:$112 sps:$4 sm:$0xff]  }
  0xfa   : > { %3415 = vmatpush1.bf16.msra.mxu0 %v4873_v53  ;;  %v4969_v53 = vld [vmem:[%s5438_s10 + $0x860] ss:$8 sps:$4 sm:$0xff]  }
  0xfb   : > { %3458 = vmatpush1.bf16.msra.mxu1 %v4876_v54  ;;  %3416 = vmatprep.subr.bf16.mxu0 %v4881_v55  ;;  %v4972_v54 = vld [vmem:[%s5438_s10 + $0x960] ss:$8 sps:$4 sm:$0xff]   ;;  %v4977_v55 = vld [vmem:[%s5438_s10 + $0x854] ss:$8 sps:$4 sm:$0xff]  }
  0xfc   : > { %3459 = vmatprep.subr.bf16.mxu1 %v4884_v56  ;;  %v4980_v56 = vld [vmem:[%s5438_s10 + $0x954] ss:$8 sps:$4 sm:$0xff]  }
  0xfe   : > { %3417 = vmatpush1.bf16.msra.mxu0 %v4879_v57  ;;  %v4975_v57 = vld [vmem:[%s5438_s10 + $0x850] ss:$8 sps:$4 sm:$0xff]  }
  0xff   : > { %3460 = vmatpush1.bf16.msra.mxu1 %v4882_v58  ;;  %3418 = vmatprep.subr.bf16.mxu0 %v4887_v59  ;;  %v4978_v58 = vld [vmem:[%s5438_s10 + $0x950] ss:$8 sps:$4 sm:$0xff]   ;;  %v4983_v59 = vld [vmem:[%s5438_s10 + $0x844] ss:$8 sps:$4 sm:$0xff]  }
 0x100   : > { %3461 = vmatprep.subr.bf16.mxu1 %v4890_v60  ;;  %v4986_v60 = vld [vmem:[%s5438_s10 + $0x944] ss:$8 sps:$4 sm:$0xff]  }
 0x102   : > { %3419 = vmatpush1.bf16.msra.mxu0 %v4885_v61  ;;  %v4981_v61 = vld [vmem:[%s5438_s10 + $0x840] ss:$8 sps:$4 sm:$0xff]  }
 0x103   : > { %3462 = vmatpush1.bf16.msra.mxu1 %v4888_v62  ;;  %3420 = vmatprep.subr.bf16.mxu0 %v4893_v63  ;;  %v4984_v62 = vld [vmem:[%s5438_s10 + $0x940] ss:$8 sps:$4 sm:$0xff]   ;;  %v4989_v63 = vld [vmem:[%s5438_s10 + $0x834] ss:$8 sps:$4 sm:$0xff]  }
 0x104   : > { %3463 = vmatprep.subr.bf16.mxu1 %v4896_v0  ;;  %v4992_v0 = vld [vmem:[%s5438_s10 + $0x934] ss:$8 sps:$4 sm:$0xff]  }
 0x106   : > { %3421 = vmatpush1.bf16.msra.mxu0 %v4891_v1  ;;  %v4987_v1 = vld [vmem:[%s5438_s10 + $0x830] ss:$8 sps:$4 sm:$0xff]  }
 0x107   : > { %3464 = vmatpush1.bf16.msra.mxu1 %v4894_v2  ;;  %3422 = vmatprep.subr.bf16.mxu0 %v4899_v3  ;;  %v4990_v2 = vld [vmem:[%s5438_s10 + $0x930] ss:$8 sps:$4 sm:$0xff]   ;;  %v4995_v3 = vld [vmem:[%s5438_s10 + $0x824] ss:$8 sps:$4 sm:$0xff]  }
 0x108   : > { %3465 = vmatprep.subr.bf16.mxu1 %v4902_v4  ;;  %v4998_v4 = vld [vmem:[%s5438_s10 + $0x924] ss:$8 sps:$4 sm:$0xff]  }
 0x10a   : > { %3423 = vmatpush1.bf16.msra.mxu0 %v4897_v5  ;;  %v4993_v5 = vld [vmem:[%s5438_s10 + $0x820] ss:$8 sps:$4 sm:$0xff]  }
 0x10b   : > { %3466 = vmatpush1.bf16.msra.mxu1 %v4900_v6  ;;  %3424 = vmatprep.subr.bf16.mxu0 %v4905_v7  ;;  %v4996_v6 = vld [vmem:[%s5438_s10 + $0x920] ss:$8 sps:$4 sm:$0xff]   ;;  %v5001_v7 = vld [vmem:[%s5438_s10 + $0x814] ss:$8 sps:$4 sm:$0xff]  }
 0x10c   : > { %3467 = vmatprep.subr.bf16.mxu1 %v4908_v8  ;;  %v5004_v8 = vld [vmem:[%s5438_s10 + $0x914] ss:$8 sps:$4 sm:$0xff]  }
 0x10e   : > { %3425 = vmatpush1.bf16.msra.mxu0 %v4903_v9  ;;  %v4999_v9 = vld [vmem:[%s5438_s10 + $0x810] ss:$8 sps:$4 sm:$0xff]  }
 0x10f   : > { %3468 = vmatpush1.bf16.msra.mxu1 %v4906_v10  ;;  %3426 = vmatprep.subr.bf16.mxu0 %v4911_v11  ;;  %v5002_v10 = vld [vmem:[%s5438_s10 + $0x910] ss:$8 sps:$4 sm:$0xff]   ;;  %v5007_v11 = vld [vmem:[%s5438_s10 + $0x804] ss:$8 sps:$4 sm:$0xff]  }
 0x110   : > { %3469 = vmatprep.subr.bf16.mxu1 %v4914_v12  ;;  %v5010_v12 = vld [vmem:[%s5438_s10 + $0x904] ss:$8 sps:$4 sm:$0xff]  }
 0x112   : > { %3427 = vmatpush2.bf16.msra.mxu0 %v4909_v13  ;;  %v5005_v13 = vld [vmem:[%s5438_s10 + $0x800] ss:$8 sps:$4 sm:$0xff]  }
 0x113   : > { %3470 = vmatpush2.bf16.msra.mxu1 %v4912_v14  ;;  %3428 = vmatprep.subr.bf16.mxu0 %v4917_v15  ;;  %v5008_v14 = vld [vmem:[%s5438_s10 + $0x900] ss:$8 sps:$4 sm:$0xff]   ;;  %v5013_v15 = vld [vmem:[%s5438_s10 + $0x8f4] ss:$8 sps:$4 sm:$0xff]  }
 0x114   : > { %3471 = vmatprep.subr.bf16.mxu1 %v4920_v16  ;;  %v5016_v16 = vld [vmem:[%s5438_s10 + $0x9f4] ss:$8 sps:$4 sm:$0xff]  }
 0x116   : > { %3429 = vmatpush2.bf16.msra.mxu0 %v4915_v17  ;;  %v5011_v17 = vld [vmem:[%s5438_s10 + $0x8f0] ss:$8 sps:$4 sm:$0xff]  }
 0x117   : > { %3472 = vmatpush2.bf16.msra.mxu1 %v4918_v18  ;;  %3430 = vmatprep.subr.bf16.mxu0 %v4923_v19  ;;  %v5014_v18 = vld [vmem:[%s5438_s10 + $0x9f0] ss:$8 sps:$4 sm:$0xff]   ;;  %v5019_v19 = vld [vmem:[%s5438_s10 + $0x8e4] ss:$8 sps:$4 sm:$0xff]  }
 0x118   : > { %3473 = vmatprep.subr.bf16.mxu1 %v4926_v20  ;;  %v5022_v20 = vld [vmem:[%s5438_s10 + $0x9e4] ss:$8 sps:$4 sm:$0xff]  }
 0x11a   : > { %3431 = vmatpush2.bf16.msra.mxu0 %v4921_v21  ;;  %v5017_v21 = vld [vmem:[%s5438_s10 + $0x8e0] ss:$8 sps:$4 sm:$0xff]  }
 0x11b   : > { %3474 = vmatpush2.bf16.msra.mxu1 %v4924_v22  ;;  %3432 = vmatprep.subr.bf16.mxu0 %v4929_v23  ;;  %v5020_v22 = vld [vmem:[%s5438_s10 + $0x9e0] ss:$8 sps:$4 sm:$0xff]   ;;  %v5025_v23 = vld [vmem:[%s5438_s10 + $0x8d4] ss:$8 sps:$4 sm:$0xff]  }
 0x11c   : > { %3475 = vmatprep.subr.bf16.mxu1 %v4932_v24  ;;  %v5028_v24 = vld [vmem:[%s5438_s10 + $0x9d4] ss:$8 sps:$4 sm:$0xff]  }
 0x11e   : > { %3433 = vmatpush2.bf16.msra.mxu0 %v4927_v25  ;;  %v5023_v25 = vld [vmem:[%s5438_s10 + $0x8d0] ss:$8 sps:$4 sm:$0xff]  }
 0x11f   : > { %3476 = vmatpush2.bf16.msra.mxu1 %v4930_v26  ;;  %3434 = vmatprep.subr.bf16.mxu0 %v4935_v27  ;;  %v5026_v26 = vld [vmem:[%s5438_s10 + $0x9d0] ss:$8 sps:$4 sm:$0xff]   ;;  %v5031_v27 = vld [vmem:[%s5438_s10 + $0x8c4] ss:$8 sps:$4 sm:$0xff]  }
 0x120   : > { %3477 = vmatprep.subr.bf16.mxu1 %v4938_v28  ;;  %v5034_v28 = vld [vmem:[%s5438_s10 + $0x9c4] ss:$8 sps:$4 sm:$0xff]  }
 0x122   : > { %3435 = vmatpush2.bf16.msra.mxu0 %v4933_v29  ;;  %v5029_v29 = vld [vmem:[%s5438_s10 + $0x8c0] ss:$8 sps:$4 sm:$0xff]  }
 0x123   : > { %3478 = vmatpush2.bf16.msra.mxu1 %v4936_v30  ;;  %3436 = vmatprep.subr.bf16.mxu0 %v4941_v31  ;;  %v5032_v30 = vld [vmem:[%s5438_s10 + $0x9c0] ss:$8 sps:$4 sm:$0xff]   ;;  %v5037_v31 = vld [vmem:[%s5438_s10 + $0x8b4] ss:$8 sps:$4 sm:$0xff]  }
 0x124   : > { %3479 = vmatprep.subr.bf16.mxu1 %v4944_v32  ;;  %v5040_v32 = vld [vmem:[%s5438_s10 + $0x9b4] ss:$8 sps:$4 sm:$0xff]  }
 0x126   : > { %3437 = vmatpush2.bf16.msra.mxu0 %v4939_v33  ;;  %v5035_v33 = vld [vmem:[%s5438_s10 + $0x8b0] ss:$8 sps:$4 sm:$0xff]  }
 0x127   : > { %3480 = vmatpush2.bf16.msra.mxu1 %v4942_v34  ;;  %3438 = vmatprep.subr.bf16.mxu0 %v4947_v35  ;;  %v5038_v34 = vld [vmem:[%s5438_s10 + $0x9b0] ss:$8 sps:$4 sm:$0xff]   ;;  %v5043_v35 = vld [vmem:[%s5438_s10 + $0x8a4] ss:$8 sps:$4 sm:$0xff]  }
 0x128   : > { %3481 = vmatprep.subr.bf16.mxu1 %v4950_v36  ;;  %v5046_v36 = vld [vmem:[%s5438_s10 + $0x9a4] ss:$8 sps:$4 sm:$0xff]  }
 0x12a   : > { %3439 = vmatpush2.bf16.msra.mxu0 %v4945_v37  ;;  %v5041_v37 = vld [vmem:[%s5438_s10 + $0x8a0] ss:$8 sps:$4 sm:$0xff]  }
 0x12b   : > { %3482 = vmatpush2.bf16.msra.mxu1 %v4948_v38  ;;  %3440 = vmatprep.subr.bf16.mxu0 %v4953_v39  ;;  %v5044_v38 = vld [vmem:[%s5438_s10 + $0x9a0] ss:$8 sps:$4 sm:$0xff]   ;;  %v5049_v39 = vld [vmem:[%s5438_s10 + $0x894] ss:$8 sps:$4 sm:$0xff]  }
 0x12c   : > { %3483 = vmatprep.subr.bf16.mxu1 %v4956_v40  ;;  %v5052_v40 = vld [vmem:[%s5438_s10 + $0x994] ss:$8 sps:$4 sm:$0xff]  }
 0x12e   : > { %3441 = vmatpush2.bf16.msra.mxu0 %v4951_v41  ;;  %v5047_v41 = vld [vmem:[%s5438_s10 + $0x890] ss:$8 sps:$4 sm:$0xff]  }
 0x12f   : > { %3484 = vmatpush2.bf16.msra.mxu1 %v4954_v42  ;;  %3496 = vmatprep.subr.bf16.mxu0 %v4965_v43  ;;  %v5050_v42 = vld [vmem:[%s5438_s10 + $0x990] ss:$8 sps:$4 sm:$0xff]   ;;  %v5055_v43 = vld [vmem:[%s5438_s10 + $0x884] ss:$8 sps:$4 sm:$0xff]  }
 0x130   : > { %3539 = vmatprep.subr.bf16.mxu1 %v4968_v44  ;;  %v5058_v44 = vld [vmem:[%s5438_s10 + $0x984] ss:$8 sps:$4 sm:$0xff]  }
 0x131   : > { %3443 = vmatmul.mubr.bf16.vlgmr.msra.gmra.mxu0 %v4957_v45  ;;  %v5053_v45 = vld [vmem:[%s5438_s10 + $0x880] ss:$8 sps:$4 sm:$0xff]  }
 0x132   : > { %3486 = vmatmul.mubr.bf16.vlgmr.msra.gmra.mxu1 %v4960_v46  ;;  %3497 = vmatpush1.bf16.msra.mxu0 %v4963_v47  ;;  %v5056_v46 = vld [vmem:[%s5438_s10 + $0x980] ss:$8 sps:$4 sm:$0xff]   ;;  %v5067_v47 = vld [vmem:[%s5438_s10 + $0xa74] ss:$8 sps:$4 sm:$0xff]  }
 0x133   : > { %3540 = vmatpush1.bf16.msra.mxu1 %v4966_v48  ;;  %3498 = vmatprep.subr.bf16.mxu0 %v4971_v49  ;;  %v5070_v48 = vld [vmem:[%s5438_s10 + $0xb74] ss:$8 sps:$4 sm:$0xff]   ;;  %v5059_v49 = vld [vmem:[%s5440_s11 + $0x40] ss:$112 sps:$4 sm:$0xff]  }
 0x134   : > { %3541 = vmatprep.subr.bf16.mxu1 %v4974_v50  ;;  %3528 = vmatprep.mubr.bf16.mxu0 %v5061_v51  ;;  %v5062_v50 = vld [vmem:[%s5440_s11 + $0x48] ss:$112 sps:$4 sm:$0xff]  }
 0x135   : > { %3571 = vmatprep.mubr.bf16.mxu1 %v5064_v52  ;;  %v5065_v51 = vld [vmem:[%s5438_s10 + $0xa70] ss:$8 sps:$4 sm:$0xff]  }
 0x136   : > { %3499 = vmatpush1.bf16.msra.mxu0 %v4969_v53  ;;  %v5068_v52 = vld [vmem:[%s5438_s10 + $0xb70] ss:$8 sps:$4 sm:$0xff]   ;;  %v5073_v53 = vld [vmem:[%s5438_s10 + $0xa64] ss:$8 sps:$4 sm:$0xff]  }
 0x137   : > { %3542 = vmatpush1.bf16.msra.mxu1 %v4972_v54  ;;  %3500 = vmatprep.subr.bf16.mxu0 %v4977_v55  ;;  %v5076_v54 = vld [vmem:[%s5438_s10 + $0xb64] ss:$8 sps:$4 sm:$0xff]  }
 0x138   : > { %3543 = vmatprep.subr.bf16.mxu1 %v4980_v56  ;;  %v5163_v55 = vld [vmem:[%s5440_s11 + $0x54] ss:$112 sps:$4 sm:$0xff]   ;;  %v5166_v56 = vld [vmem:[%s5440_s11 + $0x5c] ss:$112 sps:$4 sm:$0xff]  }
 0x13a   : > { %3501 = vmatpush1.bf16.msra.mxu0 %v4975_v57  ;;  %v5071_v57 = vld [vmem:[%s5438_s10 + $0xa60] ss:$8 sps:$4 sm:$0xff]  }
 0x13b   : > { %3544 = vmatpush1.bf16.msra.mxu1 %v4978_v58  ;;  %3502 = vmatprep.subr.bf16.mxu0 %v4983_v59  ;;  %v5074_v58 = vld [vmem:[%s5438_s10 + $0xb60] ss:$8 sps:$4 sm:$0xff]   ;;  %v5079_v59 = vld [vmem:[%s5438_s10 + $0xa54] ss:$8 sps:$4 sm:$0xff]  }
 0x13c   : > { %3545 = vmatprep.subr.bf16.mxu1 %v4986_v60  ;;  %v5082_v60 = vld [vmem:[%s5438_s10 + $0xb54] ss:$8 sps:$4 sm:$0xff]  }
 0x13e   : > { %3503 = vmatpush1.bf16.msra.mxu0 %v4981_v61  ;;  %v5077_v61 = vld [vmem:[%s5438_s10 + $0xa50] ss:$8 sps:$4 sm:$0xff]  }
 0x13f   : > { %3546 = vmatpush1.bf16.msra.mxu1 %v4984_v62  ;;  %3504 = vmatprep.subr.bf16.mxu0 %v4989_v63  ;;  %v5080_v62 = vld [vmem:[%s5438_s10 + $0xb50] ss:$8 sps:$4 sm:$0xff]   ;;  %v5085_v63 = vld [vmem:[%s5438_s10 + $0xa44] ss:$8 sps:$4 sm:$0xff]  }
 0x140   : > { %3547 = vmatprep.subr.bf16.mxu1 %v4992_v0  ;;  %v5088_v0 = vld [vmem:[%s5438_s10 + $0xb44] ss:$8 sps:$4 sm:$0xff]  }
 0x142   : > { %3505 = vmatpush1.bf16.msra.mxu0 %v4987_v1  ;;  %v5083_v1 = vld [vmem:[%s5438_s10 + $0xa40] ss:$8 sps:$4 sm:$0xff]  }
 0x143   : > { %3548 = vmatpush1.bf16.msra.mxu1 %v4990_v2  ;;  %3506 = vmatprep.subr.bf16.mxu0 %v4995_v3  ;;  %v5086_v2 = vld [vmem:[%s5438_s10 + $0xb40] ss:$8 sps:$4 sm:$0xff]   ;;  %v5091_v3 = vld [vmem:[%s5438_s10 + $0xa34] ss:$8 sps:$4 sm:$0xff]  }
 0x144   : > { %3549 = vmatprep.subr.bf16.mxu1 %v4998_v4  ;;  %v5094_v4 = vld [vmem:[%s5438_s10 + $0xb34] ss:$8 sps:$4 sm:$0xff]  }
 0x146   : > { %3507 = vmatpush1.bf16.msra.mxu0 %v4993_v5  ;;  %v5089_v5 = vld [vmem:[%s5438_s10 + $0xa30] ss:$8 sps:$4 sm:$0xff]  }
 0x147   : > { %3550 = vmatpush1.bf16.msra.mxu1 %v4996_v6  ;;  %3508 = vmatprep.subr.bf16.mxu0 %v5001_v7  ;;  %v5092_v6 = vld [vmem:[%s5438_s10 + $0xb30] ss:$8 sps:$4 sm:$0xff]   ;;  %v5097_v7 = vld [vmem:[%s5438_s10 + $0xa24] ss:$8 sps:$4 sm:$0xff]  }
 0x148   : > { %3551 = vmatprep.subr.bf16.mxu1 %v5004_v8  ;;  %v5100_v8 = vld [vmem:[%s5438_s10 + $0xb24] ss:$8 sps:$4 sm:$0xff]  }
 0x14a   : > { %3509 = vmatpush1.bf16.msra.mxu0 %v4999_v9  ;;  %v5095_v9 = vld [vmem:[%s5438_s10 + $0xa20] ss:$8 sps:$4 sm:$0xff]  }
 0x14b   : > { %3552 = vmatpush1.bf16.msra.mxu1 %v5002_v10  ;;  %3510 = vmatprep.subr.bf16.mxu0 %v5007_v11  ;;  %v5098_v10 = vld [vmem:[%s5438_s10 + $0xb20] ss:$8 sps:$4 sm:$0xff]   ;;  %v5103_v11 = vld [vmem:[%s5438_s10 + $0xa14] ss:$8 sps:$4 sm:$0xff]  }
 0x14c   : > { %3553 = vmatprep.subr.bf16.mxu1 %v5010_v12  ;;  %v5106_v12 = vld [vmem:[%s5438_s10 + $0xb14] ss:$8 sps:$4 sm:$0xff]  }
 0x14e   : > { %3511 = vmatpush1.bf16.msra.mxu0 %v5005_v13  ;;  %v5101_v13 = vld [vmem:[%s5438_s10 + $0xa10] ss:$8 sps:$4 sm:$0xff]  }
 0x14f   : > { %3554 = vmatpush1.bf16.msra.mxu1 %v5008_v14  ;;  %3512 = vmatprep.subr.bf16.mxu0 %v5013_v15  ;;  %v5104_v14 = vld [vmem:[%s5438_s10 + $0xb10] ss:$8 sps:$4 sm:$0xff]   ;;  %v5109_v15 = vld [vmem:[%s5438_s10 + $0xa04] ss:$8 sps:$4 sm:$0xff]  }
 0x150   : > { %3555 = vmatprep.subr.bf16.mxu1 %v5016_v16  ;;  %v5112_v16 = vld [vmem:[%s5438_s10 + $0xb04] ss:$8 sps:$4 sm:$0xff]  }
 0x152   : > { %3513 = vmatpush2.bf16.msra.mxu0 %v5011_v17  ;;  %v5107_v17 = vld [vmem:[%s5438_s10 + $0xa00] ss:$8 sps:$4 sm:$0xff]  }
 0x153   : > { %3556 = vmatpush2.bf16.msra.mxu1 %v5014_v18  ;;  %3514 = vmatprep.subr.bf16.mxu0 %v5019_v19  ;;  %v5110_v18 = vld [vmem:[%s5438_s10 + $0xb00] ss:$8 sps:$4 sm:$0xff]   ;;  %v5115_v19 = vld [vmem:[%s5438_s10 + $0xaf4] ss:$8 sps:$4 sm:$0xff]  }
 0x154   : > { %3557 = vmatprep.subr.bf16.mxu1 %v5022_v20  ;;  %v5118_v20 = vld [vmem:[%s5438_s10 + $0xbf4] ss:$8 sps:$4 sm:$0xff]  }
 0x156   : > { %3515 = vmatpush2.bf16.msra.mxu0 %v5017_v21  ;;  %v5113_v21 = vld [vmem:[%s5438_s10 + $0xaf0] ss:$8 sps:$4 sm:$0xff]  }
 0x157   : > { %3558 = vmatpush2.bf16.msra.mxu1 %v5020_v22  ;;  %3516 = vmatprep.subr.bf16.mxu0 %v5025_v23  ;;  %v5116_v22 = vld [vmem:[%s5438_s10 + $0xbf0] ss:$8 sps:$4 sm:$0xff]   ;;  %v5121_v23 = vld [vmem:[%s5438_s10 + $0xae4] ss:$8 sps:$4 sm:$0xff]  }
 0x158   : > { %3559 = vmatprep.subr.bf16.mxu1 %v5028_v24  ;;  %v5124_v24 = vld [vmem:[%s5438_s10 + $0xbe4] ss:$8 sps:$4 sm:$0xff]  }
 0x15a   : > { %3517 = vmatpush2.bf16.msra.mxu0 %v5023_v25  ;;  %v5119_v25 = vld [vmem:[%s5438_s10 + $0xae0] ss:$8 sps:$4 sm:$0xff]  }
 0x15b   : > { %3560 = vmatpush2.bf16.msra.mxu1 %v5026_v26  ;;  %3518 = vmatprep.subr.bf16.mxu0 %v5031_v27  ;;  %v5122_v26 = vld [vmem:[%s5438_s10 + $0xbe0] ss:$8 sps:$4 sm:$0xff]   ;;  %v5127_v27 = vld [vmem:[%s5438_s10 + $0xad4] ss:$8 sps:$4 sm:$0xff]  }
 0x15c   : > { %3561 = vmatprep.subr.bf16.mxu1 %v5034_v28  ;;  %v5130_v28 = vld [vmem:[%s5438_s10 + $0xbd4] ss:$8 sps:$4 sm:$0xff]  }
 0x15e   : > { %3519 = vmatpush2.bf16.msra.mxu0 %v5029_v29  ;;  %v5125_v29 = vld [vmem:[%s5438_s10 + $0xad0] ss:$8 sps:$4 sm:$0xff]  }
 0x15f   : > { %3562 = vmatpush2.bf16.msra.mxu1 %v5032_v30  ;;  %3520 = vmatprep.subr.bf16.mxu0 %v5037_v31  ;;  %v5128_v30 = vld [vmem:[%s5438_s10 + $0xbd0] ss:$8 sps:$4 sm:$0xff]   ;;  %v5133_v31 = vld [vmem:[%s5438_s10 + $0xac4] ss:$8 sps:$4 sm:$0xff]  }
 0x160   : > { %3563 = vmatprep.subr.bf16.mxu1 %v5040_v32  ;;  %v5136_v32 = vld [vmem:[%s5438_s10 + $0xbc4] ss:$8 sps:$4 sm:$0xff]  }
 0x162   : > { %3521 = vmatpush2.bf16.msra.mxu0 %v5035_v33  ;;  %v5131_v33 = vld [vmem:[%s5438_s10 + $0xac0] ss:$8 sps:$4 sm:$0xff]  }
 0x163   : > { %3564 = vmatpush2.bf16.msra.mxu1 %v5038_v34  ;;  %3522 = vmatprep.subr.bf16.mxu0 %v5043_v35  ;;  %v5134_v34 = vld [vmem:[%s5438_s10 + $0xbc0] ss:$8 sps:$4 sm:$0xff]   ;;  %v5139_v35 = vld [vmem:[%s5438_s10 + $0xab4] ss:$8 sps:$4 sm:$0xff]  }
 0x164   : > { %3565 = vmatprep.subr.bf16.mxu1 %v5046_v36  ;;  %v5142_v36 = vld [vmem:[%s5438_s10 + $0xbb4] ss:$8 sps:$4 sm:$0xff]  }
 0x166   : > { %3523 = vmatpush2.bf16.msra.mxu0 %v5041_v37  ;;  %v5137_v37 = vld [vmem:[%s5438_s10 + $0xab0] ss:$8 sps:$4 sm:$0xff]  }
 0x167   : > { %3566 = vmatpush2.bf16.msra.mxu1 %v5044_v38  ;;  %3524 = vmatprep.subr.bf16.mxu0 %v5049_v39  ;;  %v5140_v38 = vld [vmem:[%s5438_s10 + $0xbb0] ss:$8 sps:$4 sm:$0xff]   ;;  %v5145_v39 = vld [vmem:[%s5438_s10 + $0xaa4] ss:$8 sps:$4 sm:$0xff]  }
 0x168   : > { %3567 = vmatprep.subr.bf16.mxu1 %v5052_v40  ;;  %v5148_v40 = vld [vmem:[%s5438_s10 + $0xba4] ss:$8 sps:$4 sm:$0xff]  }
 0x16a   : > { %3525 = vmatpush2.bf16.msra.mxu0 %v5047_v41  ;;  %v5143_v41 = vld [vmem:[%s5438_s10 + $0xaa0] ss:$8 sps:$4 sm:$0xff]  }
 0x16b   : > { %3568 = vmatpush2.bf16.msra.mxu1 %v5050_v42  ;;  %3526 = vmatprep.subr.bf16.mxu0 %v5055_v43  ;;  %v5146_v42 = vld [vmem:[%s5438_s10 + $0xba0] ss:$8 sps:$4 sm:$0xff]   ;;  %v5151_v43 = vld [vmem:[%s5438_s10 + $0xa94] ss:$8 sps:$4 sm:$0xff]  }
 0x16c   : > { %3569 = vmatprep.subr.bf16.mxu1 %v5058_v44  ;;  %v5154_v44 = vld [vmem:[%s5438_s10 + $0xb94] ss:$8 sps:$4 sm:$0xff]  }
 0x16e   : > { %3527 = vmatpush2.bf16.msra.mxu0 %v5053_v45  ;;  %v5149_v45 = vld [vmem:[%s5438_s10 + $0xa90] ss:$8 sps:$4 sm:$0xff]  }
 0x16f   : > { %3570 = vmatpush2.bf16.msra.mxu1 %v5056_v46  ;;  %3582 = vmatprep.subr.bf16.mxu0 %v5067_v47  ;;  %v5152_v46 = vld [vmem:[%s5438_s10 + $0xb90] ss:$8 sps:$4 sm:$0xff]   ;;  %v5157_v47 = vld [vmem:[%s5438_s10 + $0xa84] ss:$8 sps:$4 sm:$0xff]  }
 0x170   : > { %3625 = vmatprep.subr.bf16.mxu1 %v5070_v48  ;;  %v5160_v48 = vld [vmem:[%s5438_s10 + $0xb84] ss:$8 sps:$4 sm:$0xff]  }
 0x171   : > { %3529 = vmatmul.mubr.bf16.vlgmr.msra.gmra.mxu0 %v5059_v49  ;;  %v5155_v49 = vld [vmem:[%s5438_s10 + $0xa80] ss:$8 sps:$4 sm:$0xff]  }
 0x172   : > { %3572 = vmatmul.mubr.bf16.vlgmr.msra.gmra.mxu1 %v5062_v50  ;;  %3583 = vmatpush1.bf16.msra.mxu0 %v5065_v51  ;;  %v5158_v50 = vld [vmem:[%s5438_s10 + $0xb80] ss:$8 sps:$4 sm:$0xff]   ;;  %v5169_v51 = vld [vmem:[%s5438_s10 + $0xc74] ss:$8 sps:$4 sm:$0xff]  }
 0x173   : > { %3626 = vmatpush1.bf16.msra.mxu1 %v5068_v52  ;;  %3584 = vmatprep.subr.bf16.mxu0 %v5073_v53  ;;  %v5172_v52 = vld [vmem:[%s5438_s10 + $0xd74] ss:$8 sps:$4 sm:$0xff]   ;;  %v5161_v53 = vld [vmem:[%s5440_s11 + $0x50] ss:$112 sps:$4 sm:$0xff]  }
 0x174   : > { %3627 = vmatprep.subr.bf16.mxu1 %v5076_v54  ;;  %3614 = vmatprep.mubr.bf16.mxu0 %v5163_v55  ;;  %v5164_v54 = vld [vmem:[%s5440_s11 + $0x58] ss:$112 sps:$4 sm:$0xff]  }
 0x175   : > { %3657 = vmatprep.mubr.bf16.mxu1 %v5166_v56  ;;  %v5167_v55 = vld [vmem:[%s5438_s10 + $0xc70] ss:$8 sps:$4 sm:$0xff]  }
 0x176   : > { %3585 = vmatpush1.bf16.msra.mxu0 %v5071_v57  ;;  %v5170_v56 = vld [vmem:[%s5438_s10 + $0xd70] ss:$8 sps:$4 sm:$0xff]   ;;  %v5175_v57 = vld [vmem:[%s5438_s10 + $0xc64] ss:$8 sps:$4 sm:$0xff]  }
 0x177   : > { %3628 = vmatpush1.bf16.msra.mxu1 %v5074_v58  ;;  %3586 = vmatprep.subr.bf16.mxu0 %v5079_v59  ;;  %v5178_v58 = vld [vmem:[%s5438_s10 + $0xd64] ss:$8 sps:$4 sm:$0xff]  }
 0x178   : > { %3629 = vmatprep.subr.bf16.mxu1 %v5082_v60  ;;  %v5265_v59 = vld [vmem:[%s5440_s11 + $0x64] ss:$112 sps:$4 sm:$0xff]   ;;  %v5268_v60 = vld [vmem:[%s5440_s11 + $0x6c] ss:$112 sps:$4 sm:$0xff]  }
 0x17a   : > { %3587 = vmatpush1.bf16.msra.mxu0 %v5077_v61  ;;  %v5173_v61 = vld [vmem:[%s5438_s10 + $0xc60] ss:$8 sps:$4 sm:$0xff]  }
 0x17b   : > { %3630 = vmatpush1.bf16.msra.mxu1 %v5080_v62  ;;  %3588 = vmatprep.subr.bf16.mxu0 %v5085_v63  ;;  %v5176_v62 = vld [vmem:[%s5438_s10 + $0xd60] ss:$8 sps:$4 sm:$0xff]   ;;  %v5181_v63 = vld [vmem:[%s5438_s10 + $0xc54] ss:$8 sps:$4 sm:$0xff]  }
 0x17c   : > { %3631 = vmatprep.subr.bf16.mxu1 %v5088_v0  ;;  %v5184_v0 = vld [vmem:[%s5438_s10 + $0xd54] ss:$8 sps:$4 sm:$0xff]  }
 0x17e   : > { %3589 = vmatpush1.bf16.msra.mxu0 %v5083_v1  ;;  %v5179_v1 = vld [vmem:[%s5438_s10 + $0xc50] ss:$8 sps:$4 sm:$0xff]  }
 0x17f   : > { %3632 = vmatpush1.bf16.msra.mxu1 %v5086_v2  ;;  %3590 = vmatprep.subr.bf16.mxu0 %v5091_v3  ;;  %v5182_v2 = vld [vmem:[%s5438_s10 + $0xd50] ss:$8 sps:$4 sm:$0xff]   ;;  %v5187_v3 = vld [vmem:[%s5438_s10 + $0xc44] ss:$8 sps:$4 sm:$0xff]  }
 0x180   : > { %3633 = vmatprep.subr.bf16.mxu1 %v5094_v4  ;;  %v5190_v4 = vld [vmem:[%s5438_s10 + $0xd44] ss:$8 sps:$4 sm:$0xff]  }
 0x182   : > { %3591 = vmatpush1.bf16.msra.mxu0 %v5089_v5  ;;  %v5185_v5 = vld [vmem:[%s5438_s10 + $0xc40] ss:$8 sps:$4 sm:$0xff]  }
 0x183   : > { %3634 = vmatpush1.bf16.msra.mxu1 %v5092_v6  ;;  %3592 = vmatprep.subr.bf16.mxu0 %v5097_v7  ;;  %v5188_v6 = vld [vmem:[%s5438_s10 + $0xd40] ss:$8 sps:$4 sm:$0xff]   ;;  %v5193_v7 = vld [vmem:[%s5438_s10 + $0xc34] ss:$8 sps:$4 sm:$0xff]  }
 0x184   : > { %3635 = vmatprep.subr.bf16.mxu1 %v5100_v8  ;;  %v5196_v8 = vld [vmem:[%s5438_s10 + $0xd34] ss:$8 sps:$4 sm:$0xff]  }
 0x186   : > { %3593 = vmatpush1.bf16.msra.mxu0 %v5095_v9  ;;  %v5191_v9 = vld [vmem:[%s5438_s10 + $0xc30] ss:$8 sps:$4 sm:$0xff]  }
 0x187   : > { %3636 = vmatpush1.bf16.msra.mxu1 %v5098_v10  ;;  %3594 = vmatprep.subr.bf16.mxu0 %v5103_v11  ;;  %v5194_v10 = vld [vmem:[%s5438_s10 + $0xd30] ss:$8 sps:$4 sm:$0xff]   ;;  %v5199_v11 = vld [vmem:[%s5438_s10 + $0xc24] ss:$8 sps:$4 sm:$0xff]  }
 0x188   : > { %3637 = vmatprep.subr.bf16.mxu1 %v5106_v12  ;;  %v5202_v12 = vld [vmem:[%s5438_s10 + $0xd24] ss:$8 sps:$4 sm:$0xff]  }
 0x18a   : > { %3595 = vmatpush1.bf16.msra.mxu0 %v5101_v13  ;;  %v5197_v13 = vld [vmem:[%s5438_s10 + $0xc20] ss:$8 sps:$4 sm:$0xff]  }
 0x18b   : > { %3638 = vmatpush1.bf16.msra.mxu1 %v5104_v14  ;;  %3596 = vmatprep.subr.bf16.mxu0 %v5109_v15  ;;  %v5200_v14 = vld [vmem:[%s5438_s10 + $0xd20] ss:$8 sps:$4 sm:$0xff]   ;;  %v5205_v15 = vld [vmem:[%s5438_s10 + $0xc14] ss:$8 sps:$4 sm:$0xff]  }
 0x18c   : > { %3639 = vmatprep.subr.bf16.mxu1 %v5112_v16  ;;  %v5208_v16 = vld [vmem:[%s5438_s10 + $0xd14] ss:$8 sps:$4 sm:$0xff]  }
 0x18e   : > { %3597 = vmatpush1.bf16.msra.mxu0 %v5107_v17  ;;  %v5203_v17 = vld [vmem:[%s5438_s10 + $0xc10] ss:$8 sps:$4 sm:$0xff]  }
 0x18f   : > { %3640 = vmatpush1.bf16.msra.mxu1 %v5110_v18  ;;  %3598 = vmatprep.subr.bf16.mxu0 %v5115_v19  ;;  %v5206_v18 = vld [vmem:[%s5438_s10 + $0xd10] ss:$8 sps:$4 sm:$0xff]   ;;  %v5211_v19 = vld [vmem:[%s5438_s10 + $0xc04] ss:$8 sps:$4 sm:$0xff]  }
 0x190   : > { %3641 = vmatprep.subr.bf16.mxu1 %v5118_v20  ;;  %v5214_v20 = vld [vmem:[%s5438_s10 + $0xd04] ss:$8 sps:$4 sm:$0xff]  }
 0x192   : > { %3599 = vmatpush2.bf16.msra.mxu0 %v5113_v21  ;;  %v5209_v21 = vld [vmem:[%s5438_s10 + $0xc00] ss:$8 sps:$4 sm:$0xff]  }
 0x193   : > { %3642 = vmatpush2.bf16.msra.mxu1 %v5116_v22  ;;  %3600 = vmatprep.subr.bf16.mxu0 %v5121_v23  ;;  %v5212_v22 = vld [vmem:[%s5438_s10 + $0xd00] ss:$8 sps:$4 sm:$0xff]   ;;  %v5217_v23 = vld [vmem:[%s5438_s10 + $0xcf4] ss:$8 sps:$4 sm:$0xff]  }
 0x194   : > { %3643 = vmatprep.subr.bf16.mxu1 %v5124_v24  ;;  %v5220_v24 = vld [vmem:[%s5438_s10 + $0xdf4] ss:$8 sps:$4 sm:$0xff]  }
 0x196   : > { %3601 = vmatpush2.bf16.msra.mxu0 %v5119_v25  ;;  %v5215_v25 = vld [vmem:[%s5438_s10 + $0xcf0] ss:$8 sps:$4 sm:$0xff]  }
 0x197   : > { %3644 = vmatpush2.bf16.msra.mxu1 %v5122_v26  ;;  %3602 = vmatprep.subr.bf16.mxu0 %v5127_v27  ;;  %v5218_v26 = vld [vmem:[%s5438_s10 + $0xdf0] ss:$8 sps:$4 sm:$0xff]   ;;  %v5223_v27 = vld [vmem:[%s5438_s10 + $0xce4] ss:$8 sps:$4 sm:$0xff]  }
 0x198   : > { %3645 = vmatprep.subr.bf16.mxu1 %v5130_v28  ;;  %v5226_v28 = vld [vmem:[%s5438_s10 + $0xde4] ss:$8 sps:$4 sm:$0xff]  }
 0x19a   : > { %3603 = vmatpush2.bf16.msra.mxu0 %v5125_v29  ;;  %v5221_v29 = vld [vmem:[%s5438_s10 + $0xce0] ss:$8 sps:$4 sm:$0xff]  }
 0x19b   : > { %3646 = vmatpush2.bf16.msra.mxu1 %v5128_v30  ;;  %3604 = vmatprep.subr.bf16.mxu0 %v5133_v31  ;;  %v5224_v30 = vld [vmem:[%s5438_s10 + $0xde0] ss:$8 sps:$4 sm:$0xff]   ;;  %v5229_v31 = vld [vmem:[%s5438_s10 + $0xcd4] ss:$8 sps:$4 sm:$0xff]  }
 0x19c   : > { %3647 = vmatprep.subr.bf16.mxu1 %v5136_v32  ;;  %v5232_v32 = vld [vmem:[%s5438_s10 + $0xdd4] ss:$8 sps:$4 sm:$0xff]  }
 0x19e   : > { %3605 = vmatpush2.bf16.msra.mxu0 %v5131_v33  ;;  %v5227_v33 = vld [vmem:[%s5438_s10 + $0xcd0] ss:$8 sps:$4 sm:$0xff]  }
 0x19f   : > { %3648 = vmatpush2.bf16.msra.mxu1 %v5134_v34  ;;  %3606 = vmatprep.subr.bf16.mxu0 %v5139_v35  ;;  %v5230_v34 = vld [vmem:[%s5438_s10 + $0xdd0] ss:$8 sps:$4 sm:$0xff]   ;;  %v5235_v35 = vld [vmem:[%s5438_s10 + $0xcc4] ss:$8 sps:$4 sm:$0xff]  }
 0x1a0   : > { %3649 = vmatprep.subr.bf16.mxu1 %v5142_v36  ;;  %v5238_v36 = vld [vmem:[%s5438_s10 + $0xdc4] ss:$8 sps:$4 sm:$0xff]  }
 0x1a2   : > { %3607 = vmatpush2.bf16.msra.mxu0 %v5137_v37  ;;  %v5233_v37 = vld [vmem:[%s5438_s10 + $0xcc0] ss:$8 sps:$4 sm:$0xff]  }
 0x1a3   : > { %3650 = vmatpush2.bf16.msra.mxu1 %v5140_v38  ;;  %3608 = vmatprep.subr.bf16.mxu0 %v5145_v39  ;;  %v5236_v38 = vld [vmem:[%s5438_s10 + $0xdc0] ss:$8 sps:$4 sm:$0xff]   ;;  %v5241_v39 = vld [vmem:[%s5438_s10 + $0xcb4] ss:$8 sps:$4 sm:$0xff]  }
 0x1a4   : > { %3651 = vmatprep.subr.bf16.mxu1 %v5148_v40  ;;  %v5244_v40 = vld [vmem:[%s5438_s10 + $0xdb4] ss:$8 sps:$4 sm:$0xff]  }
 0x1a6   : > { %3609 = vmatpush2.bf16.msra.mxu0 %v5143_v41  ;;  %v5239_v41 = vld [vmem:[%s5438_s10 + $0xcb0] ss:$8 sps:$4 sm:$0xff]  }
 0x1a7   : > { %3652 = vmatpush2.bf16.msra.mxu1 %v5146_v42  ;;  %3610 = vmatprep.subr.bf16.mxu0 %v5151_v43  ;;  %v5242_v42 = vld [vmem:[%s5438_s10 + $0xdb0] ss:$8 sps:$4 sm:$0xff]   ;;  %v5247_v43 = vld [vmem:[%s5438_s10 + $0xca4] ss:$8 sps:$4 sm:$0xff]  }
 0x1a8   : > { %3653 = vmatprep.subr.bf16.mxu1 %v5154_v44  ;;  %v5250_v44 = vld [vmem:[%s5438_s10 + $0xda4] ss:$8 sps:$4 sm:$0xff]  }
 0x1aa   : > { %3611 = vmatpush2.bf16.msra.mxu0 %v5149_v45  ;;  %v5245_v45 = vld [vmem:[%s5438_s10 + $0xca0] ss:$8 sps:$4 sm:$0xff]  }
 0x1ab   : > { %3654 = vmatpush2.bf16.msra.mxu1 %v5152_v46  ;;  %3612 = vmatprep.subr.bf16.mxu0 %v5157_v47  ;;  %v5248_v46 = vld [vmem:[%s5438_s10 + $0xda0] ss:$8 sps:$4 sm:$0xff]   ;;  %v5253_v47 = vld [vmem:[%s5438_s10 + $0xc94] ss:$8 sps:$4 sm:$0xff]  }
 0x1ac   : > { %3655 = vmatprep.subr.bf16.mxu1 %v5160_v48  ;;  %v5256_v48 = vld [vmem:[%s5438_s10 + $0xd94] ss:$8 sps:$4 sm:$0xff]  }
 0x1ae   : > { %3613 = vmatpush2.bf16.msra.mxu0 %v5155_v49  ;;  %v5251_v49 = vld [vmem:[%s5438_s10 + $0xc90] ss:$8 sps:$4 sm:$0xff]  }
 0x1af   : > { %3656 = vmatpush2.bf16.msra.mxu1 %v5158_v50  ;;  %3668 = vmatprep.subr.bf16.mxu0 %v5169_v51  ;;  %v5254_v50 = vld [vmem:[%s5438_s10 + $0xd90] ss:$8 sps:$4 sm:$0xff]   ;;  %v5259_v51 = vld [vmem:[%s5438_s10 + $0xc84] ss:$8 sps:$4 sm:$0xff]  }
 0x1b0   : > { %3711 = vmatprep.subr.bf16.mxu1 %v5172_v52  ;;  %v5262_v52 = vld [vmem:[%s5438_s10 + $0xd84] ss:$8 sps:$4 sm:$0xff]  }
 0x1b1   : > { %3615 = vmatmul.mubr.bf16.vlgmr.msra.gmra.mxu0 %v5161_v53  ;;  %v5257_v53 = vld [vmem:[%s5438_s10 + $0xc80] ss:$8 sps:$4 sm:$0xff]  }
 0x1b2   : > { %3658 = vmatmul.mubr.bf16.vlgmr.msra.gmra.mxu1 %v5164_v54  ;;  %3669 = vmatpush1.bf16.msra.mxu0 %v5167_v55  ;;  %v5260_v54 = vld [vmem:[%s5438_s10 + $0xd80] ss:$8 sps:$4 sm:$0xff]  }
 0x1b3   : > { %3712 = vmatpush1.bf16.msra.mxu1 %v5170_v56  ;;  %3670 = vmatprep.subr.bf16.mxu0 %v5175_v57  ;;  %v5263_v55 = vld [vmem:[%s5440_s11 + $0x60] ss:$112 sps:$4 sm:$0xff]   ;;  %v5266_v56 = vld [vmem:[%s5440_s11 + $0x68] ss:$112 sps:$4 sm:$0xff]   ;;  %v3186_v57 = vpop.f32.mrf.mxu0 }
 0x1b4   : > { %3713 = vmatprep.subr.bf16.mxu1 %v5178_v58  ;;  %3700 = vmatprep.mubr.bf16.mxu0 %v5265_v59  ;;  %v3229_v58 = vpop.f32.mrf.mxu1 }
 0x1b5   : > { %3743 = vmatprep.mubr.bf16.mxu1 %v5268_v60  ;;  %v3188_v59 = vpop.f32.mrf.mxu0 }
 0x1b6   : > { %3671 = vmatpush1.bf16.msra.mxu0 %v5173_v61  ;;  %v3231_v60 = vpop.f32.mrf.mxu1 }
 0x1b7   : > { %3714 = vmatpush1.bf16.msra.mxu1 %v5176_v62  ;;  %3672 = vmatprep.subr.bf16.mxu0 %v5181_v63  ;;  %v3190_v61 = vpop.f32.mrf.mxu0 }
 0x1b8   : > { %3715 = vmatprep.subr.bf16.mxu1 %v5184_v0  ;;  %v3233_v62 = vpop.f32.mrf.mxu1 }
 0x1b9   : > { %v3192_v63 = vpop.f32.mrf.mxu0 }
 0x1ba   : > { %3673 = vmatpush1.bf16.msra.mxu0 %v5179_v1  ;;  %v3235_v0 = vpop.f32.mrf.mxu1 }
 0x1bb   : > { %3716 = vmatpush1.bf16.msra.mxu1 %v5182_v2  ;;  %3674 = vmatprep.subr.bf16.mxu0 %v5187_v3  ;;  %v3272_v1 = vpop.f32.mrf.mxu0 }
 0x1bc   : > { %3717 = vmatprep.subr.bf16.mxu1 %v5190_v4  ;;  %v3315_v2 = vpop.f32.mrf.mxu1 }
 0x1bd   : > { %v3274_v3 = vpop.f32.mrf.mxu0 }
 0x1be   : > { %3675 = vmatpush1.bf16.msra.mxu0 %v5185_v5  ;;  %v3317_v4 = vpop.f32.mrf.mxu1 }
 0x1bf   : > { %3718 = vmatpush1.bf16.msra.mxu1 %v5188_v6  ;;  %3676 = vmatprep.subr.bf16.mxu0 %v5193_v7  ;;  %v3276_v5 = vpop.f32.mrf.mxu0 }
 0x1c0   : > { %3719 = vmatprep.subr.bf16.mxu1 %v5196_v8  ;;  %v3319_v6 = vpop.f32.mrf.mxu1 }
 0x1c1   : > { %v3278_v7 = vpop.f32.mrf.mxu0 }
 0x1c2   : > { %3677 = vmatpush1.bf16.msra.mxu0 %v5191_v9  ;;  %v3321_v8 = vpop.f32.mrf.mxu1 }
 0x1c3   : > { %3720 = vmatpush1.bf16.msra.mxu1 %v5194_v10  ;;  %3678 = vmatprep.subr.bf16.mxu0 %v5199_v11  ;;  %v3358_v9 = vpop.f32.mrf.mxu0 }
 0x1c4   : > { %3721 = vmatprep.subr.bf16.mxu1 %v5202_v12  ;;  %v3401_v10 = vpop.f32.mrf.mxu1 }
 0x1c5   : > { %v3360_v11 = vpop.f32.mrf.mxu0 }
 0x1c6   : > { %3679 = vmatpush1.bf16.msra.mxu0 %v5197_v13  ;;  %v3403_v12 = vpop.f32.mrf.mxu1 }
 0x1c7   : > { %3722 = vmatpush1.bf16.msra.mxu1 %v5200_v14  ;;  %3680 = vmatprep.subr.bf16.mxu0 %v5205_v15  ;;  %v3362_v13 = vpop.f32.mrf.mxu0 }
 0x1c8   : > { %3723 = vmatprep.subr.bf16.mxu1 %v5208_v16  ;;  %v3405_v14 = vpop.f32.mrf.mxu1 }
 0x1c9   : > { %v3364_v15 = vpop.f32.mrf.mxu0 }
 0x1ca   : > { %3681 = vmatpush1.bf16.msra.mxu0 %v5203_v17  ;;  %v3407_v16 = vpop.f32.mrf.mxu1 }
 0x1cb   : > { %3724 = vmatpush1.bf16.msra.mxu1 %v5206_v18  ;;  %3682 = vmatprep.subr.bf16.mxu0 %v5211_v19 }
 0x1cc   : > { %3725 = vmatprep.subr.bf16.mxu1 %v5214_v20 }
 0x1ce   : > { %3683 = vmatpush1.bf16.msra.mxu0 %v5209_v21 }
 0x1cf   : > { %3726 = vmatpush1.bf16.msra.mxu1 %v5212_v22  ;;  %3684 = vmatprep.subr.bf16.mxu0 %v5217_v23  ;;  %v3230_v23 = vadd.f32 %v3229_v58, %v3186_v57 }
 0x1d0   : > { %3727 = vmatprep.subr.bf16.mxu1 %v5220_v24 }
 0x1d2   : > { %3685 = vmatpush2.bf16.msra.mxu0 %v5215_v25 }
 0x1d3   : > { %3728 = vmatpush2.bf16.msra.mxu1 %v5218_v26  ;;  %3686 = vmatprep.subr.bf16.mxu0 %v5223_v27  ;;  %v3232_v26 = vadd.f32 %v3231_v60, %v3188_v59  ;;  %v3273_v27 = vadd.f32 %v3272_v1, %v3230_v23 }
 0x1d4   : > { %3729 = vmatprep.subr.bf16.mxu1 %v5226_v28 }
 0x1d6   : > { %3687 = vmatpush2.bf16.msra.mxu0 %v5221_v29 }
 0x1d7   : > { %3730 = vmatpush2.bf16.msra.mxu1 %v5224_v30  ;;  %3688 = vmatprep.subr.bf16.mxu0 %v5229_v31  ;;  %v3234_v30 = vadd.f32 %v3233_v62, %v3190_v61  ;;  %v3275_v31 = vadd.f32 %v3274_v3, %v3232_v26 }
 0x1d8   : > { %3731 = vmatprep.subr.bf16.mxu1 %v5232_v32  ;;  %v3236_v32 = vadd.f32 %v3235_v0, %v3192_v63 }
 0x1da   : > { %3689 = vmatpush2.bf16.msra.mxu0 %v5227_v33  ;;  %v3316_v33 = vadd.f32 %v3315_v2, %v3273_v27 }
 0x1db   : > { %3732 = vmatpush2.bf16.msra.mxu1 %v5230_v34  ;;  %3690 = vmatprep.subr.bf16.mxu0 %v5235_v35  ;;  %v3277_v34 = vadd.f32 %v3276_v5, %v3234_v30 }
 0x1dc   : > { %3733 = vmatprep.subr.bf16.mxu1 %v5238_v36 }
 0x1de   : > { %3691 = vmatpush2.bf16.msra.mxu0 %v5233_v37  ;;  %v3318_v37 = vadd.f32 %v3317_v4, %v3275_v31 }
 0x1df   : > { %3734 = vmatpush2.bf16.msra.mxu1 %v5236_v38  ;;  %3692 = vmatprep.subr.bf16.mxu0 %v5241_v39  ;;  %v3279_v38 = vadd.f32 %v3278_v7, %v3236_v32  ;;  %v3359_v39 = vadd.f32 %v3358_v9, %v3316_v33 }
 0x1e0   : > { %3735 = vmatprep.subr.bf16.mxu1 %v5244_v40  ;;  %v3320_v40 = vadd.f32 %v3319_v6, %v3277_v34 }
 0x1e2   : > { %3693 = vmatpush2.bf16.msra.mxu0 %v5239_v41  ;;  %v3361_v41 = vadd.f32 %v3360_v11, %v3318_v37 }
 0x1e3   : > { %3736 = vmatpush2.bf16.msra.mxu1 %v5242_v42  ;;  %3694 = vmatprep.subr.bf16.mxu0 %v5247_v43 }
 0x1e4   : > { %3737 = vmatprep.subr.bf16.mxu1 %v5250_v44  ;;  %v3322_v44 = vadd.f32 %v3321_v8, %v3279_v38 }
 0x1e6   : > { %3695 = vmatpush2.bf16.msra.mxu0 %v5245_v45  ;;  %v3402_v45 = vadd.f32 %v3401_v10, %v3359_v39 }
 0x1e7   : > { %3738 = vmatpush2.bf16.msra.mxu1 %v5248_v46  ;;  %3696 = vmatprep.subr.bf16.mxu0 %v5253_v47  ;;  %v3363_v46 = vadd.f32 %v3362_v13, %v3320_v40  ;;  %v3404_v47 = vadd.f32 %v3403_v12, %v3361_v41  ;;  %v295_v40 = vld [vmem:[#allocation2 + $0x8] sm:$0xff] }
 0x1e8   : > { %3739 = vmatprep.subr.bf16.mxu1 %v5256_v48  ;;  %v3365_v48 = vadd.f32 %v3364_v15, %v3322_v44 }
 0x1ea   : > { %3697 = vmatpush2.bf16.msra.mxu0 %v5251_v49 }
 0x1eb   : > { %3740 = vmatpush2.bf16.msra.mxu1 %v5254_v50  ;;  %3698 = vmatprep.subr.bf16.mxu0 %v5259_v51 }
 0x1ec   : > { %3741 = vmatprep.subr.bf16.mxu1 %v5262_v52  ;;  %v3406_v52 = vadd.f32 %v3405_v14, %v3363_v46 }
 0x1ee   : > { %3699 = vmatpush2.bf16.msra.mxu0 %v5257_v53 }
 0x1ef   : > { %3742 = vmatpush2.bf16.msra.mxu1 %v5260_v54 }
 0x1f1   : > { %3701 = vmatmul.mubr.bf16.vlgmr.msra.gmra.mxu0 %v5263_v55  ;;  %v3444_v17 = vpop.f32.mrf.mxu0 }
 0x1f2   : > { %3744 = vmatmul.mubr.bf16.vlgmr.msra.gmra.mxu1 %v5266_v56  ;;  %v3487_v18 = vpop.f32.mrf.mxu1  ;;  %v3445_v49 = vadd.f32 %v3444_v17, %v3402_v45  ;;  %v3408_v56 = vadd.f32 %v3407_v16, %v3365_v48 }
 0x1f3   : > { %v3446_v19 = vpop.f32.mrf.mxu0 }
 0x1f4   : > { %v3489_v20 = vpop.f32.mrf.mxu1  ;;  %v3447_v53 = vadd.f32 %v3446_v19, %v3404_v47  ;;  %v3488_v57 = vadd.f32 %v3487_v18, %v3445_v49 }
 0x1f5   : > { %v3448_v21 = vpop.f32.mrf.mxu0 }
 0x1f6   : > { %v3491_v22 = vpop.f32.mrf.mxu1  ;;  %v3449_v58 = vadd.f32 %v3448_v21, %v3406_v52  ;;  %v3490_v59 = vadd.f32 %v3489_v20, %v3447_v53 }
 0x1f7   : > { %v3450_v24 = vpop.f32.mrf.mxu0 }
 0x1f8   : > { %v3493_v25 = vpop.f32.mrf.mxu1  ;;  %v3451_v60 = vadd.f32 %v3450_v24, %v3408_v56  ;;  %v3492_v0 = vadd.f32 %v3491_v22, %v3449_v58  ;;  %v292_v22 = vld [vmem:[#allocation2 + $0x10] sm:$0xff] }
 0x1fa   : > { %v3494_v2 = vadd.f32 %v3493_v25, %v3451_v60 }
 0x231   : > { %v3530_v28 = vpop.f32.mrf.mxu0 }
 0x232   : > { %v3573_v29 = vpop.f32.mrf.mxu1  ;;  %v3531_v61 = vadd.f32 %v3530_v28, %v3488_v57  ;;  %v293_v28 = vld [vmem:[#allocation2] sm:$0xff] }
 0x233   : > { %v3532_v35 = vpop.f32.mrf.mxu0 }
 0x234   : > { %v3575_v36 = vpop.f32.mrf.mxu1  ;;  %v3533_v1 = vadd.f32 %v3532_v35, %v3490_v59  ;;  %v3574_v3 = vadd.f32 %v3573_v29, %v3531_v61  ;;  %v294_v35 = vld [vmem:[#allocation2 + $0x18] sm:$0xff] }
 0x235   : > { %v3534_v42 = vpop.f32.mrf.mxu0 }
 0x236   : > { %v3577_v43 = vpop.f32.mrf.mxu1  ;;  %v3535_v4 = vadd.f32 %v3534_v42, %v3492_v0  ;;  %v3576_v7 = vadd.f32 %v3575_v36, %v3533_v1 }
 0x237   : > { %v3536_v50 = vpop.f32.mrf.mxu0 }
 0x238   : > { %v3579_v51 = vpop.f32.mrf.mxu1  ;;  %v3537_v8 = vadd.f32 %v3536_v50, %v3494_v2  ;;  %v3578_v10 = vadd.f32 %v3577_v43, %v3535_v4 }
 0x23a   : > { %v3580_v14 = vadd.f32 %v3579_v51, %v3537_v8 }
 0x271   : > { %v3616_v54 = vpop.f32.mrf.mxu0 }
 0x272   : > { %v3659_v55 = vpop.f32.mrf.mxu1  ;;  %v3617_v9 = vadd.f32 %v3616_v54, %v3574_v3 }
 0x273   : > { %v3618_v62 = vpop.f32.mrf.mxu0 }
 0x274   : > { %v3661_v63 = vpop.f32.mrf.mxu1  ;;  %v3619_v11 = vadd.f32 %v3618_v62, %v3576_v7  ;;  %v3660_v15 = vadd.f32 %v3659_v55, %v3617_v9 }
 0x275   : > { %v3620_v5 = vpop.f32.mrf.mxu0 }
 0x276   : > { %v3663_v6 = vpop.f32.mrf.mxu1  ;;  %v3621_v16 = vadd.f32 %v3620_v5, %v3578_v10  ;;  %v3662_v19 = vadd.f32 %v3661_v63, %v3619_v11 }
 0x277   : > { %v3622_v12 = vpop.f32.mrf.mxu0 }
 0x278   : > { %v3665_v13 = vpop.f32.mrf.mxu1  ;;  %v3623_v20 = vadd.f32 %v3622_v12, %v3580_v14  ;;  %v3664_v25 = vadd.f32 %v3663_v6, %v3621_v16 }
 0x27a   : > { %v3666_v31 = vadd.f32 %v3665_v13, %v3623_v20 }
 0x2b1   : > { %v3702_v17 = vpop.f32.mrf.mxu0 }
 0x2b2   : > { %v3745_v18 = vpop.f32.mrf.mxu1  ;;  %v3703_v21 = vadd.f32 %v3702_v17, %v3660_v15 }
 0x2b3   : > { %v3704_v23 = vpop.f32.mrf.mxu0 }
 0x2b4   : > { %v3747_v24 = vpop.f32.mrf.mxu1  ;;  %v3746_v26 = vadd.f32 %v3745_v18, %v3703_v21  ;;  %v3705_v27 = vadd.f32 %v3704_v23, %v3662_v19 }
 0x2b5   : > { %v3706_v29 = vpop.f32.mrf.mxu0 }
 0x2b6   : > { %v3749_v30 = vpop.f32.mrf.mxu1  ;;  %v3754_v32 = vadd.f32 %v3746_v26, %v292_v22  ;;  %v3748_v33 = vadd.f32 %v3747_v24, %v3705_v27  ;;  %v3707_v34 = vadd.f32 %v3706_v29, %v3664_v25 }
 0x2b7   : > { %v3708_v36 = vpop.f32.mrf.mxu0 }
 0x2b8   : > { %3758 = vst [vmem:[#allocation2 + $0x10] sm:$0xff] %v3754_v32  ;;  %v3755_v37 = vadd.f32 %v3748_v33, %v293_v28  ;;  %v3750_v38 = vadd.f32 %v3749_v30, %v3707_v34  ;;  %v3709_v39 = vadd.f32 %v3708_v36, %v3666_v31  ;;  %v3751_v41 = vpop.f32.mrf.mxu1 }
 0x2ba   : > { %3759 = vst [vmem:[#allocation2] sm:$0xff] %v3755_v37  ;;  %v3756_v42 = vadd.f32 %v3750_v38, %v294_v35  ;;  %v3752_v43 = vadd.f32 %v3751_v41, %v3709_v39  ;;  %3765 = sbr.rel (%p4484_p10) target bundleno = 940 (0x3ac), region = 67 }
 0x2bc   : > { %3760 = vst [vmem:[#allocation2 + $0x18] sm:$0xff] %v3756_v42  ;;  %v3757_v44 = vadd.f32 %v3752_v43, %v295_v40 }
 0x2be   : > { %3761 = vst [vmem:[#allocation2 + $0x8] sm:$0xff] %v3757_v44 }
 0x2bf   : > { %v5269_v45 = vld [vmem:[%s5989_s2 + $0x78] sm:$0xff]   ;;  %v5271_v47 = vld [vmem:[%s5989_s2 + $0x70] sm:$0xff]   ;;  %v5273_v49 = vld [vmem:[%s5989_s2 + $0x68] sm:$0xff]  }
 0x2c0   : > { %v5270_v46 = vld [vmem:[%s5989_s2 + $0x38] sm:$0xff]   ;;  %4506 = vmatprep.subr.bf16.mxu0 %v5269_v45  ;;  %v5272_v48 = vld [vmem:[%s5989_s2 + $0x30] sm:$0xff]   ;;  %v5274_v50 = vld [vmem:[%s5989_s2 + $0x28] sm:$0xff]  }
 0x2c1   : > { %4507 = vmatpush3.bf16.msra.mxu0 %v5270_v46  ;;  %v5275_v51 = vld [vmem:[%s5989_s2 + $0x60] sm:$0xff]   ;;  %v5277_v53 = vld [vmem:[%s5989_s2 + $0x58] sm:$0xff]   ;;  %v5279_v55 = vld [vmem:[%s5989_s2 + $0x50] sm:$0xff]  }
 0x2c2   : > { %4508 = vmatprep.subr.bf16.mxu0 %v5271_v47  ;;  %v5276_v52 = vld [vmem:[%s5989_s2 + $0x20] sm:$0xff]   ;;  %v5278_v54 = vld [vmem:[%s5989_s2 + $0x18] sm:$0xff]   ;;  %v5280_v60 = vld [vmem:[%s5989_s2 + $0x10] sm:$0xff]  }
 0x2c3   : > { %v3767_v56 = vld [vmem:[#allocation2] sm:$0xff]  ;;  %v5281_v62 = vld [vmem:[%s5989_s2 + $0x48] sm:$0xff]   ;;  %v3766_v0 = vld [vmem:[#allocation2 + $0x10] sm:$0xff] }
 0x2c4   : > { %v3771_v58 = vmax.f32 %v3767_v56, 0.0  ;;  %v5282_v63 = vld [vmem:[%s5989_s2 + $0x8] sm:$0xff]   ;;  %v3768_v1 = vld [vmem:[#allocation2 + $0x18] sm:$0xff]  ;;  %v5283_v2 = vld [vmem:[%s5989_s2 + $0x40] sm:$0xff]   ;;  %v3770_v3 = vmax.f32 %v3766_v0, 0.0 }
 0x2c5   : > { %4509 = vmatpush3.bf16.msra.mxu0 %v5272_v48  ;;  %v3769_v57 = vld [vmem:[#allocation2 + $0x8] sm:$0xff]  ;;  %v3772_v4 = vmax.f32 %v3768_v1, 0.0  ;;  %v5284_v5 = vld [vmem:[%s5989_s2] sm:$0xff]  }
 0x2c6   : > { %4510 = vmatprep.subr.bf16.mxu0 %v5273_v49  ;;  %v3773_v59 = vmax.f32 %v3769_v57, 0.0  ;;  %v4485_v8 = vld [vmem:[%s5990_s3] ss:$0 sm:$0xff] }
 0x2c7   : > { %v3774_v6 = vpack.c.bf16 %v3772_v4, %v3770_v3 }
 0x2c8   : > { %v3775_v61 = vpack.c.bf16 %v3773_v59, %v3771_v58 }
 0x2c9   : > { %4511 = vmatpush3.bf16.msra.mxu0 %v5274_v50 }
 0x2ca   : > { %4512 = vmatprep.subr.bf16.mxu0 %v5275_v51  ;;  %3943 = vmatprep.mubr.bf16.mxu0 %v3775_v61 }
 0x2cd   : > { %4513 = vmatpush3.bf16.msra.mxu0 %v5276_v52 }
 0x2ce   : > { %4514 = vmatprep.subr.bf16.mxu0 %v5277_v53 }
 0x2d1   : > { %4515 = vmatpush3.bf16.msra.mxu0 %v5278_v54 }
 0x2d2   : > { %4516 = vmatprep.subr.bf16.mxu0 %v5279_v55 }
 0x2d5   : > { %4517 = vmatpush3.bf16.msra.mxu0 %v5280_v60 }
 0x2d6   : > { %4518 = vmatprep.subr.bf16.mxu0 %v5281_v62 }
 0x2d9   : > { %4519 = vmatpush3.bf16.msra.mxu0 %v5282_v63 }
 0x2da   : > { %4520 = vmatprep.subr.bf16.mxu0 %v5283_v2 }
 0x2dd   : > { %4521 = vmatpush3.bf16.msra.mxu0 %v5284_v5 }
 0x2e0   : > { %3944 = vmatmul.mubr.bf16.vlgmr.msra.gmra.mxu0 %v3774_v6 }
 0x3a0   : > { %v4522_v7 = vpop.f32.mrf.mxu0 }
 0x3a2   : > { %v4523_v9 = vpop.f32.mrf.mxu0 }
 0x3a3   : > { %v4524_v10 = vadd.f32 %v4523_v9, %v4522_v7 }
 0x3a4   : > { %v4525_v11 = vpop.f32.mrf.mxu0 }
 0x3a5   : > { %v3946_v12 = vadd.f32 %v4524_v10, %v4485_v8 }
 0x3a6   : > { %v4526_v13 = vpop.f32.mrf.mxu0 }
 0x3a7   : > { %3952 = vst [vmem:[%s5991_s4] sm:$0xff] %v3946_v12  ;;  %v4527_v14 = vadd.f32 %v4526_v13, %v4525_v11 }
 0x3a9   : > { %v3949_v15 = vadd.f32 %v4527_v14, %v4485_v8 }
 0x3ab   : > { %3953 = vst [vmem:[%s5991_s4 + $0x8] sm:$0xff] %v3949_v15 }
 0x3ac PF: > { %p11_p11 = scmp.ge.s32.totalorder %s5354_s19, 4   ;;  %s5992_s15 = smov %s5303_s16 }
 0x3ad   : > { %s5993_s16 = smov %s5363_s22  ;;  %s5994_s17 = smov %s5354_s19 }
 0x3ae   :  { %13 = sbr.rel (!%p11_p11) target bundleno = 2 (0x2), region = 101 }

</bundles_post_ra>
